<compile_context>
chip_gen: v7x
topology: tpu7x:2x2x1
jax: 0.10.0
libtpu: 0.0.40
codegen_flags: <defaults>
</compile_context>

<pallas_src>
import functools
import math

import jax
import jax.numpy as jnp
from jax.experimental import pallas as pl
from jax.experimental.pallas import tpu as pltpu

EPS = 1e-5


def _round_up(x, m):
    return ((x + m - 1) // m) * m


def _pick_tile_m(M, K, Cout, vmem_budget_bytes=8 << 20):
    """Largest M-tile (multiple of 8 sublanes) whose double-buffered blocks fit
    comfortably under a v7x/v5e-safe per-call VMEM budget."""
    bytes_per_row = 2 * (K * 4 + Cout * 4)          # in + out blocks, 2 buffers each
    tile = max(8, min(512, vmem_budget_bytes // max(bytes_per_row, 1)))
    tile = (tile // 8) * 8
    tile = min(tile, _round_up(M, 8))
    return max(tile, 8)


# --------------------------------------------------------------------- kernels
def _matmul_stats_kernel(x_ref, w_ref, y_ref, sum_ref, ssq_ref):
    """One M-tile: cols @ w on the MXU (bf16 in, f32 acc) + per-tile BN partials."""
    y = jnp.dot(x_ref[...].astype(jnp.bfloat16), w_ref[...],
                preferred_element_type=jnp.float32)
    y_ref[...] = y
    s = jnp.sum(y, axis=0, keepdims=True)            # (1, Cout)
    ss = jnp.sum(y * y, axis=0, keepdims=True)       # (1, Cout) one-pass sumsq
    pad = jnp.zeros((7, s.shape[1]), jnp.float32)    # pad to an (8, Cout) block
    sum_ref[...] = jnp.concatenate([s, pad], axis=0)
    ssq_ref[...] = jnp.concatenate([ss, pad], axis=0)


def _bn_finalize_kernel(*refs, inv_m, relu, has_residual):
    """Combine partial stats (exact full-batch BN), normalize, +residual, ReLU."""
    if has_residual:
        y_ref, sum_ref, ssq_ref, g_ref, b_ref, r_ref, o_ref = refs
    else:
        y_ref, sum_ref, ssq_ref, g_ref, b_ref, o_ref = refs
        r_ref = None
    total = jnp.sum(sum_ref[...], axis=0, keepdims=True)       # (1, Cout)
    total_sq = jnp.sum(ssq_ref[...], axis=0, keepdims=True)    # (1, Cout)
    mean = total * inv_m
    var = jnp.maximum(total_sq * inv_m - mean * mean, 0.0)     # biased var, >= 0
    scale = jax.lax.rsqrt(var + EPS) * g_ref[...]
    shift = b_ref[...] - mean * scale
    y = y_ref[...] * scale + shift
    if has_residual:
        y = y + r_ref[...]
    if relu:
        y = jnp.maximum(y, 0.0)
    o_ref[...] = y


# ------------------------------------------------------------------- conv glue
def _conv_bn(x_nhwc, w_km, gamma_row, beta_row, *, kh, kw, stride, pad,
             relu, residual_nhwc=None):
    """conv(kh x kw, stride, pad, bias=False) -> BatchNorm2d (training-mode batch
    stats) -> optional residual add -> optional ReLU.  NHWC in / NHWC out."""
    N, H, W, Cin = x_nhwc.shape
    K, Cout = w_km.shape
    Ho = (H + 2 * pad - kh) // stride + 1
    Wo = (W + 2 * pad - kw) // stride + 1
    M = N * Ho * Wo

    # im2col (pure slicing glue); K ordering = (tap, cin), matching w_km prep.
    if kh == 1 and kw == 1 and pad == 0:
        cols = x_nhwc[:, ::stride, ::stride, :].reshape(M, K)
    else:
        xp = jnp.pad(x_nhwc, ((0, 0), (pad, pad), (pad, pad), (0, 0)))
        taps = [xp[:, i:i + stride * Ho:stride, j:j + stride * Wo:stride, :]
                for i in range(kh) for j in range(kw)]
        cols = jnp.stack(taps, axis=3).reshape(M, K)

    tile_m = _pick_tile_m(M, K, Cout)
    Mp = _round_up(M, tile_m)
    n_m = Mp // tile_m
    if Mp != M:
        cols = jnp.pad(cols, ((0, Mp - M), (0, 0)))   # zero rows: stats unaffected

    # ---- pass 1: tiled matmul + per-tile BN partial sums (M tiles independent)
    y, psum, pssq = pl.pallas_call(
        _matmul_stats_kernel,
        grid=(n_m,),
        in_specs=[pl.BlockSpec((tile_m, K), lambda i: (i, 0)),
                  pl.BlockSpec((K, Cout), lambda i: (0, 0))],
        out_specs=(pl.BlockSpec((tile_m, Cout), lambda i: (i, 0)),
                   pl.BlockSpec((8, Cout), lambda i: (i, 0)),
                   pl.BlockSpec((8, Cout), lambda i: (i, 0))),
        out_shape=(jax.ShapeDtypeStruct((Mp, Cout), jnp.float32),
                   jax.ShapeDtypeStruct((8 * n_m, Cout), jnp.float32),
                   jax.ShapeDtypeStruct((8 * n_m, Cout), jnp.float32)),
        compiler_params=pltpu.CompilerParams(dimension_semantics=("parallel",)),
    )(cols, w_km)

    # ---- pass 2: exact full-batch BN finalize (+ residual, + ReLU), tiled over M
    inputs = [y, psum, pssq, gamma_row, beta_row]
    in_specs = [pl.BlockSpec((tile_m, Cout), lambda i: (i, 0)),
                pl.BlockSpec((8 * n_m, Cout), lambda i: (0, 0)),
                pl.BlockSpec((8 * n_m, Cout), lambda i: (0, 0)),
                pl.BlockSpec((1, Cout), lambda i: (0, 0)),
                pl.BlockSpec((1, Cout), lambda i: (0, 0))]
    has_res = residual_nhwc is not None
    if has_res:
        res = residual_nhwc.reshape(M, Cout)
        if Mp != M:
            res = jnp.pad(res, ((0, Mp - M), (0, 0)))
        inputs.append(res)
        in_specs.append(pl.BlockSpec((tile_m, Cout), lambda i: (i, 0)))

    out = pl.pallas_call(
        functools.partial(_bn_finalize_kernel, inv_m=1.0 / M, relu=relu,
                          has_residual=has_res),
        grid=(n_m,),
        in_specs=in_specs,
        out_specs=pl.BlockSpec((tile_m, Cout), lambda i: (i, 0)),
        out_shape=jax.ShapeDtypeStruct((Mp, Cout), jnp.float32),
        compiler_params=pltpu.CompilerParams(dimension_semantics=("parallel",)),
    )(*inputs)
    return out[:M].reshape(N, Ho, Wo, Cout)


# ------------------------------------------------------------------ parameters
def _kaiming_conv(key, cout, cin, kh, kw):
    # kaiming_normal_(mode='fan_out', nonlinearity='relu'), as in ResNet init
    std = math.sqrt(2.0 / (cout * kh * kw))
    return std * jax.random.normal(key, (cout, cin, kh, kw), jnp.float32)


class BasicBlockPallas:
    """PyTorch BasicBlock forward pass (BatchNorm2d in its default training mode:
    per-channel batch stats, biased variance, eps=1e-5, gamma=1, beta=0)."""
    expansion = 1

    def __init__(self, key, inplanes, planes, stride=1):
        k1, k2, k3 = (jax.random.fold_in(key, i) for i in range(3))
        self.w1 = self._prep(_kaiming_conv(k1, planes, inplanes, 3, 3))
        self.w2 = self._prep(_kaiming_conv(k2, planes, planes, 3, 3))
        self.g1, self.b1 = self._bn(planes)
        self.g2, self.b2 = self._bn(planes)
        self.stride = stride
        self.down = None
        if stride != 1 or inplanes != planes * self.expansion:
            self.down = {
                "w": self._prep(_kaiming_conv(k3, planes * self.expansion,
                                              inplanes, 1, 1)),
                "bn": self._bn(planes * self.expansion),
            }

    @staticmethod
    def _prep(w):
        # (Cout, Cin, kh, kw) -> ((tap, cin), Cout), bf16 once at init (hoisted).
        cout, cin, kh, kw = w.shape
        return (w.transpose(2, 3, 1, 0).reshape(kh * kw * cin, cout)
                .astype(jnp.bfloat16))

    @staticmethod
    def _bn(c):
        return jnp.ones((1, c), jnp.float32), jnp.zeros((1, c), jnp.float32)

    def __call__(self, x_nchw):
        # NCHW (PyTorch) -> NHWC once at the module boundary, back once at exit.
        x = x_nchw.transpose(0, 2, 3, 1)
        out = _conv_bn(x, self.w1, self.g1, self.b1,
                       kh=3, kw=3, stride=self.stride, pad=1, relu=True)
        if self.down is not None:
            identity = _conv_bn(x, self.down["w"], *self.down["bn"],
                                kh=1, kw=1, stride=self.stride, pad=0, relu=False)
        else:
            identity = x
        # bn2(conv2(out)) + identity, then ReLU -- fused in the finalize kernel.
        out = _conv_bn(out, self.w2, self.g2, self.b2,
                       kh=3, kw=3, stride=1, pad=1, relu=True,
                       residual_nhwc=identity)
        return out.transpose(0, 3, 1, 2)


# ------------------------------------------------------------------------ main
if __name__ == "__main__":
    root = jax.random.PRNGKey(0)
    # Block A: 64 -> 128 channels, stride 2 (exercises the downsample path).
    # Block B: 128 -> 128, stride 1 (identity shortcut).
    block_a = BasicBlockPallas(jax.random.fold_in(root, 1), 64, 128, stride=2)
    block_b = BasicBlockPallas(jax.random.fold_in(root, 2), 128, 128, stride=1)

    x = jax.random.normal(jax.random.fold_in(root, 7), (2, 64, 16, 16), jnp.float32)

    fwd = jax.jit(lambda inp: block_b(block_a(inp)))
    y = jax.block_until_ready(fwd(x))

    assert y.shape == (2, 128, 8, 8), y.shape
    assert bool(jnp.isfinite(y).all())
    assert bool((y >= 0.0).all())        # final ReLU
    print("KERNEL_OK")
</pallas_src>

<mosaic_0001>
module attributes {stable_mosaic.version = 11 : i64} {
  func.func @_matmul_stats_kernel(%arg0: i32, %arg1: memref<128x576xf32, #tpu.memory_space<vmem>>, %arg2: memref<576x128xbf16, #tpu.memory_space<vmem>>, %arg3: memref<128x128xf32, #tpu.memory_space<vmem>>, %arg4: memref<8x128xf32, #tpu.memory_space<vmem>>, %arg5: memref<8x128xf32, #tpu.memory_space<vmem>>) attributes {dimension_semantics = [#tpu.dimension_semantics<parallel>], iteration_bounds = array<i64: 1>, scalar_prefetch = 0 : i64, scratch_operands = 0 : i64, tpu.core_type = #tpu.core_type<tc>, window_params = [{transform_indices = @transform_0, window_bounds = array<i64: 128, 576>}, {pipeline_mode = #tpu.pipeline_mode<synchronous>, transform_indices = @transform_1, window_bounds = array<i64: 576, 128>}, {transform_indices = @transform_2, window_bounds = array<i64: 128, 128>}, {transform_indices = @transform_3, window_bounds = array<i64: 8, 128>}, {transform_indices = @transform_4, window_bounds = array<i64: 8, 128>}]} {
    %c0 = arith.constant 0 : index
    %c0_0 = arith.constant 0 : index
    %0 = vector.load %arg1[%c0, %c0_0] : memref<128x576xf32, #tpu.memory_space<vmem>>, vector<128x576xf32>
    %1 = arith.truncf %0 : vector<128x576xf32> to vector<128x576xbf16>
    %c0_1 = arith.constant 0 : index
    %c0_2 = arith.constant 0 : index
    %2 = vector.load %arg2[%c0_1, %c0_2] : memref<576x128xbf16, #tpu.memory_space<vmem>>, vector<576x128xbf16>
    %cst = arith.constant dense<0.000000e+00> : vector<128x128xf32>
    %3 = tpu.matmul %1, %2, %cst {dimension_numbers = #tpu.dot_dimension_numbers<[1], [0], [0], [1], [0, 0, 1, 1], [], []>} : vector<128x576xbf16>, vector<576x128xbf16>, vector<128x128xf32> -> vector<128x128xf32>
    %c0_3 = arith.constant 0 : index
    %c0_4 = arith.constant 0 : index
    %4 = vector.load %arg3[%c0_3, %c0_4] : memref<128x128xf32, #tpu.memory_space<vmem>>, vector<128x128xf32>
    tpu.vector_store %arg3[%c0_3, %c0_4], %3 {strides = array<i32>} : memref<128x128xf32, #tpu.memory_space<vmem>>, vector<128x128xf32>,
    %cst_5 = arith.constant dense<0.000000e+00> : vector<128xf32>
    %5 = vector.multi_reduction <add>, %3, %cst_5 [0] : vector<128x128xf32> to vector<128xf32>
    %6 = vector.shape_cast %5 : vector<128xf32> to vector<1x128xf32>
    %7 = arith.mulf %3, %3 : vector<128x128xf32>
    %cst_6 = arith.constant dense<0.000000e+00> : vector<128xf32>
    %8 = vector.multi_reduction <add>, %7, %cst_6 [0] : vector<128x128xf32> to vector<128xf32>
    %9 = vector.shape_cast %8 : vector<128xf32> to vector<1x128xf32>
    %cst_7 = arith.constant 0.000000e+00 : f32
    %10 = vector.broadcast %cst_7 : f32 to vector<7x128xf32>
    %11 = tpu.concatenate %6, %10 in 0 : vector<1x128xf32>, vector<7x128xf32> -> vector<8x128xf32>
    %c0_8 = arith.constant 0 : index
    %c0_9 = arith.constant 0 : index
    %12 = vector.load %arg4[%c0_8, %c0_9] : memref<8x128xf32, #tpu.memory_space<vmem>>, vector<8x128xf32>
    tpu.vector_store %arg4[%c0_8, %c0_9], %11 {strides = array<i32>} : memref<8x128xf32, #tpu.memory_space<vmem>>, vector<8x128xf32>,
    %13 = tpu.concatenate %9, %10 in 0 : vector<1x128xf32>, vector<7x128xf32> -> vector<8x128xf32>
    %c0_10 = arith.constant 0 : index
    %c0_11 = arith.constant 0 : index
    %14 = vector.load %arg5[%c0_10, %c0_11] : memref<8x128xf32, #tpu.memory_space<vmem>>, vector<8x128xf32>
    tpu.vector_store %arg5[%c0_10, %c0_11], %13 {strides = array<i32>} : memref<8x128xf32, #tpu.memory_space<vmem>>, vector<8x128xf32>,
    return
  }
  func.func @transform_0(%arg0: i32) -> (i32, i32) {
    %c0_i32 = arith.constant 0 : i32
    %c0_i32_0 = arith.constant 0 : i32
    return %arg0, %c0_i32 : i32, i32
  }
  func.func @transform_1(%arg0: i32) -> (i32, i32) {
    %c0_i32 = arith.constant 0 : i32
    %c0_i32_0 = arith.constant 0 : i32
    %c0_i32_1 = arith.constant 0 : i32
    return %c0_i32, %c0_i32_0 : i32, i32
  }
  func.func @transform_2(%arg0: i32) -> (i32, i32) {
    %c0_i32 = arith.constant 0 : i32
    %c0_i32_0 = arith.constant 0 : i32
    return %arg0, %c0_i32 : i32, i32
  }
  func.func @transform_3(%arg0: i32) -> (i32, i32) {
    %c0_i32 = arith.constant 0 : i32
    %c0_i32_0 = arith.constant 0 : i32
    return %arg0, %c0_i32 : i32, i32
  }
  func.func @transform_4(%arg0: i32) -> (i32, i32) {
    %c0_i32 = arith.constant 0 : i32
    %c0_i32_0 = arith.constant 0 : i32
    return %arg0, %c0_i32 : i32, i32
  }
}

module attributes {stable_mosaic.version = 11 : i64} {
  func.func @_bn_finalize_kernel(%arg0: i32, %arg1: memref<128x128xf32, #tpu.memory_space<vmem>>, %arg2: memref<8x128xf32, #tpu.memory_space<vmem>>, %arg3: memref<8x128xf32, #tpu.memory_space<vmem>>, %arg4: memref<1x128xf32, #tpu.memory_space<vmem>>, %arg5: memref<1x128xf32, #tpu.memory_space<vmem>>, %arg6: memref<128x128xf32, #tpu.memory_space<vmem>>) attributes {dimension_semantics = [#tpu.dimension_semantics<parallel>], iteration_bounds = array<i64: 1>, scalar_prefetch = 0 : i64, scratch_operands = 0 : i64, tpu.core_type = #tpu.core_type<tc>, window_params = [{transform_indices = @transform_0, window_bounds = array<i64: 128, 128>}, {pipeline_mode = #tpu.pipeline_mode<synchronous>, transform_indices = @transform_1, window_bounds = array<i64: 8, 128>}, {pipeline_mode = #tpu.pipeline_mode<synchronous>, transform_indices = @transform_2, window_bounds = array<i64: 8, 128>}, {pipeline_mode = #tpu.pipeline_mode<synchronous>, transform_indices = @transform_3, window_bounds = array<i64: 1, 128>}, {pipeline_mode = #tpu.pipeline_mode<synchronous>, transform_indices = @transform_4, window_bounds = array<i64: 1, 128>}, {transform_indices = @transform_5, window_bounds = array<i64: 128, 128>}]} {
    %c0 = arith.constant 0 : index
    %c0_0 = arith.constant 0 : index
    %0 = vector.load %arg2[%c0, %c0_0] : memref<8x128xf32, #tpu.memory_space<vmem>>, vector<8x128xf32>
    %cst = arith.constant dense<0.000000e+00> : vector<128xf32>
    %1 = vector.multi_reduction <add>, %0, %cst [0] : vector<8x128xf32> to vector<128xf32>
    %2 = vector.shape_cast %1 : vector<128xf32> to vector<1x128xf32>
    %c0_1 = arith.constant 0 : index
    %c0_2 = arith.constant 0 : index
    %3 = vector.load %arg3[%c0_1, %c0_2] : memref<8x128xf32, #tpu.memory_space<vmem>>, vector<8x128xf32>
    %cst_3 = arith.constant dense<0.000000e+00> : vector<128xf32>
    %4 = vector.multi_reduction <add>, %3, %cst_3 [0] : vector<8x128xf32> to vector<128xf32>
    %5 = vector.shape_cast %4 : vector<128xf32> to vector<1x128xf32>
    %cst_4 = arith.constant 7.812500e-03 : f32
    %6 = vector.broadcast %cst_4 : f32 to vector<1x128xf32>
    %7 = arith.mulf %2, %6 : vector<1x128xf32>
    %cst_5 = arith.constant 7.812500e-03 : f32
    %8 = vector.broadcast %cst_5 : f32 to vector<1x128xf32>
    %9 = arith.mulf %5, %8 : vector<1x128xf32>
    %10 = arith.mulf %7, %7 : vector<1x128xf32>
    %11 = arith.subf %9, %10 : vector<1x128xf32>
    %cst_6 = arith.constant 0.000000e+00 : f32
    %12 = vector.broadcast %cst_6 : f32 to vector<1x128xf32>
    %13 = arith.maximumf %11, %12 : vector<1x128xf32>
    %cst_7 = arith.constant 9.99999974E-6 : f32
    %14 = vector.broadcast %cst_7 : f32 to vector<1x128xf32>
    %15 = arith.addf %13, %14 : vector<1x128xf32>
    %16 = math.rsqrt %15 : vector<1x128xf32>
    %c0_8 = arith.constant 0 : index
    %c0_9 = arith.constant 0 : index
    %17 = vector.load %arg4[%c0_8, %c0_9] : memref<1x128xf32, #tpu.memory_space<vmem>>, vector<1x128xf32>
    %18 = arith.mulf %16, %17 : vector<1x128xf32>
    %c0_10 = arith.constant 0 : index
    %c0_11 = arith.constant 0 : index
    %19 = vector.load %arg5[%c0_10, %c0_11] : memref<1x128xf32, #tpu.memory_space<vmem>>, vector<1x128xf32>
    %20 = arith.mulf %7, %18 : vector<1x128xf32>
    %21 = arith.subf %19, %20 : vector<1x128xf32>
    %c0_12 = arith.constant 0 : index
    %c0_13 = arith.constant 0 : index
    %22 = vector.load %arg1[%c0_12, %c0_13] : memref<128x128xf32, #tpu.memory_space<vmem>>, vector<128x128xf32>
    %23 = vector.broadcast %18 : vector<1x128xf32> to vector<128x128xf32>
    %24 = arith.mulf %22, %23 : vector<128x128xf32>
    %25 = vector.broadcast %21 : vector<1x128xf32> to vector<128x128xf32>
    %26 = arith.addf %24, %25 : vector<128x128xf32>
    %cst_14 = arith.constant 0.000000e+00 : f32
    %27 = vector.broadcast %cst_14 : f32 to vector<128x128xf32>
    %28 = arith.maximumf %26, %27 : vector<128x128xf32>
    %c0_15 = arith.constant 0 : index
    %c0_16 = arith.constant 0 : index
    %29 = vector.load %arg6[%c0_15, %c0_16] : memref<128x128xf32, #tpu.memory_space<vmem>>, vector<128x128xf32>
    tpu.vector_store %arg6[%c0_15, %c0_16], %28 {strides = array<i32>} : memref<128x128xf32, #tpu.memory_space<vmem>>, vector<128x128xf32>,
    return
  }
  func.func @transform_0(%arg0: i32) -> (i32, i32) {
    %c0_i32 = arith.constant 0 : i32
    %c0_i32_0 = arith.constant 0 : i32
    return %arg0, %c0_i32 : i32, i32
  }
  func.func @transform_1(%arg0: i32) -> (i32, i32) {
    %c0_i32 = arith.constant 0 : i32
    %c0_i32_0 = arith.constant 0 : i32
    %c0_i32_1 = arith.constant 0 : i32
    return %c0_i32, %c0_i32_0 : i32, i32
  }
  func.func @transform_2(%arg0: i32) -> (i32, i32) {
    %c0_i32 = arith.constant 0 : i32
    %c0_i32_0 = arith.constant 0 : i32
    %c0_i32_1 = arith.constant 0 : i32
    return %c0_i32, %c0_i32_0 : i32, i32
  }
  func.func @transform_3(%arg0: i32) -> (i32, i32) {
    %c0_i32 = arith.constant 0 : i32
    %c0_i32_0 = arith.constant 0 : i32
    %c0_i32_1 = arith.constant 0 : i32
    return %c0_i32, %c0_i32_0 : i32, i32
  }
  func.func @transform_4(%arg0: i32) -> (i32, i32) {
    %c0_i32 = arith.constant 0 : i32
    %c0_i32_0 = arith.constant 0 : i32
    %c0_i32_1 = arith.constant 0 : i32
    return %c0_i32, %c0_i32_0 : i32, i32
  }
  func.func @transform_5(%arg0: i32) -> (i32, i32) {
    %c0_i32 = arith.constant 0 : i32
    %c0_i32_0 = arith.constant 0 : i32
    return %arg0, %c0_i32 : i32, i32
  }
}

module attributes {stable_mosaic.version = 11 : i64} {
  func.func @_bn_finalize_kernel(%arg0: i32, %arg1: memref<128x128xf32, #tpu.memory_space<vmem>>, %arg2: memref<8x128xf32, #tpu.memory_space<vmem>>, %arg3: memref<8x128xf32, #tpu.memory_space<vmem>>, %arg4: memref<1x128xf32, #tpu.memory_space<vmem>>, %arg5: memref<1x128xf32, #tpu.memory_space<vmem>>, %arg6: memref<128x128xf32, #tpu.memory_space<vmem>>) attributes {dimension_semantics = [#tpu.dimension_semantics<parallel>], iteration_bounds = array<i64: 1>, scalar_prefetch = 0 : i64, scratch_operands = 0 : i64, tpu.core_type = #tpu.core_type<tc>, window_params = [{transform_indices = @transform_0, window_bounds = array<i64: 128, 128>}, {pipeline_mode = #tpu.pipeline_mode<synchronous>, transform_indices = @transform_1, window_bounds = array<i64: 8, 128>}, {pipeline_mode = #tpu.pipeline_mode<synchronous>, transform_indices = @transform_2, window_bounds = array<i64: 8, 128>}, {pipeline_mode = #tpu.pipeline_mode<synchronous>, transform_indices = @transform_3, window_bounds = array<i64: 1, 128>}, {pipeline_mode = #tpu.pipeline_mode<synchronous>, transform_indices = @transform_4, window_bounds = array<i64: 1, 128>}, {transform_indices = @transform_5, window_bounds = array<i64: 128, 128>}]} {
    %c0 = arith.constant 0 : index
    %c0_0 = arith.constant 0 : index
    %0 = vector.load %arg2[%c0, %c0_0] : memref<8x128xf32, #tpu.memory_space<vmem>>, vector<8x128xf32>
    %cst = arith.constant dense<0.000000e+00> : vector<128xf32>
    %1 = vector.multi_reduction <add>, %0, %cst [0] : vector<8x128xf32> to vector<128xf32>
    %2 = vector.shape_cast %1 : vector<128xf32> to vector<1x128xf32>
    %c0_1 = arith.constant 0 : index
    %c0_2 = arith.constant 0 : index
    %3 = vector.load %arg3[%c0_1, %c0_2] : memref<8x128xf32, #tpu.memory_space<vmem>>, vector<8x128xf32>
    %cst_3 = arith.constant dense<0.000000e+00> : vector<128xf32>
    %4 = vector.multi_reduction <add>, %3, %cst_3 [0] : vector<8x128xf32> to vector<128xf32>
    %5 = vector.shape_cast %4 : vector<128xf32> to vector<1x128xf32>
    %cst_4 = arith.constant 7.812500e-03 : f32
    %6 = vector.broadcast %cst_4 : f32 to vector<1x128xf32>
    %7 = arith.mulf %2, %6 : vector<1x128xf32>
    %cst_5 = arith.constant 7.812500e-03 : f32
    %8 = vector.broadcast %cst_5 : f32 to vector<1x128xf32>
    %9 = arith.mulf %5, %8 : vector<1x128xf32>
    %10 = arith.mulf %7, %7 : vector<1x128xf32>
    %11 = arith.subf %9, %10 : vector<1x128xf32>
    %cst_6 = arith.constant 0.000000e+00 : f32
    %12 = vector.broadcast %cst_6 : f32 to vector<1x128xf32>
    %13 = arith.maximumf %11, %12 : vector<1x128xf32>
    %cst_7 = arith.constant 9.99999974E-6 : f32
    %14 = vector.broadcast %cst_7 : f32 to vector<1x128xf32>
    %15 = arith.addf %13, %14 : vector<1x128xf32>
    %16 = math.rsqrt %15 : vector<1x128xf32>
    %c0_8 = arith.constant 0 : index
    %c0_9 = arith.constant 0 : index
    %17 = vector.load %arg4[%c0_8, %c0_9] : memref<1x128xf32, #tpu.memory_space<vmem>>, vector<1x128xf32>
    %18 = arith.mulf %16, %17 : vector<1x128xf32>
    %c0_10 = arith.constant 0 : index
    %c0_11 = arith.constant 0 : index
    %19 = vector.load %arg5[%c0_10, %c0_11] : memref<1x128xf32, #tpu.memory_space<vmem>>, vector<1x128xf32>
    %20 = arith.mulf %7, %18 : vector<1x128xf32>
    %21 = arith.subf %19, %20 : vector<1x128xf32>
    %c0_12 = arith.constant 0 : index
    %c0_13 = arith.constant 0 : index
    %22 = vector.load %arg1[%c0_12, %c0_13] : memref<128x128xf32, #tpu.memory_space<vmem>>, vector<128x128xf32>
    %23 = vector.broadcast %18 : vector<1x128xf32> to vector<128x128xf32>
    %24 = arith.mulf %22, %23 : vector<128x128xf32>
    %25 = vector.broadcast %21 : vector<1x128xf32> to vector<128x128xf32>
    %26 = arith.addf %24, %25 : vector<128x128xf32>
    %c0_14 = arith.constant 0 : index
    %c0_15 = arith.constant 0 : index
    %27 = vector.load %arg6[%c0_14, %c0_15] : memref<128x128xf32, #tpu.memory_space<vmem>>, vector<128x128xf32>
    tpu.vector_store %arg6[%c0_14, %c0_15], %26 {strides = array<i32>} : memref<128x128xf32, #tpu.memory_space<vmem>>, vector<128x128xf32>,
    return
  }
  func.func @transform_0(%arg0: i32) -> (i32, i32) {
    %c0_i32 = arith.constant 0 : i32
    %c0_i32_0 = arith.constant 0 : i32
    return %arg0, %c0_i32 : i32, i32
  }
  func.func @transform_1(%arg0: i32) -> (i32, i32) {
    %c0_i32 = arith.constant 0 : i32
    %c0_i32_0 = arith.constant 0 : i32
    %c0_i32_1 = arith.constant 0 : i32
    return %c0_i32, %c0_i32_0 : i32, i32
  }
  func.func @transform_2(%arg0: i32) -> (i32, i32) {
    %c0_i32 = arith.constant 0 : i32
    %c0_i32_0 = arith.constant 0 : i32
    %c0_i32_1 = arith.constant 0 : i32
    return %c0_i32, %c0_i32_0 : i32, i32
  }
  func.func @transform_3(%arg0: i32) -> (i32, i32) {
    %c0_i32 = arith.constant 0 : i32
    %c0_i32_0 = arith.constant 0 : i32
    %c0_i32_1 = arith.constant 0 : i32
    return %c0_i32, %c0_i32_0 : i32, i32
  }
  func.func @transform_4(%arg0: i32) -> (i32, i32) {
    %c0_i32 = arith.constant 0 : i32
    %c0_i32_0 = arith.constant 0 : i32
    %c0_i32_1 = arith.constant 0 : i32
    return %c0_i32, %c0_i32_0 : i32, i32
  }
  func.func @transform_5(%arg0: i32) -> (i32, i32) {
    %c0_i32 = arith.constant 0 : i32
    %c0_i32_0 = arith.constant 0 : i32
    return %arg0, %c0_i32 : i32, i32
  }
}

module attributes {stable_mosaic.version = 11 : i64} {
  func.func @_matmul_stats_kernel(%arg0: i32, %arg1: memref<128x1152xf32, #tpu.memory_space<vmem>>, %arg2: memref<1152x128xbf16, #tpu.memory_space<vmem>>, %arg3: memref<128x128xf32, #tpu.memory_space<vmem>>, %arg4: memref<8x128xf32, #tpu.memory_space<vmem>>, %arg5: memref<8x128xf32, #tpu.memory_space<vmem>>) attributes {dimension_semantics = [#tpu.dimension_semantics<parallel>], iteration_bounds = array<i64: 1>, scalar_prefetch = 0 : i64, scratch_operands = 0 : i64, tpu.core_type = #tpu.core_type<tc>, window_params = [{transform_indices = @transform_0, window_bounds = array<i64: 128, 1152>}, {pipeline_mode = #tpu.pipeline_mode<synchronous>, transform_indices = @transform_1, window_bounds = array<i64: 1152, 128>}, {transform_indices = @transform_2, window_bounds = array<i64: 128, 128>}, {transform_indices = @transform_3, window_bounds = array<i64: 8, 128>}, {transform_indices = @transform_4, window_bounds = array<i64: 8, 128>}]} {
    %c0 = arith.constant 0 : index
    %c0_0 = arith.constant 0 : index
    %0 = vector.load %arg1[%c0, %c0_0] : memref<128x1152xf32, #tpu.memory_space<vmem>>, vector<128x1152xf32>
    %1 = arith.truncf %0 : vector<128x1152xf32> to vector<128x1152xbf16>
    %c0_1 = arith.constant 0 : index
    %c0_2 = arith.constant 0 : index
    %2 = vector.load %arg2[%c0_1, %c0_2] : memref<1152x128xbf16, #tpu.memory_space<vmem>>, vector<1152x128xbf16>
    %cst = arith.constant dense<0.000000e+00> : vector<128x128xf32>
    %3 = tpu.matmul %1, %2, %cst {dimension_numbers = #tpu.dot_dimension_numbers<[1], [0], [0], [1], [0, 0, 1, 1], [], []>} : vector<128x1152xbf16>, vector<1152x128xbf16>, vector<128x128xf32> -> vector<128x128xf32>
    %c0_3 = arith.constant 0 : index
    %c0_4 = arith.constant 0 : index
    %4 = vector.load %arg3[%c0_3, %c0_4] : memref<128x128xf32, #tpu.memory_space<vmem>>, vector<128x128xf32>
    tpu.vector_store %arg3[%c0_3, %c0_4], %3 {strides = array<i32>} : memref<128x128xf32, #tpu.memory_space<vmem>>, vector<128x128xf32>,
    %cst_5 = arith.constant dense<0.000000e+00> : vector<128xf32>
    %5 = vector.multi_reduction <add>, %3, %cst_5 [0] : vector<128x128xf32> to vector<128xf32>
    %6 = vector.shape_cast %5 : vector<128xf32> to vector<1x128xf32>
    %7 = arith.mulf %3, %3 : vector<128x128xf32>
    %cst_6 = arith.constant dense<0.000000e+00> : vector<128xf32>
    %8 = vector.multi_reduction <add>, %7, %cst_6 [0] : vector<128x128xf32> to vector<128xf32>
    %9 = vector.shape_cast %8 : vector<128xf32> to vector<1x128xf32>
    %cst_7 = arith.constant 0.000000e+00 : f32
    %10 = vector.broadcast %cst_7 : f32 to vector<7x128xf32>
    %11 = tpu.concatenate %6, %10 in 0 : vector<1x128xf32>, vector<7x128xf32> -> vector<8x128xf32>
    %c0_8 = arith.constant 0 : index
    %c0_9 = arith.constant 0 : index
    %12 = vector.load %arg4[%c0_8, %c0_9] : memref<8x128xf32, #tpu.memory_space<vmem>>, vector<8x128xf32>
    tpu.vector_store %arg4[%c0_8, %c0_9], %11 {strides = array<i32>} : memref<8x128xf32, #tpu.memory_space<vmem>>, vector<8x128xf32>,
    %13 = tpu.concatenate %9, %10 in 0 : vector<1x128xf32>, vector<7x128xf32> -> vector<8x128xf32>
    %c0_10 = arith.constant 0 : index
    %c0_11 = arith.constant 0 : index
    %14 = vector.load %arg5[%c0_10, %c0_11] : memref<8x128xf32, #tpu.memory_space<vmem>>, vector<8x128xf32>
    tpu.vector_store %arg5[%c0_10, %c0_11], %13 {strides = array<i32>} : memref<8x128xf32, #tpu.memory_space<vmem>>, vector<8x128xf32>,
    return
  }
  func.func @transform_0(%arg0: i32) -> (i32, i32) {
    %c0_i32 = arith.constant 0 : i32
    %c0_i32_0 = arith.constant 0 : i32
    return %arg0, %c0_i32 : i32, i32
  }
  func.func @transform_1(%arg0: i32) -> (i32, i32) {
    %c0_i32 = arith.constant 0 : i32
    %c0_i32_0 = arith.constant 0 : i32
    %c0_i32_1 = arith.constant 0 : i32
    return %c0_i32, %c0_i32_0 : i32, i32
  }
  func.func @transform_2(%arg0: i32) -> (i32, i32) {
    %c0_i32 = arith.constant 0 : i32
    %c0_i32_0 = arith.constant 0 : i32
    return %arg0, %c0_i32 : i32, i32
  }
  func.func @transform_3(%arg0: i32) -> (i32, i32) {
    %c0_i32 = arith.constant 0 : i32
    %c0_i32_0 = arith.constant 0 : i32
    return %arg0, %c0_i32 : i32, i32
  }
  func.func @transform_4(%arg0: i32) -> (i32, i32) {
    %c0_i32 = arith.constant 0 : i32
    %c0_i32_0 = arith.constant 0 : i32
    return %arg0, %c0_i32 : i32, i32
  }
}

module attributes {stable_mosaic.version = 11 : i64} {
  func.func @_matmul_stats_kernel(%arg0: i32, %arg1: memref<128x64xf32, #tpu.memory_space<vmem>>, %arg2: memref<64x128xbf16, #tpu.memory_space<vmem>>, %arg3: memref<128x128xf32, #tpu.memory_space<vmem>>, %arg4: memref<8x128xf32, #tpu.memory_space<vmem>>, %arg5: memref<8x128xf32, #tpu.memory_space<vmem>>) attributes {dimension_semantics = [#tpu.dimension_semantics<parallel>], iteration_bounds = array<i64: 1>, scalar_prefetch = 0 : i64, scratch_operands = 0 : i64, tpu.core_type = #tpu.core_type<tc>, window_params = [{transform_indices = @transform_0, window_bounds = array<i64: 128, 64>}, {pipeline_mode = #tpu.pipeline_mode<synchronous>, transform_indices = @transform_1, window_bounds = array<i64: 64, 128>}, {transform_indices = @transform_2, window_bounds = array<i64: 128, 128>}, {transform_indices = @transform_3, window_bounds = array<i64: 8, 128>}, {transform_indices = @transform_4, window_bounds = array<i64: 8, 128>}]} {
    %c0 = arith.constant 0 : index
    %c0_0 = arith.constant 0 : index
    %0 = vector.load %arg1[%c0, %c0_0] : memref<128x64xf32, #tpu.memory_space<vmem>>, vector<128x64xf32>
    %1 = arith.truncf %0 : vector<128x64xf32> to vector<128x64xbf16>
    %c0_1 = arith.constant 0 : index
    %c0_2 = arith.constant 0 : index
    %2 = vector.load %arg2[%c0_1, %c0_2] : memref<64x128xbf16, #tpu.memory_space<vmem>>, vector<64x128xbf16>
    %cst = arith.constant dense<0.000000e+00> : vector<128x128xf32>
    %3 = tpu.matmul %1, %2, %cst {dimension_numbers = #tpu.dot_dimension_numbers<[1], [0], [0], [1], [0, 0, 1, 1], [], []>} : vector<128x64xbf16>, vector<64x128xbf16>, vector<128x128xf32> -> vector<128x128xf32>
    %c0_3 = arith.constant 0 : index
    %c0_4 = arith.constant 0 : index
    %4 = vector.load %arg3[%c0_3, %c0_4] : memref<128x128xf32, #tpu.memory_space<vmem>>, vector<128x128xf32>
    tpu.vector_store %arg3[%c0_3, %c0_4], %3 {strides = array<i32>} : memref<128x128xf32, #tpu.memory_space<vmem>>, vector<128x128xf32>,
    %cst_5 = arith.constant dense<0.000000e+00> : vector<128xf32>
    %5 = vector.multi_reduction <add>, %3, %cst_5 [0] : vector<128x128xf32> to vector<128xf32>
    %6 = vector.shape_cast %5 : vector<128xf32> to vector<1x128xf32>
    %7 = arith.mulf %3, %3 : vector<128x128xf32>
    %cst_6 = arith.constant dense<0.000000e+00> : vector<128xf32>
    %8 = vector.multi_reduction <add>, %7, %cst_6 [0] : vector<128x128xf32> to vector<128xf32>
    %9 = vector.shape_cast %8 : vector<128xf32> to vector<1x128xf32>
    %cst_7 = arith.constant 0.000000e+00 : f32
    %10 = vector.broadcast %cst_7 : f32 to vector<7x128xf32>
    %11 = tpu.concatenate %6, %10 in 0 : vector<1x128xf32>, vector<7x128xf32> -> vector<8x128xf32>
    %c0_8 = arith.constant 0 : index
    %c0_9 = arith.constant 0 : index
    %12 = vector.load %arg4[%c0_8, %c0_9] : memref<8x128xf32, #tpu.memory_space<vmem>>, vector<8x128xf32>
    tpu.vector_store %arg4[%c0_8, %c0_9], %11 {strides = array<i32>} : memref<8x128xf32, #tpu.memory_space<vmem>>, vector<8x128xf32>,
    %13 = tpu.concatenate %9, %10 in 0 : vector<1x128xf32>, vector<7x128xf32> -> vector<8x128xf32>
    %c0_10 = arith.constant 0 : index
    %c0_11 = arith.constant 0 : index
    %14 = vector.load %arg5[%c0_10, %c0_11] : memref<8x128xf32, #tpu.memory_space<vmem>>, vector<8x128xf32>
    tpu.vector_store %arg5[%c0_10, %c0_11], %13 {strides = array<i32>} : memref<8x128xf32, #tpu.memory_space<vmem>>, vector<8x128xf32>,
    return
  }
  func.func @transform_0(%arg0: i32) -> (i32, i32) {
    %c0_i32 = arith.constant 0 : i32
    %c0_i32_0 = arith.constant 0 : i32
    return %arg0, %c0_i32 : i32, i32
  }
  func.func @transform_1(%arg0: i32) -> (i32, i32) {
    %c0_i32 = arith.constant 0 : i32
    %c0_i32_0 = arith.constant 0 : i32
    %c0_i32_1 = arith.constant 0 : i32
    return %c0_i32, %c0_i32_0 : i32, i32
  }
  func.func @transform_2(%arg0: i32) -> (i32, i32) {
    %c0_i32 = arith.constant 0 : i32
    %c0_i32_0 = arith.constant 0 : i32
    return %arg0, %c0_i32 : i32, i32
  }
  func.func @transform_3(%arg0: i32) -> (i32, i32) {
    %c0_i32 = arith.constant 0 : i32
    %c0_i32_0 = arith.constant 0 : i32
    return %arg0, %c0_i32 : i32, i32
  }
  func.func @transform_4(%arg0: i32) -> (i32, i32) {
    %c0_i32 = arith.constant 0 : i32
    %c0_i32_0 = arith.constant 0 : i32
    return %arg0, %c0_i32 : i32, i32
  }
}

module attributes {stable_mosaic.version = 11 : i64} {
  func.func @_bn_finalize_kernel(%arg0: i32, %arg1: memref<128x128xf32, #tpu.memory_space<vmem>>, %arg2: memref<8x128xf32, #tpu.memory_space<vmem>>, %arg3: memref<8x128xf32, #tpu.memory_space<vmem>>, %arg4: memref<1x128xf32, #tpu.memory_space<vmem>>, %arg5: memref<1x128xf32, #tpu.memory_space<vmem>>, %arg6: memref<128x128xf32, #tpu.memory_space<vmem>>, %arg7: memref<128x128xf32, #tpu.memory_space<vmem>>) attributes {dimension_semantics = [#tpu.dimension_semantics<parallel>], iteration_bounds = array<i64: 1>, scalar_prefetch = 0 : i64, scratch_operands = 0 : i64, tpu.core_type = #tpu.core_type<tc>, window_params = [{transform_indices = @transform_0, window_bounds = array<i64: 128, 128>}, {pipeline_mode = #tpu.pipeline_mode<synchronous>, transform_indices = @transform_1, window_bounds = array<i64: 8, 128>}, {pipeline_mode = #tpu.pipeline_mode<synchronous>, transform_indices = @transform_2, window_bounds = array<i64: 8, 128>}, {pipeline_mode = #tpu.pipeline_mode<synchronous>, transform_indices = @transform_3, window_bounds = array<i64: 1, 128>}, {pipeline_mode = #tpu.pipeline_mode<synchronous>, transform_indices = @transform_4, window_bounds = array<i64: 1, 128>}, {transform_indices = @transform_5, window_bounds = array<i64: 128, 128>}, {transform_indices = @transform_6, window_bounds = array<i64: 128, 128>}]} {
    %c0 = arith.constant 0 : index
    %c0_0 = arith.constant 0 : index
    %0 = vector.load %arg2[%c0, %c0_0] : memref<8x128xf32, #tpu.memory_space<vmem>>, vector<8x128xf32>
    %cst = arith.constant dense<0.000000e+00> : vector<128xf32>
    %1 = vector.multi_reduction <add>, %0, %cst [0] : vector<8x128xf32> to vector<128xf32>
    %2 = vector.shape_cast %1 : vector<128xf32> to vector<1x128xf32>
    %c0_1 = arith.constant 0 : index
    %c0_2 = arith.constant 0 : index
    %3 = vector.load %arg3[%c0_1, %c0_2] : memref<8x128xf32, #tpu.memory_space<vmem>>, vector<8x128xf32>
    %cst_3 = arith.constant dense<0.000000e+00> : vector<128xf32>
    %4 = vector.multi_reduction <add>, %3, %cst_3 [0] : vector<8x128xf32> to vector<128xf32>
    %5 = vector.shape_cast %4 : vector<128xf32> to vector<1x128xf32>
    %cst_4 = arith.constant 7.812500e-03 : f32
    %6 = vector.broadcast %cst_4 : f32 to vector<1x128xf32>
    %7 = arith.mulf %2, %6 : vector<1x128xf32>
    %cst_5 = arith.constant 7.812500e-03 : f32
    %8 = vector.broadcast %cst_5 : f32 to vector<1x128xf32>
    %9 = arith.mulf %5, %8 : vector<1x128xf32>
    %10 = arith.mulf %7, %7 : vector<1x128xf32>
    %11 = arith.subf %9, %10 : vector<1x128xf32>
    %cst_6 = arith.constant 0.000000e+00 : f32
    %12 = vector.broadcast %cst_6 : f32 to vector<1x128xf32>
    %13 = arith.maximumf %11, %12 : vector<1x128xf32>
    %cst_7 = arith.constant 9.99999974E-6 : f32
    %14 = vector.broadcast %cst_7 : f32 to vector<1x128xf32>
    %15 = arith.addf %13, %14 : vector<1x128xf32>
    %16 = math.rsqrt %15 : vector<1x128xf32>
    %c0_8 = arith.constant 0 : index
    %c0_9 = arith.constant 0 : index
    %17 = vector.load %arg4[%c0_8, %c0_9] : memref<1x128xf32, #tpu.memory_space<vmem>>, vector<1x128xf32>
    %18 = arith.mulf %16, %17 : vector<1x128xf32>
    %c0_10 = arith.constant 0 : index
    %c0_11 = arith.constant 0 : index
    %19 = vector.load %arg5[%c0_10, %c0_11] : memref<1x128xf32, #tpu.memory_space<vmem>>, vector<1x128xf32>
    %20 = arith.mulf %7, %18 : vector<1x128xf32>
    %21 = arith.subf %19, %20 : vector<1x128xf32>
    %c0_12 = arith.constant 0 : index
    %c0_13 = arith.constant 0 : index
    %22 = vector.load %arg1[%c0_12, %c0_13] : memref<128x128xf32, #tpu.memory_space<vmem>>, vector<128x128xf32>
    %23 = vector.broadcast %18 : vector<1x128xf32> to vector<128x128xf32>
    %24 = arith.mulf %22, %23 : vector<128x128xf32>
    %25 = vector.broadcast %21 : vector<1x128xf32> to vector<128x128xf32>
    %26 = arith.addf %24, %25 : vector<128x128xf32>
    %c0_14 = arith.constant 0 : index
    %c0_15 = arith.constant 0 : index
    %27 = vector.load %arg6[%c0_14, %c0_15] : memref<128x128xf32, #tpu.memory_space<vmem>>, vector<128x128xf32>
    %28 = arith.addf %26, %27 : vector<128x128xf32>
    %cst_16 = arith.constant 0.000000e+00 : f32
    %29 = vector.broadcast %cst_16 : f32 to vector<128x128xf32>
    %30 = arith.maximumf %28, %29 : vector<128x128xf32>
    %c0_17 = arith.constant 0 : index
    %c0_18 = arith.constant 0 : index
    %31 = vector.load %arg7[%c0_17, %c0_18] : memref<128x128xf32, #tpu.memory_space<vmem>>, vector<128x128xf32>
    tpu.vector_store %arg7[%c0_17, %c0_18], %30 {strides = array<i32>} : memref<128x128xf32, #tpu.memory_space<vmem>>, vector<128x128xf32>,
    return
  }
  func.func @transform_0(%arg0: i32) -> (i32, i32) {
    %c0_i32 = arith.constant 0 : i32
    %c0_i32_0 = arith.constant 0 : i32
    return %arg0, %c0_i32 : i32, i32
  }
  func.func @transform_1(%arg0: i32) -> (i32, i32) {
    %c0_i32 = arith.constant 0 : i32
    %c0_i32_0 = arith.constant 0 : i32
    %c0_i32_1 = arith.constant 0 : i32
    return %c0_i32, %c0_i32_0 : i32, i32
  }
  func.func @transform_2(%arg0: i32) -> (i32, i32) {
    %c0_i32 = arith.constant 0 : i32
    %c0_i32_0 = arith.constant 0 : i32
    %c0_i32_1 = arith.constant 0 : i32
    return %c0_i32, %c0_i32_0 : i32, i32
  }
  func.func @transform_3(%arg0: i32) -> (i32, i32) {
    %c0_i32 = arith.constant 0 : i32
    %c0_i32_0 = arith.constant 0 : i32
    %c0_i32_1 = arith.constant 0 : i32
    return %c0_i32, %c0_i32_0 : i32, i32
  }
  func.func @transform_4(%arg0: i32) -> (i32, i32) {
    %c0_i32 = arith.constant 0 : i32
    %c0_i32_0 = arith.constant 0 : i32
    %c0_i32_1 = arith.constant 0 : i32
    return %c0_i32, %c0_i32_0 : i32, i32
  }
  func.func @transform_5(%arg0: i32) -> (i32, i32) {
    %c0_i32 = arith.constant 0 : i32
    %c0_i32_0 = arith.constant 0 : i32
    return %arg0, %c0_i32 : i32, i32
  }
  func.func @transform_6(%arg0: i32) -> (i32, i32) {
    %c0_i32 = arith.constant 0 : i32
    %c0_i32_0 = arith.constant 0 : i32
    return %arg0, %c0_i32 : i32, i32
  }
}

module attributes {stable_mosaic.version = 11 : i64} {
  func.func @_bn_finalize_kernel(%arg0: i32, %arg1: memref<128x128xf32, #tpu.memory_space<vmem>>, %arg2: memref<8x128xf32, #tpu.memory_space<vmem>>, %arg3: memref<8x128xf32, #tpu.memory_space<vmem>>, %arg4: memref<1x128xf32, #tpu.memory_space<vmem>>, %arg5: memref<1x128xf32, #tpu.memory_space<vmem>>, %arg6: memref<128x128xf32, #tpu.memory_space<vmem>>, %arg7: memref<128x128xf32, #tpu.memory_space<vmem>>) attributes {dimension_semantics = [#tpu.dimension_semantics<parallel>], iteration_bounds = array<i64: 1>, scalar_prefetch = 0 : i64, scratch_operands = 0 : i64, tpu.core_type = #tpu.core_type<tc>, window_params = [{transform_indices = @transform_0, window_bounds = array<i64: 128, 128>}, {pipeline_mode = #tpu.pipeline_mode<synchronous>, transform_indices = @transform_1, window_bounds = array<i64: 8, 128>}, {pipeline_mode = #tpu.pipeline_mode<synchronous>, transform_indices = @transform_2, window_bounds = array<i64: 8, 128>}, {pipeline_mode = #tpu.pipeline_mode<synchronous>, transform_indices = @transform_3, window_bounds = array<i64: 1, 128>}, {pipeline_mode = #tpu.pipeline_mode<synchronous>, transform_indices = @transform_4, window_bounds = array<i64: 1, 128>}, {transform_indices = @transform_5, window_bounds = array<i64: 128, 128>}, {transform_indices = @transform_6, window_bounds = array<i64: 128, 128>}]} {
    %c0 = arith.constant 0 : index
    %c0_0 = arith.constant 0 : index
    %0 = vector.load %arg2[%c0, %c0_0] : memref<8x128xf32, #tpu.memory_space<vmem>>, vector<8x128xf32>
    %cst = arith.constant dense<0.000000e+00> : vector<128xf32>
    %1 = vector.multi_reduction <add>, %0, %cst [0] : vector<8x128xf32> to vector<128xf32>
    %2 = vector.shape_cast %1 : vector<128xf32> to vector<1x128xf32>
    %c0_1 = arith.constant 0 : index
    %c0_2 = arith.constant 0 : index
    %3 = vector.load %arg3[%c0_1, %c0_2] : memref<8x128xf32, #tpu.memory_space<vmem>>, vector<8x128xf32>
    %cst_3 = arith.constant dense<0.000000e+00> : vector<128xf32>
    %4 = vector.multi_reduction <add>, %3, %cst_3 [0] : vector<8x128xf32> to vector<128xf32>
    %5 = vector.shape_cast %4 : vector<128xf32> to vector<1x128xf32>
    %cst_4 = arith.constant 7.812500e-03 : f32
    %6 = vector.broadcast %cst_4 : f32 to vector<1x128xf32>
    %7 = arith.mulf %2, %6 : vector<1x128xf32>
    %cst_5 = arith.constant 7.812500e-03 : f32
    %8 = vector.broadcast %cst_5 : f32 to vector<1x128xf32>
    %9 = arith.mulf %5, %8 : vector<1x128xf32>
    %10 = arith.mulf %7, %7 : vector<1x128xf32>
    %11 = arith.subf %9, %10 : vector<1x128xf32>
    %cst_6 = arith.constant 0.000000e+00 : f32
    %12 = vector.broadcast %cst_6 : f32 to vector<1x128xf32>
    %13 = arith.maximumf %11, %12 : vector<1x128xf32>
    %cst_7 = arith.constant 9.99999974E-6 : f32
    %14 = vector.broadcast %cst_7 : f32 to vector<1x128xf32>
    %15 = arith.addf %13, %14 : vector<1x128xf32>
    %16 = math.rsqrt %15 : vector<1x128xf32>
    %c0_8 = arith.constant 0 : index
    %c0_9 = arith.constant 0 : index
    %17 = vector.load %arg4[%c0_8, %c0_9] : memref<1x128xf32, #tpu.memory_space<vmem>>, vector<1x128xf32>
    %18 = arith.mulf %16, %17 : vector<1x128xf32>
    %c0_10 = arith.constant 0 : index
    %c0_11 = arith.constant 0 : index
    %19 = vector.load %arg5[%c0_10, %c0_11] : memref<1x128xf32, #tpu.memory_space<vmem>>, vector<1x128xf32>
    %20 = arith.mulf %7, %18 : vector<1x128xf32>
    %21 = arith.subf %19, %20 : vector<1x128xf32>
    %c0_12 = arith.constant 0 : index
    %c0_13 = arith.constant 0 : index
    %22 = vector.load %arg1[%c0_12, %c0_13] : memref<128x128xf32, #tpu.memory_space<vmem>>, vector<128x128xf32>
    %23 = vector.broadcast %18 : vector<1x128xf32> to vector<128x128xf32>
    %24 = arith.mulf %22, %23 : vector<128x128xf32>
    %25 = vector.broadcast %21 : vector<1x128xf32> to vector<128x128xf32>
    %26 = arith.addf %24, %25 : vector<128x128xf32>
    %c0_14 = arith.constant 0 : index
    %c0_15 = arith.constant 0 : index
    %27 = vector.load %arg6[%c0_14, %c0_15] : memref<128x128xf32, #tpu.memory_space<vmem>>, vector<128x128xf32>
    %28 = arith.addf %26, %27 : vector<128x128xf32>
    %cst_16 = arith.constant 0.000000e+00 : f32
    %29 = vector.broadcast %cst_16 : f32 to vector<128x128xf32>
    %30 = arith.maximumf %28, %29 : vector<128x128xf32>
    %c0_17 = arith.constant 0 : index
    %c0_18 = arith.constant 0 : index
    %31 = vector.load %arg7[%c0_17, %c0_18] : memref<128x128xf32, #tpu.memory_space<vmem>>, vector<128x128xf32>
    tpu.vector_store %arg7[%c0_17, %c0_18], %30 {strides = array<i32>} : memref<128x128xf32, #tpu.memory_space<vmem>>, vector<128x128xf32>,
    return
  }
  func.func @transform_0(%arg0: i32) -> (i32, i32) {
    %c0_i32 = arith.constant 0 : i32
    %c0_i32_0 = arith.constant 0 : i32
    return %arg0, %c0_i32 : i32, i32
  }
  func.func @transform_1(%arg0: i32) -> (i32, i32) {
    %c0_i32 = arith.constant 0 : i32
    %c0_i32_0 = arith.constant 0 : i32
    %c0_i32_1 = arith.constant 0 : i32
    return %c0_i32, %c0_i32_0 : i32, i32
  }
  func.func @transform_2(%arg0: i32) -> (i32, i32) {
    %c0_i32 = arith.constant 0 : i32
    %c0_i32_0 = arith.constant 0 : i32
    %c0_i32_1 = arith.constant 0 : i32
    return %c0_i32, %c0_i32_0 : i32, i32
  }
  func.func @transform_3(%arg0: i32) -> (i32, i32) {
    %c0_i32 = arith.constant 0 : i32
    %c0_i32_0 = arith.constant 0 : i32
    %c0_i32_1 = arith.constant 0 : i32
    return %c0_i32, %c0_i32_0 : i32, i32
  }
  func.func @transform_4(%arg0: i32) -> (i32, i32) {
    %c0_i32 = arith.constant 0 : i32
    %c0_i32_0 = arith.constant 0 : i32
    %c0_i32_1 = arith.constant 0 : i32
    return %c0_i32, %c0_i32_0 : i32, i32
  }
  func.func @transform_5(%arg0: i32) -> (i32, i32) {
    %c0_i32 = arith.constant 0 : i32
    %c0_i32_0 = arith.constant 0 : i32
    return %arg0, %c0_i32 : i32, i32
  }
  func.func @transform_6(%arg0: i32) -> (i32, i32) {
    %c0_i32 = arith.constant 0 : i32
    %c0_i32_0 = arith.constant 0 : i32
    return %arg0, %c0_i32 : i32, i32
  }
}

</mosaic_0001>

<bundles_post_ra>
// kernel: _lambda_.11
= control target key start
LH: loop header
LB: loop body
LE: loop exit
PB: predicated region body
PF: predicated region fallthrough
CT: control target
= control target key end

     0   :  { %v62_v20 = vlaneseq  ;;  %s280_s1 = inlined_call_operand.vmem [shape: f32[8,128], index: 1, kind: input, shape index: {}]   ;;  %s281_s2 = inlined_call_operand.vmem [shape: f32[8,128], index: 2, kind: input, shape index: {}]   ;;  %s282_s3 = inlined_call_operand.vmem [shape: f32[1,128], index: 3, kind: input, shape index: {}]   ;;  %s283_s0 = inlined_call_operand.vmem [shape: f32[128,128], index: 0, kind: input, shape index: {}]   ;;  %s284_s4 = inlined_call_operand.vmem [shape: f32[1,128], index: 4, kind: input, shape index: {}]   ;;  %s285_s5 = inlined_call_operand.vmem [shape: f32[128,128], index: 5, kind: output, shape index: {}]  }
   0x1   :  { %v20_v0 = vld [vmem:[%s280_s1] sm:$0xff]  ;;  %v47_v28 = vld [vmem:[%s283_s0 + $0x8] sm:$0xff]  ;;  %v48_v29 = vld [vmem:[%s283_s0 + $0x10] sm:$0xff] }
   0x2   :  { %v27_v1 = vld [vmem:[%s281_s2] sm:$0xff]  ;;  %v21_v2 = vrot.slane %v20_v0, 4  ;;  %v63_v21 = vshrl.u32 %v62_v20, 7  ;;  %v49_v30 = vld [vmem:[%s283_s0 + $0x18] sm:$0xff]  ;;  %v51_v34 = vld [vmem:[%s283_s0 + $0x28] sm:$0xff] }
   0x3   :  { %v28_v3 = vrot.slane %v27_v1, 4  ;;  %v41_v22 = vld [vmem:[%s282_s3] sm:$0x1]  ;;  %v52_v35 = vld [vmem:[%s283_s0 + $0x30] sm:$0xff]  ;;  %v53_v36 = vld [vmem:[%s283_s0 + $0x38] sm:$0xff] }
   0x4   :  { %v22_v4 = vadd.f32 %v21_v2, %v20_v0  ;;  %v64_v23 = vsub.s32 0, %v63_v21  ;;  %v43_v26 = vld [vmem:[%s284_s4] sm:$0x1]  ;;  %v55_v38 = vld [vmem:[%s283_s0 + $0x48] sm:$0xff]  ;;  %v56_v39 = vld [vmem:[%s283_s0 + $0x50] sm:$0xff] }
   0x5   :  { %v29_v5 = vadd.f32 %v28_v3, %v27_v1  ;;  %v46_v27 = vld [vmem:[%s283_s0] sm:$0xff]  ;;  %v57_v44 = vld [vmem:[%s283_s0 + $0x58] sm:$0xff]  ;;  %v59_v46 = vld [vmem:[%s283_s0 + $0x68] sm:$0xff] }
   0x6   :  { %v23_v6 = vrot.slane %v22_v4, 2  ;;  %v50_v31 = vld [vmem:[%s283_s0 + $0x20] sm:$0xff] }
   0x7   :  { %v30_v7 = vrot.slane %v29_v5, 2  ;;  %v54_v37 = vld [vmem:[%s283_s0 + $0x40] sm:$0xff] }
   0x8   :  { %v24_v8 = vadd.f32 %v23_v6, %v22_v4  ;;  %v58_v45 = vld [vmem:[%s283_s0 + $0x60] sm:$0xff] }
   0x9   :  { %v31_v9 = vadd.f32 %v30_v7, %v29_v5  ;;  %v60_v7 = vld [vmem:[%s283_s0 + $0x70] sm:$0xff] }
   0xa   :  { %v25_v10 = vrot.slane %v24_v8, 1 }
   0xb   :  { %v32_v11 = vrot.slane %v31_v9, 1 }
   0xc   :  { %v26_v12 = vadd.f32 %v25_v10, %v24_v8  ;;  %v61_v8 = vld [vmem:[%s283_s0 + $0x78] sm:$0xff] }
   0xd   :  { %v33_v13 = vadd.f32 %v32_v11, %v31_v9 }
   0xe   :  { %v34_v14 = vmul.f32 0.0078125, %v26_v12 }
   0xf   :  { %v35_v15 = vmul.f32 0.0078125, %v33_v13 }
  0x10   :  { %v36_v16 = vmul.f32 %v34_v14, %v34_v14 }
  0x12   :  { %v37_v17 = vsub.f32 %v35_v15, %v36_v16 }
  0x14   :  { %v38_v18 = vmax.f32 %v37_v17, 0.0 }
  0x16   :  { %v39_v19 = vadd.f32 1e-05, %v38_v18 }
  0x18   :  { %140 = vrsqrt.f32 %v39_v19 }
  0x22   :  { %v141_v24 = vpop.eup %140 }
  0x23   :  { %v42_v25 = vmul.f32 %v141_v24, %v41_v22 }
  0x25   :  { %v44_v32 = vmul.f32 %v42_v25, %v34_v14  ;;  %v65_v33 = vrot.slane %v42_v25, %v64_v23 }
  0x27   :  { %v45_v40 = vsub.f32 %v43_v26, %v44_v32  ;;  %v66_v41 = vmul.f32 %v65_v33, %v46_v27  ;;  %v67_v42 = vmul.f32 %v65_v33, %v47_v28  ;;  %v68_v43 = vmul.f32 %v65_v33, %v48_v29 }
  0x28   :  { %v69_v47 = vmul.f32 %v65_v33, %v49_v30  ;;  %v70_v48 = vmul.f32 %v65_v33, %v50_v31  ;;  %v71_v49 = vmul.f32 %v65_v33, %v51_v34  ;;  %v72_v50 = vmul.f32 %v65_v33, %v52_v35 }
  0x29   :  { %v86_v51 = vrot.slane %v45_v40, %v64_v23  ;;  %v73_v52 = vmul.f32 %v65_v33, %v53_v36  ;;  %v74_v53 = vmul.f32 %v65_v33, %v54_v37  ;;  %v75_v54 = vmul.f32 %v65_v33, %v55_v38 }
  0x2a   :  { %v76_v55 = vmul.f32 %v65_v33, %v56_v39  ;;  %v77_v56 = vmul.f32 %v65_v33, %v57_v44  ;;  %v78_v57 = vmul.f32 %v65_v33, %v58_v45  ;;  %v79_v58 = vmul.f32 %v65_v33, %v59_v46 }
  0x2b   :  { %v88_v59 = vadd.f32 %v86_v51, %v66_v41  ;;  %v89_v60 = vadd.f32 %v86_v51, %v67_v42  ;;  %v90_v61 = vadd.f32 %v86_v51, %v68_v43  ;;  %v91_v62 = vadd.f32 %v86_v51, %v69_v47 }
  0x2c   :  { %v92_v63 = vadd.f32 %v86_v51, %v70_v48  ;;  %v93_v0 = vadd.f32 %v86_v51, %v71_v49  ;;  %v94_v1 = vadd.f32 %v86_v51, %v72_v50  ;;  %v95_v2 = vadd.f32 %v86_v51, %v73_v52 }
  0x2d   :  { %v104_v3 = vmax.f32 %v88_v59, 0.0  ;;  %v105_v4 = vmax.f32 %v89_v60, 0.0  ;;  %v106_v5 = vmax.f32 %v90_v61, 0.0  ;;  %v107_v6 = vmax.f32 %v91_v62, 0.0 }
  0x2e   :  { %v108_v9 = vmax.f32 %v92_v63, 0.0  ;;  %v109_v10 = vmax.f32 %v93_v0, 0.0  ;;  %v110_v11 = vmax.f32 %v94_v1, 0.0  ;;  %v111_v12 = vmax.f32 %v95_v2, 0.0 }
  0x2f   :  { %120 = vst [vmem:[%s285_s5] sm:$0xff] %v104_v3  ;;  %121 = vst [vmem:[%s285_s5 + $0x8] sm:$0xff] %v105_v4  ;;  %v96_v13 = vadd.f32 %v86_v51, %v74_v53  ;;  %v97_v14 = vadd.f32 %v86_v51, %v75_v54  ;;  %v98_v15 = vadd.f32 %v86_v51, %v76_v55 }
  0x30   :  { %122 = vst [vmem:[%s285_s5 + $0x10] sm:$0xff] %v106_v5  ;;  %123 = vst [vmem:[%s285_s5 + $0x18] sm:$0xff] %v107_v6  ;;  %v99_v16 = vadd.f32 %v86_v51, %v77_v56  ;;  %v100_v17 = vadd.f32 %v86_v51, %v78_v57  ;;  %v101_v18 = vadd.f32 %v86_v51, %v79_v58 }
  0x31   :  { %124 = vst [vmem:[%s285_s5 + $0x20] sm:$0xff] %v108_v9  ;;  %125 = vst [vmem:[%s285_s5 + $0x28] sm:$0xff] %v109_v10  ;;  %v80_v19 = vmul.f32 %v65_v33, %v60_v7  ;;  %v81_v20 = vmul.f32 %v65_v33, %v61_v8  ;;  %v112_v21 = vmax.f32 %v96_v13, 0.0  ;;  %v113_v22 = vmax.f32 %v97_v14, 0.0 }
  0x32   :  { %126 = vst [vmem:[%s285_s5 + $0x30] sm:$0xff] %v110_v11  ;;  %127 = vst [vmem:[%s285_s5 + $0x38] sm:$0xff] %v111_v12  ;;  %v114_v23 = vmax.f32 %v98_v15, 0.0  ;;  %v115_v24 = vmax.f32 %v99_v16, 0.0  ;;  %v116_v25 = vmax.f32 %v100_v17, 0.0  ;;  %v117_v26 = vmax.f32 %v101_v18, 0.0 }
  0x33   :  { %v102_v27 = vadd.f32 %v86_v51, %v80_v19  ;;  %v103_v28 = vadd.f32 %v86_v51, %v81_v20  ;;  %128 = vst [vmem:[%s285_s5 + $0x40] sm:$0xff] %v112_v21  ;;  %129 = vst [vmem:[%s285_s5 + $0x48] sm:$0xff] %v113_v22 }
  0x34   :  { %130 = vst [vmem:[%s285_s5 + $0x50] sm:$0xff] %v114_v23  ;;  %131 = vst [vmem:[%s285_s5 + $0x58] sm:$0xff] %v115_v24 }
  0x35   :  { %132 = vst [vmem:[%s285_s5 + $0x60] sm:$0xff] %v116_v25  ;;  %133 = vst [vmem:[%s285_s5 + $0x68] sm:$0xff] %v117_v26  ;;  %v118_v29 = vmax.f32 %v102_v27, 0.0  ;;  %v119_v30 = vmax.f32 %v103_v28, 0.0 }
  0x37   :  { %134 = vst [vmem:[%s285_s5 + $0x70] sm:$0xff] %v118_v29  ;;  %135 = vst [vmem:[%s285_s5 + $0x78] sm:$0xff] %v119_v30 }

// kernel: _lambda_.10
= control target key start
LH: loop header
LB: loop body
LE: loop exit
PB: predicated region body
PF: predicated region fallthrough
CT: control target
= control target key end

     0   :  { %vm423_vm0 = vcmask 523264   ;;  %vm813_vm1 = vcmask 1040384   ;;  %s1559_s1 = inlined_call_operand.vmem [shape: bf16[576,128], index: 1, kind: input, shape index: {}]   ;;  %s1560_s0 = inlined_call_operand.vmem [shape: f32[128,576], index: 0, kind: input, shape index: {}]   ;;  %s1561_s2 = inlined_call_operand.vmem [shape: f32[128,128], index: 2, kind: output, shape index: {0}]   ;;  %s1562_s3 = inlined_call_operand.vmem [shape: f32[8,128], index: 3, kind: output, shape index: {1}]   ;;  %s1563_s4 = inlined_call_operand.vmem [shape: f32[8,128], index: 4, kind: output, shape index: {2}]  }
   0x1   :  { %v1046_v0 = vld [vmem:[%s1559_s1 + $0x40] sm:$0xff]   ;;  %v1050_v4 = vld [vmem:[%s1559_s1 + $0x48] sm:$0xff]   ;;  %v1054_v8 = vld [vmem:[%s1559_s1 + $0x50] sm:$0xff]  }
   0x2   :  { %v1047_v1 = vld [vmem:[%s1559_s1 + $0xc0] sm:$0xff]   ;;  %874 = vmatprep.subr.bf16.mxu0 %v1046_v0  ;;  %v1051_v5 = vld [vmem:[%s1559_s1 + $0xc8] sm:$0xff]   ;;  %v1055_v9 = vld [vmem:[%s1559_s1 + $0xd0] sm:$0xff]  }
   0x3   :  { %v1048_v2 = vld [vmem:[%s1559_s1] sm:$0xff]   ;;  %938 = vmatprep.subr.bf16.mxu1 %v1047_v1  ;;  %v1052_v6 = vld [vmem:[%s1559_s1 + $0x8] sm:$0xff]   ;;  %v1056_v10 = vld [vmem:[%s1559_s1 + $0x10] sm:$0xff]  }
   0x4   :  { %v1049_v3 = vld [vmem:[%s1559_s1 + $0x80] sm:$0xff]   ;;  %875 = vmatpush3.bf16.msra.mxu0 %v1048_v2  ;;  %v1053_v7 = vld [vmem:[%s1559_s1 + $0x88] sm:$0xff]   ;;  %v1057_v11 = vld [vmem:[%s1559_s1 + $0x90] sm:$0xff]  }
   0x5   :  { %939 = vmatpush3.bf16.msra.mxu1 %v1049_v3  ;;  %876 = vmatprep.subr.bf16.mxu0 %v1050_v4  ;;  %v1058_v12 = vld [vmem:[%s1559_s1 + $0x58] sm:$0xff]   ;;  %v1062_v16 = vld [vmem:[%s1559_s1 + $0x60] sm:$0xff]   ;;  %v1066_v20 = vld [vmem:[%s1559_s1 + $0x68] sm:$0xff]  }
   0x6   :  { %940 = vmatprep.subr.bf16.mxu1 %v1051_v5  ;;  %v1059_v13 = vld [vmem:[%s1559_s1 + $0xd8] sm:$0xff]   ;;  %v1063_v17 = vld [vmem:[%s1559_s1 + $0xe0] sm:$0xff]   ;;  %v1067_v21 = vld [vmem:[%s1559_s1 + $0xe8] sm:$0xff]  }
   0x7   :  { %v1060_v14 = vld [vmem:[%s1559_s1 + $0x18] sm:$0xff]   ;;  %v1064_v18 = vld [vmem:[%s1559_s1 + $0x20] sm:$0xff]   ;;  %v1068_v22 = vld [vmem:[%s1559_s1 + $0x28] sm:$0xff]  }
   0x8   :  { %877 = vmatpush3.bf16.msra.mxu0 %v1052_v6  ;;  %v1061_v15 = vld [vmem:[%s1559_s1 + $0x98] sm:$0xff]   ;;  %v1065_v19 = vld [vmem:[%s1559_s1 + $0xa0] sm:$0xff]   ;;  %v1069_v23 = vld [vmem:[%s1559_s1 + $0xa8] sm:$0xff]  }
   0x9   :  { %941 = vmatpush3.bf16.msra.mxu1 %v1053_v7  ;;  %878 = vmatprep.subr.bf16.mxu0 %v1054_v8  ;;  %v1070_v24 = vld [vmem:[%s1559_s1 + $0x70] sm:$0xff]   ;;  %v1074_v28 = vld [vmem:[%s1559_s1 + $0x78] sm:$0xff]   ;;  %v16_v32 = vld [vmem:[%s1560_s0 + $0x8] sm:$0xff] }
   0xa   :  { %942 = vmatprep.subr.bf16.mxu1 %v1055_v9  ;;  %v1071_v25 = vld [vmem:[%s1559_s1 + $0xf0] sm:$0xff]   ;;  %v1075_v29 = vld [vmem:[%s1559_s1 + $0xf8] sm:$0xff]   ;;  %v23_v36 = vld [vmem:[%s1560_s0 + $0x40] sm:$0xff] }
   0xb   :  { %v1072_v26 = vld [vmem:[%s1559_s1 + $0x30] sm:$0xff]   ;;  %v1076_v30 = vld [vmem:[%s1559_s1 + $0x38] sm:$0xff]   ;;  %v15_v37 = vld [vmem:[%s1560_s0] sm:$0xff] }
   0xc   :  { %879 = vmatpush3.bf16.msra.mxu0 %v1056_v10  ;;  %v1073_v27 = vld [vmem:[%s1559_s1 + $0xb0] sm:$0xff]   ;;  %v1077_v31 = vld [vmem:[%s1559_s1 + $0xb8] sm:$0xff]   ;;  %v20_v38 = vld [vmem:[%s1560_s0 + $0x28] sm:$0xff] }
   0xd   :  { %943 = vmatpush3.bf16.msra.mxu1 %v1057_v11  ;;  %880 = vmatprep.subr.bf16.mxu0 %v1058_v12  ;;  %v21_v33 = vld [vmem:[%s1560_s0 + $0x30] sm:$0xff]  ;;  %v18_v34 = vld [vmem:[%s1560_s0 + $0x18] sm:$0xff]  ;;  %v95_v40 = vpack.c.bf16 %v20_v38, %v15_v37  ;;  %v1078_v44 = vld [vmem:[%s1559_s1 + $0x100] sm:$0xff]  }
   0xe   :  { %944 = vmatprep.subr.bf16.mxu1 %v1059_v13  ;;  %v96_v35 = vpack.c.bf16 %v21_v33, %v16_v32  ;;  %v98_v39 = vpack.c.bf16 %v23_v36, %v18_v34  ;;  %v17_v41 = vld [vmem:[%s1560_s0 + $0x10] sm:$0xff]  ;;  %v22_v42 = vld [vmem:[%s1560_s0 + $0x38] sm:$0xff]  ;;  %v31_v46 = vld [vmem:[%s1560_s0 + $0x80] sm:$0xff] }
   0xf   :  { %v97_v43 = vpack.c.bf16 %v22_v42, %v17_v41  ;;  %v26_v45 = vld [vmem:[%s1560_s0 + $0x58] sm:$0xff]  ;;  %v28_v47 = vld [vmem:[%s1560_s0 + $0x68] sm:$0xff]  ;;  %v33_v48 = vld [vmem:[%s1560_s0 + $0x90] sm:$0xff] }
  0x10   :  { %881 = vmatpush3.bf16.msra.mxu0 %v1060_v14  ;;  %480 = vmatprep.mubr.bf16.mxu0 %v96_v35  ;;  %v101_v49 = vpack.c.bf16 %v31_v46, %v26_v45  ;;  %v103_v50 = vpack.c.bf16 %v33_v48, %v28_v47  ;;  %v25_v51 = vld [vmem:[%s1560_s0 + $0x50] sm:$0xff]  ;;  %v30_v52 = vld [vmem:[%s1560_s0 + $0x78] sm:$0xff]  ;;  %v27_v53 = vld [vmem:[%s1560_s0 + $0x60] sm:$0xff] }
  0x11   :  { %945 = vmatpush3.bf16.msra.mxu1 %v1061_v15  ;;  %882 = vmatprep.subr.bf16.mxu0 %v1062_v16  ;;  %v32_v54 = vld [vmem:[%s1560_s0 + $0x88] sm:$0xff]  ;;  %v41_v56 = vld [vmem:[%s1560_s0 + $0xd0] sm:$0xff]  ;;  %v38_v57 = vld [vmem:[%s1560_s0 + $0xb8] sm:$0xff]  ;;  %v100_v59 = vpack.c.bf16 %v30_v52, %v25_v51 }
  0x12   :  { %946 = vmatprep.subr.bf16.mxu1 %v1063_v17  ;;  %577 = vmatprep.mubr.bf16.mxu1 %v98_v39  ;;  %v36_v55 = vld [vmem:[%s1560_s0 + $0xa8] sm:$0xff]  ;;  %v43_v58 = vld [vmem:[%s1560_s0 + $0xe0] sm:$0xff]  ;;  %v102_v60 = vpack.c.bf16 %v32_v54, %v27_v53  ;;  %v37_v2 = vld [vmem:[%s1560_s0 + $0xb0] sm:$0xff] }
  0x13   :  { %v106_v61 = vpack.c.bf16 %v41_v56, %v36_v55  ;;  %v1079_v62 = vld [vmem:[%s1559_s1 + $0x108] sm:$0xff]   ;;  %v108_v63 = vpack.c.bf16 %v43_v58, %v38_v57  ;;  %v35_v0 = vld [vmem:[%s1560_s0 + $0xa0] sm:$0xff]  ;;  %v42_v3 = vld [vmem:[%s1560_s0 + $0xd8] sm:$0xff] }
  0x14   :  { %883 = vmatpush3.bf16.msra.mxu0 %v1064_v18  ;;  %v40_v1 = vld [vmem:[%s1560_s0 + $0xc8] sm:$0xff]  ;;  %v46_v4 = vld [vmem:[%s1560_s0 + $0xf8] sm:$0xff]  ;;  %v51_v5 = vld [vmem:[%s1560_s0 + $0x120] sm:$0xff]  ;;  %v107_v10 = vpack.c.bf16 %v42_v3, %v37_v2 }
  0x15   :  { %947 = vmatpush3.bf16.msra.mxu1 %v1065_v19  ;;  %884 = vmatprep.subr.bf16.mxu0 %v1066_v20  ;;  %v48_v6 = vld [vmem:[%s1560_s0 + $0x108] sm:$0xff]  ;;  %v53_v7 = vld [vmem:[%s1560_s0 + $0x130] sm:$0xff]  ;;  %v105_v8 = vpack.c.bf16 %v40_v1, %v35_v0  ;;  %v111_v11 = vpack.c.bf16 %v51_v5, %v46_v4  ;;  %v50_v14 = vld [vmem:[%s1560_s0 + $0x118] sm:$0xff] }
  0x16   :  { %948 = vmatprep.subr.bf16.mxu1 %v1067_v21  ;;  %v1080_v9 = vld [vmem:[%s1559_s1 + $0x110] sm:$0xff]   ;;  %v113_v12 = vpack.c.bf16 %v53_v7, %v48_v6  ;;  %v47_v15 = vld [vmem:[%s1560_s0 + $0x100] sm:$0xff]  ;;  %v52_v16 = vld [vmem:[%s1560_s0 + $0x128] sm:$0xff] }
  0x17   :  { %v45_v13 = vld [vmem:[%s1560_s0 + $0xf0] sm:$0xff]  ;;  %v56_v17 = vld [vmem:[%s1560_s0 + $0x148] sm:$0xff]  ;;  %v1081_v19 = vld [vmem:[%s1559_s1 + $0x118] sm:$0xff]  }
  0x18   :  { %885 = vmatpush3.bf16.msra.mxu0 %v1068_v22  ;;  %v61_v18 = vld [vmem:[%s1560_s0 + $0x170] sm:$0xff]  ;;  %v58_v20 = vld [vmem:[%s1560_s0 + $0x158] sm:$0xff]  ;;  %v63_v21 = vld [vmem:[%s1560_s0 + $0x180] sm:$0xff]  ;;  %v110_v22 = vpack.c.bf16 %v50_v14, %v45_v13 }
  0x19   :  { %949 = vmatpush3.bf16.msra.mxu1 %v1069_v23  ;;  %886 = vmatprep.subr.bf16.mxu0 %v1070_v24  ;;  %v112_v23 = vpack.c.bf16 %v52_v16, %v47_v15  ;;  %v116_v24 = vpack.c.bf16 %v61_v18, %v56_v17  ;;  %v68_v32 = vld [vmem:[%s1560_s0 + $0x1a8] sm:$0xff]  ;;  %v73_v33 = vld [vmem:[%s1560_s0 + $0x1d0] sm:$0xff]  ;;  %v70_v39 = vld [vmem:[%s1560_s0 + $0x1b8] sm:$0xff] }
  0x1a   :  { %950 = vmatprep.subr.bf16.mxu1 %v1071_v25  ;;  %v118_v25 = vpack.c.bf16 %v63_v21, %v58_v20  ;;  %v123_v37 = vpack.c.bf16 %v73_v33, %v68_v32  ;;  %v65_v38 = vld [vmem:[%s1560_s0 + $0x190] sm:$0xff]  ;;  %v72_v41 = vld [vmem:[%s1560_s0 + $0x1c8] sm:$0xff]  ;;  %v83_v45 = vld [vmem:[%s1560_s0 + $0x220] sm:$0xff] }
  0x1b   :  { %v76_v42 = vld [vmem:[%s1560_s0 + $0x1e8] sm:$0xff]  ;;  %v120_v46 = vpack.c.bf16 %v70_v39, %v65_v38  ;;  %v77_v52 = vld [vmem:[%s1560_s0 + $0x1f0] sm:$0xff]  ;;  %v82_v53 = vld [vmem:[%s1560_s0 + $0x218] sm:$0xff] }
  0x1c   :  { %887 = vmatpush3.bf16.msra.mxu0 %v1072_v26  ;;  %v55_v26 = vld [vmem:[%s1560_s0 + $0x140] sm:$0xff]  ;;  %v80_v51 = vld [vmem:[%s1560_s0 + $0x208] sm:$0xff]  ;;  %v86_v54 = vld [vmem:[%s1560_s0 + $0x238] sm:$0xff] }
  0x1d   :  { %951 = vmatpush3.bf16.msra.mxu1 %v1073_v27  ;;  %888 = vmatprep.subr.bf16.mxu0 %v1074_v28  ;;  %v60_v27 = vld [vmem:[%s1560_s0 + $0x168] sm:$0xff]  ;;  %v57_v28 = vld [vmem:[%s1560_s0 + $0x150] sm:$0xff]  ;;  %v91_v55 = vld [vmem:[%s1560_s0 + $0x260] sm:$0xff] }
  0x1e   :  { %952 = vmatprep.subr.bf16.mxu1 %v1075_v29  ;;  %v62_v29 = vld [vmem:[%s1560_s0 + $0x178] sm:$0xff]  ;;  %v115_v34 = vpack.c.bf16 %v60_v27, %v55_v26  ;;  %v88_v56 = vld [vmem:[%s1560_s0 + $0x248] sm:$0xff]  ;;  %v93_v57 = vld [vmem:[%s1560_s0 + $0x270] sm:$0xff] }
  0x1f   :  { %v117_v35 = vpack.c.bf16 %v62_v29, %v57_v28  ;;  %v87_v0 = vld [vmem:[%s1560_s0 + $0x240] sm:$0xff]  ;;  %v92_v1 = vld [vmem:[%s1560_s0 + $0x268] sm:$0xff]  ;;  %v74_v13 = vld [vmem:[%s1560_s0 + $0x1d8] sm:$0xff] }
  0x20   :  { %889 = vmatpush3.bf16.msra.mxu0 %v1076_v30  ;;  %v66_v30 = vld [vmem:[%s1560_s0 + $0x198] sm:$0xff]  ;;  %v19_v2 = vld [vmem:[%s1560_s0 + $0x20] sm:$0xff]  ;;  %v24_v3 = vld [vmem:[%s1560_s0 + $0x48] sm:$0xff]  ;;  %v132_v7 = vpack.c.bf16 %v92_v1, %v87_v0 }
  0x21   :  { %953 = vmatpush3.bf16.msra.mxu1 %v1077_v31  ;;  %1014 = vmatprep.subr.bf16.mxu0 %v1078_v44  ;;  %v71_v31 = vld [vmem:[%s1560_s0 + $0x1c0] sm:$0xff]  ;;  %v64_v5 = vld [vmem:[%s1560_s0 + $0x188] sm:$0xff] }
  0x22   :  { %1038 = vmatprep.subr.bf16.mxu1 %v1078_v44  ;;  %v121_v36 = vpack.c.bf16 %v71_v31, %v66_v30  ;;  %v59_v4 = vld [vmem:[%s1560_s0 + $0x160] sm:$0xff]  ;;  %v44_v15 = vld [vmem:[%s1560_s0 + $0xe8] sm:$0xff] }
  0x23   :  { %481 = vmatmul.mubr.bf16.vlgmr.msra.gmra.mrb[0].mxu0 %v95_v40  ;;  %v67_v40 = vld [vmem:[%s1560_s0 + $0x1a0] sm:$0xff]  ;;  %v84_v17 = vld [vmem:[%s1560_s0 + $0x228] sm:$0xff] }
  0x24   :  { %578 = vmatmul.mubr.bf16.vlgmr.msra.gmra.mrb[0].mxu1 %v97_v43  ;;  %1015 = vmatpush3.bf16.msra.mxu0 %v1078_v44  ;;  %v81_v43 = vld [vmem:[%s1560_s0 + $0x210] sm:$0xff]  ;;  %v122_v47 = vpack.c.bf16 %v72_v41, %v67_v40  ;;  %v39_v14 = vld [vmem:[%s1560_s0 + $0xc0] sm:$0xff] }
  0x25   :  { %488 = vmatprep.mubr.bf16.mxu0 %v101_v49  ;;  %585 = vmatprep.mubr.bf16.mxu1 %v103_v50  ;;  %v126_v48 = vpack.c.bf16 %v81_v43, %v76_v42  ;;  %v75_v50 = vld [vmem:[%s1560_s0 + $0x1e0] sm:$0xff]  ;;  %v109_v20 = vpack.c.bf16 %v44_v15, %v39_v14 }
  0x26   :  { %1042 = vmatpush3.bf16.msra.mxu1 %v1078_v44  ;;  %1016 = vmatprep.subr.bf16.mxu0 %v1079_v62  ;;  %v78_v44 = vld [vmem:[%s1560_s0 + $0x1f8] sm:$0xff]  ;;  %v125_v58 = vpack.c.bf16 %v80_v51, %v75_v50  ;;  %v79_v16 = vld [vmem:[%s1560_s0 + $0x200] sm:$0xff] }
  0x27   :  { %1039 = vmatprep.subr.bf16.mxu1 %v1079_v62  ;;  %v128_v49 = vpack.c.bf16 %v83_v45, %v78_v44  ;;  %v129_v21 = vpack.c.bf16 %v84_v17, %v79_v16 }
  0x28   :  { %1017 = vmatpush3.bf16.msra.mxu0 %v1079_v62 }
  0x29   :  { %1018 = vmatprep.subr.bf16.mxu0 %v1080_v9 }
  0x2a   :  { %1043 = vmatpush3.bf16.msra.mxu1 %v1079_v62  ;;  %v85_v62 = vld [vmem:[%s1560_s0 + $0x230] sm:$0xff] }
  0x2b   :  { %489 = vmatmul.mubr.bf16.gmra.mrb[4].mxu0 %v100_v59  ;;  %1040 = vmatprep.subr.bf16.mxu1 %v1080_v9  ;;  %v127_v59 = vpack.c.bf16 %v82_v53, %v77_v52 }
  0x2c   :  { %586 = vmatmul.mubr.bf16.gmra.mrb[4].mxu1 %v102_v60  ;;  %496 = vmatprep.mubr.bf16.mxu0 %v106_v61  ;;  %v131_v60 = vpack.c.bf16 %v91_v55, %v86_v54  ;;  %v133_v61 = vpack.c.bf16 %v93_v57, %v88_v56 }
  0x2d   :  { %593 = vmatprep.mubr.bf16.mxu1 %v108_v63  ;;  %1019 = vmatpush3.bf16.msra.mxu0 %v1080_v9  ;;  %v90_v63 = vld [vmem:[%s1560_s0 + $0x258] sm:$0xff] }
  0x2e   :  { %1044 = vmatpush3.bf16.msra.mxu1 %v1080_v9  ;;  %1020 = vmatprep.subr.bf16.mxu0 %v1081_v19  ;;  %v130_v6 = vpack.c.bf16 %v90_v63, %v85_v62  ;;  %v119_v9 = vpack.c.bf16 %v64_v5, %v59_v4 }
  0x2f   :  { %1041 = vmatprep.subr.bf16.mxu1 %v1081_v19 }
  0x31   :  { %1021 = vmatpush3.bf16.msra.mxu0 %v1081_v19 }
  0x32   :  { %1045 = vmatpush3.bf16.msra.mxu1 %v1081_v19 }
  0x33   :  { %497 = vmatmul.mubr.bf16.gmra.mrb[8].mxu0 %v105_v8  ;;  %v99_v8 = vpack.c.bf16 %v24_v3, %v19_v2 }
  0x34   :  { %594 = vmatmul.mubr.bf16.gmra.mrb[8].mxu1 %v107_v10  ;;  %504 = vmatprep.mubr.bf16.mxu0 %v111_v11  ;;  %v29_v10 = vld [vmem:[%s1560_s0 + $0x70] sm:$0xff]  ;;  %v34_v11 = vld [vmem:[%s1560_s0 + $0x98] sm:$0xff] }
  0x35   :  { %601 = vmatprep.mubr.bf16.mxu1 %v113_v12  ;;  %v69_v12 = vld [vmem:[%s1560_s0 + $0x1b0] sm:$0xff]  ;;  %v104_v18 = vpack.c.bf16 %v34_v11, %v29_v10 }
  0x36   :  { %v124_v19 = vpack.c.bf16 %v74_v13, %v69_v12 }
  0x3b   :  { %505 = vmatmul.mubr.bf16.gmra.mrb[12].mxu0 %v110_v22  ;;  %v49_v22 = vld [vmem:[%s1560_s0 + $0x110] sm:$0xff] }
  0x3c   :  { %602 = vmatmul.mubr.bf16.gmra.mrb[12].mxu1 %v112_v23  ;;  %512 = vmatprep.mubr.bf16.mxu0 %v116_v24  ;;  %v54_v23 = vld [vmem:[%s1560_s0 + $0x138] sm:$0xff]  ;;  %v89_v24 = vld [vmem:[%s1560_s0 + $0x250] sm:$0xff] }
  0x3d   :  { %609 = vmatprep.mubr.bf16.mxu1 %v118_v25  ;;  %v94_v25 = vld [vmem:[%s1560_s0 + $0x278] sm:$0xff]  ;;  %v114_v26 = vpack.c.bf16 %v54_v23, %v49_v22 }
  0x3e   :  { %v134_v27 = vpack.c.bf16 %v94_v25, %v89_v24 }
  0x43   :  { %513 = vmatmul.mubr.bf16.gmra.mrb[16].mxu0 %v115_v34 }
  0x44   :  { %610 = vmatmul.mubr.bf16.gmra.mrb[16].mxu1 %v117_v35  ;;  %520 = vmatprep.mubr.bf16.mxu0 %v121_v36 }
  0x45   :  { %617 = vmatprep.mubr.bf16.mxu1 %v123_v37 }
  0x4b   :  { %521 = vmatmul.mubr.bf16.gmra.mrb[20].mxu0 %v120_v46 }
  0x4c   :  { %618 = vmatmul.mubr.bf16.gmra.mrb[20].mxu1 %v122_v47  ;;  %528 = vmatprep.mubr.bf16.mxu0 %v126_v48 }
  0x4d   :  { %625 = vmatprep.mubr.bf16.mxu1 %v128_v49 }
  0x53   :  { %529 = vmatmul.mubr.bf16.gmra.mrb[24].mxu0 %v125_v58 }
  0x54   :  { %626 = vmatmul.mubr.bf16.gmra.mrb[24].mxu1 %v127_v59  ;;  %536 = vmatprep.mubr.bf16.mxu0 %v131_v60 }
  0x55   :  { %633 = vmatprep.mubr.bf16.mxu1 %v133_v61 }
  0x5b   :  { %537 = vmatmul.mubr.bf16.gmra.mrb[28].mxu0 %v130_v6 }
  0x5c   :  { %634 = vmatmul.mubr.bf16.gmra.mrb[28].mxu1 %v132_v7  ;;  %1022 = vmatprep.mubr.msk.bf16.mxu0 %vm423_vm0, %v99_v8 }
  0x5d   :  { %1030 = vmatprep.mubr.msk.bf16.mxu1 %vm423_vm0, %v119_v9 }
  0x63   :  { %1023 = vmatmul.mubr.msk.bf16.vlgmr.msra.gmra.mrb[32].mxu0 %vm423_vm0, %v104_v18 }
  0x64   :  { %1031 = vmatmul.mubr.msk.bf16.vlgmr.msra.gmra.mrb[32].mxu1 %vm423_vm0, %v124_v19  ;;  %1026 = vmatprep.mubr.msk.bf16.mxu0 %vm423_vm0, %v109_v20 }
  0x65   :  { %1034 = vmatprep.mubr.msk.bf16.mxu1 %vm423_vm0, %v129_v21 }
  0x6b   :  { %1027 = vmatmul.mubr.msk.bf16.gmra.mrb[36].mxu0 %vm423_vm0, %v114_v26 }
  0x6c   :  { %1035 = vmatmul.mubr.msk.bf16.gmra.mrb[36].mxu1 %vm423_vm0, %v134_v27 }
  0xf6   :  { %v890_v28 = vpop.f32.mrb[0].mxu0 }
  0xf7   :  { %v954_v29 = vpop.f32.mrb[0].mxu1  ;;  %v891_v30 = vpop.f32.mrb[1].mxu0 }
  0xf8   :  { %v892_v31 = vadd.f32 %v891_v30, %v890_v28  ;;  %v955_v32 = vpop.f32.mrb[1].mxu1  ;;  %v893_v33 = vpop.f32.mrb[2].mxu0 }
  0xf9   :  { %v956_v34 = vadd.f32 %v955_v32, %v954_v29  ;;  %v957_v35 = vpop.f32.mrb[2].mxu1  ;;  %v894_v36 = vpop.f32.mrb[3].mxu0 }
  0xfa   :  { %v895_v37 = vadd.f32 %v894_v36, %v893_v33  ;;  %v958_v38 = vpop.f32.mrb[3].mxu1 }
  0xfb   :  { %v959_v39 = vadd.f32 %v958_v38, %v957_v35  ;;  %v1463_v40 = vadd.f32 %v956_v34, %v892_v31 }
  0xfd   :  { %v1465_v41 = vadd.f32 %v959_v39, %v895_v37 }
  0xfe   :  { %v896_v42 = vpop.f32.mrb[4].mxu0 }
  0xff   :  { %v960_v43 = vpop.f32.mrb[4].mxu1  ;;  %v897_v44 = vpop.f32.mrb[5].mxu0 }
 0x100   :  { %v898_v45 = vadd.f32 %v897_v44, %v896_v42  ;;  %v961_v46 = vpop.f32.mrb[5].mxu1  ;;  %v899_v47 = vpop.f32.mrb[6].mxu0 }
 0x101   :  { %v962_v48 = vadd.f32 %v961_v46, %v960_v43  ;;  %v963_v49 = vpop.f32.mrb[6].mxu1  ;;  %v900_v50 = vpop.f32.mrb[7].mxu0 }
 0x102   :  { %v901_v51 = vadd.f32 %v900_v50, %v899_v47  ;;  %v964_v52 = vpop.f32.mrb[7].mxu1 }
 0x103   :  { %v965_v53 = vadd.f32 %v964_v52, %v963_v49  ;;  %v1467_v54 = vadd.f32 %v962_v48, %v898_v45 }
 0x105   :  { %v1469_v55 = vadd.f32 %v965_v53, %v901_v51 }
 0x106   :  { %v902_v56 = vpop.f32.mrb[8].mxu0 }
 0x107   :  { %v966_v57 = vpop.f32.mrb[8].mxu1  ;;  %v903_v58 = vpop.f32.mrb[9].mxu0 }
 0x108   :  { %v904_v59 = vadd.f32 %v903_v58, %v902_v56  ;;  %v967_v60 = vpop.f32.mrb[9].mxu1  ;;  %v905_v61 = vpop.f32.mrb[10].mxu0 }
 0x109   :  { %v968_v62 = vadd.f32 %v967_v60, %v966_v57  ;;  %v969_v63 = vpop.f32.mrb[10].mxu1  ;;  %v906_v0 = vpop.f32.mrb[11].mxu0 }
 0x10a   :  { %v907_v1 = vadd.f32 %v906_v0, %v905_v61  ;;  %v970_v2 = vpop.f32.mrb[11].mxu1 }
 0x10b   :  { %v971_v3 = vadd.f32 %v970_v2, %v969_v63  ;;  %v1471_v4 = vadd.f32 %v968_v62, %v904_v59 }
 0x10d   :  { %v1473_v5 = vadd.f32 %v971_v3, %v907_v1 }
 0x10e   :  { %v908_v6 = vpop.f32.mrb[12].mxu0 }
 0x10f   :  { %v972_v7 = vpop.f32.mrb[12].mxu1  ;;  %v909_v8 = vpop.f32.mrb[13].mxu0 }
 0x110   :  { %v910_v9 = vadd.f32 %v909_v8, %v908_v6  ;;  %v973_v10 = vpop.f32.mrb[13].mxu1  ;;  %v911_v11 = vpop.f32.mrb[14].mxu0 }
 0x111   :  { %v974_v12 = vadd.f32 %v973_v10, %v972_v7  ;;  %v975_v13 = vpop.f32.mrb[14].mxu1  ;;  %v912_v14 = vpop.f32.mrb[15].mxu0 }
 0x112   :  { %v913_v15 = vadd.f32 %v912_v14, %v911_v11  ;;  %v976_v16 = vpop.f32.mrb[15].mxu1 }
 0x113   :  { %v977_v17 = vadd.f32 %v976_v16, %v975_v13  ;;  %v1475_v18 = vadd.f32 %v974_v12, %v910_v9 }
 0x115   :  { %v1477_v19 = vadd.f32 %v977_v17, %v913_v15 }
 0x116   :  { %v914_v20 = vpop.f32.mrb[16].mxu0 }
 0x117   :  { %v978_v21 = vpop.f32.mrb[16].mxu1  ;;  %v915_v22 = vpop.f32.mrb[17].mxu0 }
 0x118   :  { %v916_v23 = vadd.f32 %v915_v22, %v914_v20  ;;  %v979_v24 = vpop.f32.mrb[17].mxu1  ;;  %v917_v25 = vpop.f32.mrb[18].mxu0 }
 0x119   :  { %v980_v26 = vadd.f32 %v979_v24, %v978_v21  ;;  %v981_v27 = vpop.f32.mrb[18].mxu1  ;;  %v918_v28 = vpop.f32.mrb[19].mxu0 }
 0x11a   :  { %v919_v29 = vadd.f32 %v918_v28, %v917_v25  ;;  %v982_v30 = vpop.f32.mrb[19].mxu1 }
 0x11b   :  { %v983_v31 = vadd.f32 %v982_v30, %v981_v27  ;;  %v612_v32 = vadd.f32 %v980_v26, %v916_v23 }
 0x11d   :  { %v1479_v33 = vadd.f32 %v983_v31, %v919_v29 }
 0x11e   :  { %v920_v34 = vpop.f32.mrb[20].mxu0 }
 0x11f   :  { %v984_v35 = vpop.f32.mrb[20].mxu1  ;;  %v921_v36 = vpop.f32.mrb[21].mxu0 }
 0x120   :  { %v922_v37 = vadd.f32 %v921_v36, %v920_v34  ;;  %v985_v38 = vpop.f32.mrb[21].mxu1  ;;  %v923_v39 = vpop.f32.mrb[22].mxu0 }
 0x121   :  { %v986_v42 = vadd.f32 %v985_v38, %v984_v35  ;;  %v987_v43 = vpop.f32.mrb[22].mxu1  ;;  %v924_v44 = vpop.f32.mrb[23].mxu0 }
 0x122   :  { %v925_v45 = vadd.f32 %v924_v44, %v923_v39  ;;  %v988_v46 = vpop.f32.mrb[23].mxu1 }
 0x123   :  { %v989_v47 = vadd.f32 %v988_v46, %v987_v43  ;;  %v620_v48 = vadd.f32 %v986_v42, %v922_v37 }
 0x125   :  { %v623_v49 = vadd.f32 %v989_v47, %v925_v45 }
 0x126   :  { %v926_v50 = vpop.f32.mrb[24].mxu0 }
 0x127   :  { %v990_v51 = vpop.f32.mrb[24].mxu1  ;;  %v927_v52 = vpop.f32.mrb[25].mxu0 }
 0x128   :  { %v928_v53 = vadd.f32 %v927_v52, %v926_v50  ;;  %v991_v56 = vpop.f32.mrb[25].mxu1  ;;  %v929_v57 = vpop.f32.mrb[26].mxu0 }
 0x129   :  { %v992_v58 = vadd.f32 %v991_v56, %v990_v51  ;;  %v993_v59 = vpop.f32.mrb[26].mxu1  ;;  %v930_v60 = vpop.f32.mrb[27].mxu0 }
 0x12a   :  { %v931_v61 = vadd.f32 %v930_v60, %v929_v57  ;;  %v994_v62 = vpop.f32.mrb[27].mxu1 }
 0x12b   :  { %v995_v63 = vadd.f32 %v994_v62, %v993_v59  ;;  %v628_v0 = vadd.f32 %v992_v58, %v928_v53 }
 0x12d   :  { %v1481_v1 = vadd.f32 %v995_v63, %v931_v61 }
 0x12e   :  { %v932_v2 = vpop.f32.mrb[28].mxu0 }
 0x12f   :  { %v996_v3 = vpop.f32.mrb[28].mxu1  ;;  %v933_v6 = vpop.f32.mrb[29].mxu0 }
 0x130   :  { %v934_v7 = vadd.f32 %v933_v6, %v932_v2  ;;  %v997_v8 = vpop.f32.mrb[29].mxu1  ;;  %v935_v9 = vpop.f32.mrb[30].mxu0 }
 0x131   :  { %v998_v10 = vadd.f32 %v997_v8, %v996_v3  ;;  %v999_v11 = vpop.f32.mrb[30].mxu1  ;;  %v936_v12 = vpop.f32.mrb[31].mxu0 }
 0x132   :  { %v937_v13 = vadd.f32 %v936_v12, %v935_v9  ;;  %v1000_v14 = vpop.f32.mrb[31].mxu1 }
 0x133   :  { %v1001_v15 = vadd.f32 %v1000_v14, %v999_v11  ;;  %v636_v16 = vadd.f32 %v998_v10, %v934_v7 }
 0x135   :  { %v639_v17 = vadd.f32 %v1001_v15, %v937_v13 }
 0x136   :  { %v1024_v20 = vpop.f32.mrb[32].mxu0 }
 0x137   :  { %v685_v21 = vadd.f32 %v1024_v20, %v1467_v54  ;;  %v1032_v22 = vpop.f32.mrb[32].mxu1  ;;  %v676_v23 = vpop.f32.mrb[33].mxu0 }
 0x138   :  { %v1484_v24 = vadd.f32 %v1032_v22, %v620_v48  ;;  %v677_v25 = vadd.f32 %v676_v23, %v1463_v40  ;;  %v708_v26 = vpop.f32.mrb[33].mxu1  ;;  %v1025_v27 = vpop.f32.mrb[34].mxu0 }
 0x139   :  { %741 = vst [vmem:[%s1561_s2 + $0x10] sm:$0xff] %v685_v21  ;;  %v709_v28 = vadd.f32 %v708_v26, %v612_v32  ;;  %v688_v29 = vadd.f32 %v1025_v27, %v1469_v55  ;;  %v1033_v30 = vpop.f32.mrb[34].mxu1  ;;  %v679_v31 = vpop.f32.mrb[35].mxu0  ;;  %v778_v36 = vmul.f32 %v685_v21, %v685_v21 }
 0x13a   :  { %749 = vst [vmem:[%s1561_s2 + $0x50] sm:$0xff] %v1484_v24  ;;  %739 = vst [vmem:[%s1561_s2] sm:$0xff] %v677_v25  ;;  %v1498_v40 = vadd.f32 %v1033_v30, %v623_v49  ;;  %v680_v54 = vadd.f32 %v679_v31, %v1465_v41  ;;  %v711_v34 = vpop.f32.mrb[35].mxu1  ;;  %v776_v32 = vmul.f32 %v677_v25, %v677_v25 }
 0x13b   :  { %747 = vst [vmem:[%s1561_s2 + $0x40] sm:$0xff] %v709_v28  ;;  %742 = vst [vmem:[%s1561_s2 + $0x18] sm:$0xff] %v688_v29  ;;  %v712_v55 = vadd.f32 %v711_v34, %v1479_v33  ;;  %v779_v39 = vmul.f32 %v688_v29, %v688_v29  ;;  %v784_v7 = vmul.f32 %v709_v28, %v709_v28 }
 0x13c   :  { %750 = vst [vmem:[%s1561_s2 + $0x58] sm:$0xff] %v1498_v40  ;;  %740 = vst [vmem:[%s1561_s2 + $0x8] sm:$0xff] %v680_v54  ;;  %v755_v41 = vadd.f32 %v680_v54, %v677_v25  ;;  %v777_v35 = vmul.f32 %v680_v54, %v680_v54  ;;  %v786_v13 = vmul.f32 %v1484_v24, %v1484_v24 }
 0x13d   :  { %748 = vst [vmem:[%s1561_s2 + $0x48] sm:$0xff] %v712_v55  ;;  %v785_v10 = vmul.f32 %v712_v55, %v712_v55 }
 0x13e   :  { %v756_v37 = vadd.f32 %v755_v41, %v685_v21  ;;  %v792_v38 = vadd.f32 %v777_v35, %v776_v32  ;;  %v1028_v33 = vpop.f32.mrb[36].mxu0 }
 0x13f   :  { %v701_v42 = vadd.f32 %v1028_v33, %v1475_v18  ;;  %v1036_v43 = vpop.f32.mrb[36].mxu1  ;;  %v692_v44 = vpop.f32.mrb[37].mxu0 }
 0x140   :  { %v793_v45 = vadd.f32 %v792_v38, %v778_v36  ;;  %v733_v46 = vadd.f32 %v1036_v43, %v636_v16  ;;  %v693_v47 = vadd.f32 %v692_v44, %v1471_v4  ;;  %v757_v48 = vadd.f32 %v756_v37, %v688_v29  ;;  %v724_v49 = vpop.f32.mrb[37].mxu1  ;;  %v1029_v50 = vpop.f32.mrb[38].mxu0 }
 0x141   :  { %745 = vst [vmem:[%s1561_s2 + $0x30] sm:$0xff] %v701_v42  ;;  %v725_v51 = vadd.f32 %v724_v49, %v628_v0  ;;  %v704_v52 = vadd.f32 %v1029_v50, %v1477_v19  ;;  %v1037_v53 = vpop.f32.mrb[38].mxu1  ;;  %v695_v56 = vpop.f32.mrb[39].mxu0  ;;  %v782_v0 = vmul.f32 %v701_v42, %v701_v42  ;;  %v787_v16 = vmul.f32 %v1498_v40, %v1498_v40 }
 0x142   :  { %753 = vst [vmem:[%s1561_s2 + $0x70] sm:$0xff] %v733_v46  ;;  %743 = vst [vmem:[%s1561_s2 + $0x20] sm:$0xff] %v693_v47  ;;  %v758_v4 = vadd.f32 %v757_v48, %v693_v47  ;;  %v780_v18 = vmul.f32 %v693_v47, %v693_v47  ;;  %v794_v57 = vadd.f32 %v793_v45, %v779_v39  ;;  %v727_v58 = vpop.f32.mrb[39].mxu1 }
 0x143   :  { %751 = vst [vmem:[%s1561_s2 + $0x60] sm:$0xff] %v725_v51  ;;  %746 = vst [vmem:[%s1561_s2 + $0x38] sm:$0xff] %v704_v52  ;;  %v736_v19 = vadd.f32 %v1037_v53, %v639_v17  ;;  %v696_v59 = vadd.f32 %v695_v56, %v1473_v5  ;;  %v728_v61 = vadd.f32 %v727_v58, %v1481_v1 }
 0x144   :  { %v795_v60 = vadd.f32 %v794_v57, %v780_v18  ;;  %v783_v3 = vmul.f32 %v704_v52, %v704_v52  ;;  %v788_v21 = vmul.f32 %v725_v51, %v725_v51 }
 0x145   :  { %754 = vst [vmem:[%s1561_s2 + $0x78] sm:$0xff] %v736_v19  ;;  %744 = vst [vmem:[%s1561_s2 + $0x28] sm:$0xff] %v696_v59  ;;  %v759_v62 = vadd.f32 %v758_v4, %v696_v59  ;;  %v781_v63 = vmul.f32 %v696_v59, %v696_v59  ;;  %v789_v26 = vmul.f32 %v728_v61, %v728_v61 }
 0x146   :  { %752 = vst [vmem:[%s1561_s2 + $0x68] sm:$0xff] %v728_v61  ;;  %v791_v31 = vmul.f32 %v736_v19, %v736_v19 }
 0x147   :  { %v760_v2 = vadd.f32 %v759_v62, %v701_v42  ;;  %v796_v5 = vadd.f32 %v795_v60, %v781_v63 }
 0x149   :  { %v761_v6 = vadd.f32 %v760_v2, %v704_v52  ;;  %v797_v1 = vadd.f32 %v796_v5, %v782_v0 }
 0x14b   :  { %v762_v8 = vadd.f32 %v761_v6, %v709_v28  ;;  %v798_v9 = vadd.f32 %v797_v1, %v783_v3  ;;  %v790_v28 = vmul.f32 %v733_v46, %v733_v46 }
 0x14d   :  { %v799_v11 = vadd.f32 %v798_v9, %v784_v7  ;;  %v763_v12 = vadd.f32 %v762_v8, %v712_v55 }
 0x14f   :  { %v764_v14 = vadd.f32 %v763_v12, %v1484_v24  ;;  %v800_v15 = vadd.f32 %v799_v11, %v785_v10 }
 0x151   :  { %v765_v17 = vadd.f32 %v764_v14, %v1498_v40  ;;  %v801_v20 = vadd.f32 %v800_v15, %v786_v13 }
 0x153   :  { %v766_v22 = vadd.f32 %v765_v17, %v725_v51  ;;  %v802_v23 = vadd.f32 %v801_v20, %v787_v16 }
 0x155   :  { %v767_v25 = vadd.f32 %v766_v22, %v728_v61  ;;  %v803_v27 = vadd.f32 %v802_v23, %v788_v21 }
 0x157   :  { %v768_v29 = vadd.f32 %v767_v25, %v733_v46  ;;  %v804_v30 = vadd.f32 %v803_v27, %v789_v26 }
 0x159   :  { %v769_v54 = vadd.f32 %v768_v29, %v736_v19  ;;  %v805_v34 = vadd.f32 %v804_v30, %v790_v28 }
 0x15b   :  { %v770_v24 = vrot.slane %v769_v54, 4  ;;  %v806_v55 = vadd.f32 %v805_v34, %v791_v31 }
 0x15d   :  { %v771_v32 = vadd.f32 %v770_v24, %v769_v54  ;;  %v807_v41 = vrot.slane %v806_v55, 4 }
 0x15f   :  { %v772_v35 = vrot.slane %v771_v32, 2  ;;  %v808_v36 = vadd.f32 %v807_v41, %v806_v55 }
 0x161   :  { %v773_v40 = vadd.f32 %v772_v35, %v771_v32  ;;  %v809_v37 = vrot.slane %v808_v36, 2 }
 0x163   :  { %v774_v38 = vrot.slane %v773_v40, 1  ;;  %v810_v33 = vadd.f32 %v809_v37, %v808_v36 }
 0x165   :  { %v775_v39 = vadd.f32 %v774_v38, %v773_v40  ;;  %v811_v42 = vrot.slane %v810_v33, 1 }
 0x167   :  { %v812_v43 = vadd.f32 %v811_v42, %v810_v33  ;;  %v814_v44 = vsel %vm813_vm1, %v775_v39, 0.0 }
 0x168   :  { %815 = vst [vmem:[%s1562_s3] sm:$0xff] %v814_v44 }
 0x169   :  { %v816_v45 = vsel %vm813_vm1, %v812_v43, 0.0 }
 0x16a   :  { %817 = vst [vmem:[%s1563_s4] sm:$0xff] %v816_v45 }

// kernel: _lambda_.13
= control target key start
LH: loop header
LB: loop body
LE: loop exit
PB: predicated region body
PF: predicated region fallthrough
CT: control target
= control target key end

     0   :  { %v62_v20 = vlaneseq  ;;  %s264_s1 = inlined_call_operand.vmem [shape: f32[8,128], index: 1, kind: input, shape index: {}]   ;;  %s265_s2 = inlined_call_operand.vmem [shape: f32[8,128], index: 2, kind: input, shape index: {}]   ;;  %s266_s3 = inlined_call_operand.vmem [shape: f32[1,128], index: 3, kind: input, shape index: {}]   ;;  %s267_s0 = inlined_call_operand.vmem [shape: f32[128,128], index: 0, kind: input, shape index: {}]   ;;  %s268_s4 = inlined_call_operand.vmem [shape: f32[1,128], index: 4, kind: input, shape index: {}]   ;;  %s269_s5 = inlined_call_operand.vmem [shape: f32[128,128], index: 5, kind: output, shape index: {}]  }
   0x1   :  { %v20_v0 = vld [vmem:[%s264_s1] sm:$0xff]  ;;  %v47_v28 = vld [vmem:[%s267_s0 + $0x8] sm:$0xff]  ;;  %v48_v29 = vld [vmem:[%s267_s0 + $0x10] sm:$0xff] }
   0x2   :  { %v27_v1 = vld [vmem:[%s265_s2] sm:$0xff]  ;;  %v21_v2 = vrot.slane %v20_v0, 4  ;;  %v63_v21 = vshrl.u32 %v62_v20, 7  ;;  %v49_v30 = vld [vmem:[%s267_s0 + $0x18] sm:$0xff]  ;;  %v51_v34 = vld [vmem:[%s267_s0 + $0x28] sm:$0xff] }
   0x3   :  { %v28_v3 = vrot.slane %v27_v1, 4  ;;  %v41_v22 = vld [vmem:[%s266_s3] sm:$0x1]  ;;  %v52_v35 = vld [vmem:[%s267_s0 + $0x30] sm:$0xff]  ;;  %v53_v36 = vld [vmem:[%s267_s0 + $0x38] sm:$0xff] }
   0x4   :  { %v22_v4 = vadd.f32 %v21_v2, %v20_v0  ;;  %v64_v23 = vsub.s32 0, %v63_v21  ;;  %v43_v26 = vld [vmem:[%s268_s4] sm:$0x1]  ;;  %v55_v38 = vld [vmem:[%s267_s0 + $0x48] sm:$0xff]  ;;  %v56_v39 = vld [vmem:[%s267_s0 + $0x50] sm:$0xff] }
   0x5   :  { %v29_v5 = vadd.f32 %v28_v3, %v27_v1  ;;  %v46_v27 = vld [vmem:[%s267_s0] sm:$0xff]  ;;  %v57_v44 = vld [vmem:[%s267_s0 + $0x58] sm:$0xff]  ;;  %v59_v46 = vld [vmem:[%s267_s0 + $0x68] sm:$0xff] }
   0x6   :  { %v23_v6 = vrot.slane %v22_v4, 2  ;;  %v50_v31 = vld [vmem:[%s267_s0 + $0x20] sm:$0xff]  ;;  %v60_v63 = vld [vmem:[%s267_s0 + $0x70] sm:$0xff]  ;;  %v61_v0 = vld [vmem:[%s267_s0 + $0x78] sm:$0xff] }
   0x7   :  { %v30_v7 = vrot.slane %v29_v5, 2  ;;  %v54_v37 = vld [vmem:[%s267_s0 + $0x40] sm:$0xff] }
   0x8   :  { %v24_v8 = vadd.f32 %v23_v6, %v22_v4  ;;  %v58_v45 = vld [vmem:[%s267_s0 + $0x60] sm:$0xff] }
   0x9   :  { %v31_v9 = vadd.f32 %v30_v7, %v29_v5 }
   0xa   :  { %v25_v10 = vrot.slane %v24_v8, 1 }
   0xb   :  { %v32_v11 = vrot.slane %v31_v9, 1 }
   0xc   :  { %v26_v12 = vadd.f32 %v25_v10, %v24_v8 }
   0xd   :  { %v33_v13 = vadd.f32 %v32_v11, %v31_v9 }
   0xe   :  { %v34_v14 = vmul.f32 0.0078125, %v26_v12 }
   0xf   :  { %v35_v15 = vmul.f32 0.0078125, %v33_v13 }
  0x10   :  { %v36_v16 = vmul.f32 %v34_v14, %v34_v14 }
  0x12   :  { %v37_v17 = vsub.f32 %v35_v15, %v36_v16 }
  0x14   :  { %v38_v18 = vmax.f32 %v37_v17, 0.0 }
  0x16   :  { %v39_v19 = vadd.f32 1e-05, %v38_v18 }
  0x18   :  { %124 = vrsqrt.f32 %v39_v19 }
  0x22   :  { %v125_v24 = vpop.eup %124 }
  0x23   :  { %v42_v25 = vmul.f32 %v125_v24, %v41_v22 }
  0x25   :  { %v44_v32 = vmul.f32 %v42_v25, %v34_v14  ;;  %v65_v33 = vrot.slane %v42_v25, %v64_v23 }
  0x27   :  { %v45_v40 = vsub.f32 %v43_v26, %v44_v32  ;;  %v66_v41 = vmul.f32 %v65_v33, %v46_v27  ;;  %v67_v42 = vmul.f32 %v65_v33, %v47_v28  ;;  %v68_v43 = vmul.f32 %v65_v33, %v48_v29 }
  0x28   :  { %v69_v47 = vmul.f32 %v65_v33, %v49_v30  ;;  %v70_v48 = vmul.f32 %v65_v33, %v50_v31  ;;  %v71_v49 = vmul.f32 %v65_v33, %v51_v34  ;;  %v72_v50 = vmul.f32 %v65_v33, %v52_v35 }
  0x29   :  { %v86_v51 = vrot.slane %v45_v40, %v64_v23  ;;  %v73_v52 = vmul.f32 %v65_v33, %v53_v36  ;;  %v74_v53 = vmul.f32 %v65_v33, %v54_v37  ;;  %v75_v54 = vmul.f32 %v65_v33, %v55_v38 }
  0x2a   :  { %v76_v55 = vmul.f32 %v65_v33, %v56_v39  ;;  %v77_v56 = vmul.f32 %v65_v33, %v57_v44  ;;  %v78_v57 = vmul.f32 %v65_v33, %v58_v45  ;;  %v79_v58 = vmul.f32 %v65_v33, %v59_v46 }
  0x2b   :  { %v88_v59 = vadd.f32 %v86_v51, %v66_v41  ;;  %v89_v60 = vadd.f32 %v86_v51, %v67_v42  ;;  %v90_v61 = vadd.f32 %v86_v51, %v68_v43  ;;  %v91_v62 = vadd.f32 %v86_v51, %v69_v47 }
  0x2c   :  { %v92_v1 = vadd.f32 %v86_v51, %v70_v48  ;;  %v93_v2 = vadd.f32 %v86_v51, %v71_v49  ;;  %v94_v3 = vadd.f32 %v86_v51, %v72_v50  ;;  %v95_v4 = vadd.f32 %v86_v51, %v73_v52 }
  0x2d   :  { %104 = vst [vmem:[%s269_s5] sm:$0xff] %v88_v59  ;;  %105 = vst [vmem:[%s269_s5 + $0x8] sm:$0xff] %v89_v60  ;;  %v96_v5 = vadd.f32 %v86_v51, %v74_v53  ;;  %v97_v6 = vadd.f32 %v86_v51, %v75_v54  ;;  %v98_v7 = vadd.f32 %v86_v51, %v76_v55 }
  0x2e   :  { %106 = vst [vmem:[%s269_s5 + $0x10] sm:$0xff] %v90_v61  ;;  %107 = vst [vmem:[%s269_s5 + $0x18] sm:$0xff] %v91_v62  ;;  %v99_v8 = vadd.f32 %v86_v51, %v77_v56  ;;  %v100_v9 = vadd.f32 %v86_v51, %v78_v57  ;;  %v101_v10 = vadd.f32 %v86_v51, %v79_v58 }
  0x2f   :  { %108 = vst [vmem:[%s269_s5 + $0x20] sm:$0xff] %v92_v1  ;;  %109 = vst [vmem:[%s269_s5 + $0x28] sm:$0xff] %v93_v2  ;;  %v80_v11 = vmul.f32 %v65_v33, %v60_v63  ;;  %v81_v12 = vmul.f32 %v65_v33, %v61_v0 }
  0x30   :  { %110 = vst [vmem:[%s269_s5 + $0x30] sm:$0xff] %v94_v3  ;;  %111 = vst [vmem:[%s269_s5 + $0x38] sm:$0xff] %v95_v4 }
  0x31   :  { %112 = vst [vmem:[%s269_s5 + $0x40] sm:$0xff] %v96_v5  ;;  %113 = vst [vmem:[%s269_s5 + $0x48] sm:$0xff] %v97_v6  ;;  %v102_v13 = vadd.f32 %v86_v51, %v80_v11  ;;  %v103_v14 = vadd.f32 %v86_v51, %v81_v12 }
  0x32   :  { %114 = vst [vmem:[%s269_s5 + $0x50] sm:$0xff] %v98_v7  ;;  %115 = vst [vmem:[%s269_s5 + $0x58] sm:$0xff] %v99_v8 }
  0x33   :  { %116 = vst [vmem:[%s269_s5 + $0x60] sm:$0xff] %v100_v9  ;;  %117 = vst [vmem:[%s269_s5 + $0x68] sm:$0xff] %v101_v10 }
  0x34   :  { %118 = vst [vmem:[%s269_s5 + $0x70] sm:$0xff] %v102_v13  ;;  %119 = vst [vmem:[%s269_s5 + $0x78] sm:$0xff] %v103_v14 }

// kernel: _lambda_.12
= control target key start
LH: loop header
LB: loop body
LE: loop exit
PB: predicated region body
PF: predicated region fallthrough
CT: control target
= control target key end

     0   :  { %vm71_vm0 = vcmask 523264   ;;  %vm267_vm1 = vcmask 1040384   ;;  %s491_s1 = inlined_call_operand.vmem [shape: bf16[64,128], index: 1, kind: input, shape index: {}]   ;;  %s492_s0 = inlined_call_operand.vmem [shape: f32[128,64], index: 0, kind: input, shape index: {}]   ;;  %s493_s2 = inlined_call_operand.vmem [shape: f32[128,128], index: 2, kind: output, shape index: {0}]   ;;  %s494_s3 = inlined_call_operand.vmem [shape: f32[8,128], index: 3, kind: output, shape index: {1}]   ;;  %s495_s4 = inlined_call_operand.vmem [shape: f32[8,128], index: 4, kind: output, shape index: {2}]  }
   0x1   :  { %v340_v0 = vld [vmem:[%s491_s1] sm:$0xff]   ;;  %v341_v1 = vld [vmem:[%s491_s1 + $0x8] sm:$0xff]   ;;  %v342_v2 = vld [vmem:[%s491_s1 + $0x10] sm:$0xff]  }
   0x2   :  { %308 = vmatprep.subr.bf16.mxu0 %v340_v0  ;;  %332 = vmatprep.subr.bf16.mxu1 %v340_v0  ;;  %v15_v3 = vld [vmem:[%s492_s0] sm:$0xff]  ;;  %v16_v4 = vld [vmem:[%s492_s0 + $0x8] sm:$0xff]  ;;  %v343_v8 = vld [vmem:[%s491_s1 + $0x18] sm:$0xff]  }
   0x3   :  { %309 = vmatpush3.bf16.msra.mxu0 %v340_v0  ;;  %336 = vmatpush3.bf16.msra.mxu1 %v340_v0  ;;  %v31_v5 = vpack.c.bf16 %v16_v4, %v15_v3  ;;  %v23_v6 = vld [vmem:[%s492_s0 + $0x40] sm:$0xff]  ;;  %v24_v7 = vld [vmem:[%s492_s0 + $0x48] sm:$0xff]  ;;  %v17_v10 = vld [vmem:[%s492_s0 + $0x10] sm:$0xff] }
   0x4   :  { %310 = vmatprep.subr.bf16.mxu0 %v341_v1  ;;  %333 = vmatprep.subr.bf16.mxu1 %v341_v1  ;;  %v35_v9 = vpack.c.bf16 %v24_v7, %v23_v6  ;;  %v18_v11 = vld [vmem:[%s492_s0 + $0x18] sm:$0xff]  ;;  %v19_v12 = vld [vmem:[%s492_s0 + $0x20] sm:$0xff]  ;;  %v20_v13 = vld [vmem:[%s492_s0 + $0x28] sm:$0xff] }
   0x5   :  { %316 = vmatprep.mubr.msk.bf16.mxu0 %vm71_vm0, %v31_v5  ;;  %v25_v14 = vld [vmem:[%s492_s0 + $0x50] sm:$0xff]  ;;  %v26_v15 = vld [vmem:[%s492_s0 + $0x58] sm:$0xff]  ;;  %v27_v16 = vld [vmem:[%s492_s0 + $0x60] sm:$0xff]  ;;  %v32_v18 = vpack.c.bf16 %v18_v11, %v17_v10  ;;  %v33_v19 = vpack.c.bf16 %v20_v13, %v19_v12 }
   0x6   :  { %324 = vmatprep.mubr.msk.bf16.mxu1 %vm71_vm0, %v35_v9  ;;  %v28_v17 = vld [vmem:[%s492_s0 + $0x68] sm:$0xff]  ;;  %v36_v20 = vpack.c.bf16 %v26_v15, %v25_v14  ;;  %v21_v22 = vld [vmem:[%s492_s0 + $0x30] sm:$0xff]  ;;  %v22_v23 = vld [vmem:[%s492_s0 + $0x38] sm:$0xff] }
   0x7   :  { %311 = vmatpush3.bf16.msra.mxu0 %v341_v1  ;;  %337 = vmatpush3.bf16.msra.mxu1 %v341_v1  ;;  %v37_v21 = vpack.c.bf16 %v28_v17, %v27_v16  ;;  %v29_v24 = vld [vmem:[%s492_s0 + $0x70] sm:$0xff]  ;;  %v30_v25 = vld [vmem:[%s492_s0 + $0x78] sm:$0xff]  ;;  %v34_v26 = vpack.c.bf16 %v22_v23, %v21_v22 }
   0x8   :  { %312 = vmatprep.subr.bf16.mxu0 %v342_v2  ;;  %334 = vmatprep.subr.bf16.mxu1 %v342_v2  ;;  %v38_v27 = vpack.c.bf16 %v30_v25, %v29_v24 }
   0xb   :  { %313 = vmatpush3.bf16.msra.mxu0 %v342_v2  ;;  %338 = vmatpush3.bf16.msra.mxu1 %v342_v2 }
   0xc   :  { %314 = vmatprep.subr.bf16.mxu0 %v343_v8  ;;  %335 = vmatprep.subr.bf16.mxu1 %v343_v8 }
   0xf   :  { %315 = vmatpush3.bf16.msra.mxu0 %v343_v8  ;;  %339 = vmatpush3.bf16.msra.mxu1 %v343_v8 }
  0x12   :  { %317 = vmatmul.mubr.msk.bf16.vlgmr.msra.gmra.mrb[0].mxu0 %vm71_vm0, %v32_v18  ;;  %325 = vmatmul.mubr.msk.bf16.vlgmr.msra.gmra.mrb[0].mxu1 %vm71_vm0, %v36_v20 }
  0x13   :  { %320 = vmatprep.mubr.msk.bf16.mxu0 %vm71_vm0, %v33_v19  ;;  %328 = vmatprep.mubr.msk.bf16.mxu1 %vm71_vm0, %v37_v21 }
  0x1a   :  { %321 = vmatmul.mubr.msk.bf16.gmra.mrb[4].mxu0 %vm71_vm0, %v34_v26  ;;  %329 = vmatmul.mubr.msk.bf16.gmra.mrb[4].mxu1 %vm71_vm0, %v38_v27 }
  0xe5   :  { %v318_v28 = vpop.f32.mrb[0].mxu0  ;;  %v326_v30 = vpop.f32.mrb[0].mxu1 }
  0xe6   :  { %195 = vst [vmem:[%s493_s2 + $0x10] sm:$0xff] %v318_v28  ;;  %v130_v29 = vpop.f32.mrb[1].mxu0  ;;  %203 = vst [vmem:[%s493_s2 + $0x50] sm:$0xff] %v326_v30  ;;  %v162_v32 = vpop.f32.mrb[1].mxu1  ;;  %v232_v39 = vmul.f32 %v318_v28, %v318_v28  ;;  %v240_v7 = vmul.f32 %v326_v30, %v326_v30 }
  0xe7   :  { %193 = vst [vmem:[%s493_s2] sm:$0xff] %v130_v29  ;;  %v319_v31 = vpop.f32.mrb[2].mxu0  ;;  %201 = vst [vmem:[%s493_s2 + $0x40] sm:$0xff] %v162_v32  ;;  %v327_v34 = vpop.f32.mrb[2].mxu1  ;;  %v230_v35 = vmul.f32 %v130_v29, %v130_v29  ;;  %v238_v1 = vmul.f32 %v162_v32, %v162_v32 }
  0xe8   :  { %196 = vst [vmem:[%s493_s2 + $0x18] sm:$0xff] %v319_v31  ;;  %v133_v33 = vpop.f32.mrb[3].mxu0  ;;  %204 = vst [vmem:[%s493_s2 + $0x58] sm:$0xff] %v327_v34  ;;  %v165_v38 = vpop.f32.mrb[3].mxu1  ;;  %v233_v42 = vmul.f32 %v319_v31, %v319_v31  ;;  %v241_v10 = vmul.f32 %v327_v34, %v327_v34 }
  0xe9   :  { %194 = vst [vmem:[%s493_s2 + $0x8] sm:$0xff] %v133_v33  ;;  %v209_v36 = vadd.f32 %v133_v33, %v130_v29  ;;  %v231_v37 = vmul.f32 %v133_v33, %v133_v33  ;;  %202 = vst [vmem:[%s493_s2 + $0x48] sm:$0xff] %v165_v38  ;;  %v239_v6 = vmul.f32 %v165_v38, %v165_v38 }
  0xeb   :  { %v210_v40 = vadd.f32 %v318_v28, %v209_v36  ;;  %v246_v41 = vadd.f32 %v231_v37, %v230_v35 }
  0xed   :  { %v247_v43 = vadd.f32 %v246_v41, %v232_v39  ;;  %v322_v44 = vpop.f32.mrb[4].mxu0  ;;  %v211_v45 = vadd.f32 %v319_v31, %v210_v40  ;;  %v330_v47 = vpop.f32.mrb[4].mxu1 }
  0xee   :  { %199 = vst [vmem:[%s493_s2 + $0x30] sm:$0xff] %v322_v44  ;;  %v146_v46 = vpop.f32.mrb[5].mxu0  ;;  %207 = vst [vmem:[%s493_s2 + $0x70] sm:$0xff] %v330_v47  ;;  %v178_v52 = vpop.f32.mrb[5].mxu1  ;;  %v236_v59 = vmul.f32 %v322_v44, %v322_v44  ;;  %v244_v19 = vmul.f32 %v330_v47, %v330_v47 }
  0xef   :  { %197 = vst [vmem:[%s493_s2 + $0x20] sm:$0xff] %v146_v46  ;;  %v212_v48 = vadd.f32 %v211_v45, %v146_v46  ;;  %v234_v49 = vmul.f32 %v146_v46, %v146_v46  ;;  %v248_v50 = vadd.f32 %v247_v43, %v233_v42  ;;  %v323_v51 = vpop.f32.mrb[6].mxu0  ;;  %205 = vst [vmem:[%s493_s2 + $0x60] sm:$0xff] %v178_v52  ;;  %v331_v54 = vpop.f32.mrb[6].mxu1 }
  0xf0   :  { %200 = vst [vmem:[%s493_s2 + $0x38] sm:$0xff] %v323_v51  ;;  %v149_v53 = vpop.f32.mrb[7].mxu0  ;;  %208 = vst [vmem:[%s493_s2 + $0x78] sm:$0xff] %v331_v54  ;;  %v181_v58 = vpop.f32.mrb[7].mxu1  ;;  %v237_v62 = vmul.f32 %v323_v51, %v323_v51  ;;  %v242_v13 = vmul.f32 %v178_v52, %v178_v52  ;;  %v245_v22 = vmul.f32 %v331_v54, %v331_v54 }
  0xf1   :  { %v249_v55 = vadd.f32 %v248_v50, %v234_v49  ;;  %198 = vst [vmem:[%s493_s2 + $0x28] sm:$0xff] %v149_v53  ;;  %v213_v56 = vadd.f32 %v212_v48, %v149_v53  ;;  %v235_v57 = vmul.f32 %v149_v53, %v149_v53  ;;  %206 = vst [vmem:[%s493_s2 + $0x68] sm:$0xff] %v181_v58 }
  0xf2   :  { %v243_v18 = vmul.f32 %v181_v58, %v181_v58 }
  0xf3   :  { %v214_v60 = vadd.f32 %v322_v44, %v213_v56  ;;  %v250_v61 = vadd.f32 %v249_v55, %v235_v57 }
  0xf5   :  { %v251_v63 = vadd.f32 %v250_v61, %v236_v59  ;;  %v215_v0 = vadd.f32 %v323_v51, %v214_v60 }
  0xf7   :  { %v216_v2 = vadd.f32 %v215_v0, %v162_v32  ;;  %v252_v3 = vadd.f32 %v251_v63, %v237_v62 }
  0xf9   :  { %v253_v4 = vadd.f32 %v252_v3, %v238_v1  ;;  %v217_v5 = vadd.f32 %v216_v2, %v165_v38 }
  0xfb   :  { %v218_v8 = vadd.f32 %v326_v30, %v217_v5  ;;  %v254_v9 = vadd.f32 %v253_v4, %v239_v6 }
  0xfd   :  { %v255_v11 = vadd.f32 %v254_v9, %v240_v7  ;;  %v219_v12 = vadd.f32 %v327_v34, %v218_v8 }
  0xff   :  { %v220_v14 = vadd.f32 %v219_v12, %v178_v52  ;;  %v256_v15 = vadd.f32 %v255_v11, %v241_v10 }
 0x101   :  { %v257_v16 = vadd.f32 %v256_v15, %v242_v13  ;;  %v221_v17 = vadd.f32 %v220_v14, %v181_v58 }
 0x103   :  { %v222_v20 = vadd.f32 %v330_v47, %v221_v17  ;;  %v258_v21 = vadd.f32 %v257_v16, %v243_v18 }
 0x105   :  { %v223_v23 = vadd.f32 %v331_v54, %v222_v20  ;;  %v259_v24 = vadd.f32 %v258_v21, %v244_v19 }
 0x107   :  { %v224_v25 = vrot.slane %v223_v23, 4  ;;  %v260_v26 = vadd.f32 %v259_v24, %v245_v22 }
 0x109   :  { %v225_v27 = vadd.f32 %v224_v25, %v223_v23  ;;  %v261_v28 = vrot.slane %v260_v26, 4 }
 0x10b   :  { %v226_v29 = vrot.slane %v225_v27, 2  ;;  %v262_v30 = vadd.f32 %v261_v28, %v260_v26 }
 0x10d   :  { %v227_v31 = vadd.f32 %v226_v29, %v225_v27  ;;  %v263_v32 = vrot.slane %v262_v30, 2 }
 0x10f   :  { %v228_v33 = vrot.slane %v227_v31, 1  ;;  %v264_v34 = vadd.f32 %v263_v32, %v262_v30 }
 0x111   :  { %v229_v35 = vadd.f32 %v228_v33, %v227_v31  ;;  %v265_v36 = vrot.slane %v264_v34, 1 }
 0x113   :  { %v266_v37 = vadd.f32 %v265_v36, %v264_v34  ;;  %v268_v38 = vsel %vm267_vm1, %v229_v35, 0.0 }
 0x114   :  { %269 = vst [vmem:[%s494_s3] sm:$0xff] %v268_v38 }
 0x115   :  { %v270_v39 = vsel %vm267_vm1, %v266_v37, 0.0 }
 0x116   :  { %271 = vst [vmem:[%s495_s4] sm:$0xff] %v270_v39 }

// kernel: _lambda_.19
= control target key start
LH: loop header
LB: loop body
LE: loop exit
PB: predicated region body
PF: predicated region fallthrough
CT: control target
= control target key end

     0   :  { %s411_s0 = inlined_call_operand.vmem [shape: f32[128,128], index: 0, kind: input, shape index: {}]   ;;  %s412_s1 = inlined_call_operand.vmem [shape: f32[8,128], index: 1, kind: input, shape index: {}]   ;;  %s413_s2 = inlined_call_operand.vmem [shape: f32[8,128], index: 2, kind: input, shape index: {}]   ;;  %s414_s3 = inlined_call_operand.vmem [shape: f32[1,128], index: 3, kind: input, shape index: {}]   ;;  %s415_s4 = inlined_call_operand.vmem [shape: f32[1,128], index: 4, kind: input, shape index: {}]   ;;  %s416_s5 = inlined_call_operand.vmem [shape: f32[128,128], index: 5, kind: input, shape index: {}]   ;;  %s417_s6 = inlined_call_operand.hbm [shape: f32[128,128], index: 6, kind: output, shape index: {}]  }
   0x1   :  { %v24_v0 = vld [vmem:[%s412_s1] sm:$0xff] }
   0x2   :  { %v31_v1 = vld [vmem:[%s413_s2] sm:$0xff]  ;;  %v25_v2 = vrot.slane %v24_v0, 4 }
   0x3   :  { %v32_v3 = vrot.slane %v31_v1, 4 }
   0x4   :  { %v26_v4 = vadd.f32 %v25_v2, %v24_v0 }
   0x5   :  { %v33_v5 = vadd.f32 %v32_v3, %v31_v1 }
   0x6   :  { %v27_v6 = vrot.slane %v26_v4, 2 }
   0x7   :  { %v34_v7 = vrot.slane %v33_v5, 2 }
   0x8   :  { %v28_v8 = vadd.f32 %v27_v6, %v26_v4 }
   0x9   :  { %v35_v9 = vadd.f32 %v34_v7, %v33_v5 }
   0xa   :  { %v29_v10 = vrot.slane %v28_v8, 1 }
   0xb   :  { %v36_v11 = vrot.slane %v35_v9, 1 }
   0xc   :  { %v30_v12 = vadd.f32 %v29_v10, %v28_v8 }
   0xd   :  { %v37_v13 = vadd.f32 %v36_v11, %v35_v9 }
   0xe   :  { %11 = vsyncpa [#allocation3], 0  ;;  %v38_v14 = vmul.f32 0.0078125, %v30_v12  ;;  %v66_v20 = vlaneseq  ;;  %v45_v22 = vld [vmem:[%s414_s3] sm:$0x1]  ;;  %v51_v28 = vld [vmem:[%s411_s0 + $0x8] sm:$0xff] }
   0xf   :  { %v39_v15 = vmul.f32 0.0078125, %v37_v13  ;;  %v47_v26 = vld [vmem:[%s415_s4] sm:$0x1]  ;;  %v52_v29 = vld [vmem:[%s411_s0 + $0x10] sm:$0xff]  ;;  %v53_v30 = vld [vmem:[%s411_s0 + $0x18] sm:$0xff]  ;;  %s217_s9 = smov [#allocation2]  }
  0x10   :  { %v40_v16 = vmul.f32 %v38_v14, %v38_v14  ;;  %v67_v21 = vshrl.u32 %v66_v20, 7  ;;  %v50_v27 = vld [vmem:[%s411_s0] sm:$0xff]  ;;  %v55_v34 = vld [vmem:[%s411_s0 + $0x28] sm:$0xff]  ;;  %v56_v35 = vld [vmem:[%s411_s0 + $0x30] sm:$0xff]  ;;  %s177_s10 = sshll.u32 %s217_s9, 4  ;;  %s178_s10 = int_to_ptr.vmem [resolvable:$true] %s177_s10 }
  0x11   :  { %v54_v31 = vld [vmem:[%s411_s0 + $0x20] sm:$0xff]  ;;  %v57_v36 = vld [vmem:[%s411_s0 + $0x38] sm:$0xff]  ;;  %v59_v38 = vld [vmem:[%s411_s0 + $0x48] sm:$0xff]  ;;  %p198_p1 = scmp.lt.s32.totalorder %s178_s10, %s178_s10 }
  0x12   :  { %v41_v17 = vsub.f32 %v39_v15, %v40_v16  ;;  %v68_v23 = vsub.s32 0, %v67_v21  ;;  %v58_v37 = vld [vmem:[%s411_s0 + $0x40] sm:$0xff]  ;;  %v60_v39 = vld [vmem:[%s411_s0 + $0x50] sm:$0xff]  ;;  %v61_v44 = vld [vmem:[%s411_s0 + $0x58] sm:$0xff] }
  0x13   :  { %v62_v45 = vld [vmem:[%s411_s0 + $0x60] sm:$0xff]  ;;  %v63_v46 = vld [vmem:[%s411_s0 + $0x68] sm:$0xff]  ;;  %v110_v57 = vld [vmem:[%s416_s5 + $0x10] sm:$0xff] }
  0x14   :  { %v42_v18 = vmax.f32 %v41_v17, 0.0  ;;  %v108_v52 = vld [vmem:[%s416_s5] sm:$0xff]  ;;  %v109_v53 = vld [vmem:[%s416_s5 + $0x8] sm:$0xff]  ;;  %v111_v58 = vld [vmem:[%s416_s5 + $0x18] sm:$0xff] }
  0x15   :  { %v112_v59 = vld [vmem:[%s416_s5 + $0x20] sm:$0xff]  ;;  %v113_v4 = vld [vmem:[%s416_s5 + $0x28] sm:$0xff]  ;;  %v114_v5 = vld [vmem:[%s416_s5 + $0x30] sm:$0xff] }
  0x16   :  { %v43_v19 = vadd.f32 1e-05, %v42_v18  ;;  %v115_v6 = vld [vmem:[%s416_s5 + $0x38] sm:$0xff]  ;;  %v117_v20 = vld [vmem:[%s416_s5 + $0x48] sm:$0xff] }
  0x18   :  { %191 = vrsqrt.f32 %v43_v19  ;;  %v116_v19 = vld [vmem:[%s416_s5 + $0x40] sm:$0xff] }
  0x22   :  { %v192_v24 = vpop.eup %191 }
  0x23   :  { %v46_v25 = vmul.f32 %v192_v24, %v45_v22 }
  0x25   :  { %v48_v32 = vmul.f32 %v46_v25, %v38_v14  ;;  %v282_v33 = vrot.slane %v46_v25, %v68_v23  ;;  %v64_v25 = vld [vmem:[%s411_s0 + $0x70] sm:$0xff] }
  0x27   :  { %v49_v40 = vsub.f32 %v47_v26, %v48_v32  ;;  %v70_v41 = vmul.f32 %v282_v33, %v50_v27  ;;  %v71_v42 = vmul.f32 %v282_v33, %v51_v28  ;;  %v72_v43 = vmul.f32 %v282_v33, %v52_v29  ;;  %v65_v26 = vld [vmem:[%s411_s0 + $0x78] sm:$0xff] }
  0x28   :  { %v73_v47 = vmul.f32 %v282_v33, %v53_v30  ;;  %v74_v48 = vmul.f32 %v282_v33, %v54_v31  ;;  %v75_v49 = vmul.f32 %v282_v33, %v55_v34  ;;  %v76_v50 = vmul.f32 %v282_v33, %v56_v35  ;;  %v118_v31 = vld [vmem:[%s416_s5 + $0x50] sm:$0xff]  ;;  %v119_v32 = vld [vmem:[%s416_s5 + $0x58] sm:$0xff] }
  0x29   :  { %v318_v51 = vrot.slane %v49_v40, %v68_v23  ;;  %v77_v54 = vmul.f32 %v282_v33, %v57_v36  ;;  %v78_v55 = vmul.f32 %v282_v33, %v58_v37  ;;  %v79_v56 = vmul.f32 %v282_v33, %v59_v38  ;;  %v120_v38 = vld [vmem:[%s416_s5 + $0x60] sm:$0xff] }
  0x2a   :  { %v80_v60 = vmul.f32 %v282_v33, %v60_v39  ;;  %v81_v61 = vmul.f32 %v282_v33, %v61_v44  ;;  %v82_v62 = vmul.f32 %v282_v33, %v62_v45  ;;  %v83_v63 = vmul.f32 %v282_v33, %v63_v46  ;;  %v121_v39 = vld [vmem:[%s416_s5 + $0x68] sm:$0xff] }
  0x2b   :  { %v92_v0 = vadd.f32 %v318_v51, %v70_v41  ;;  %v93_v1 = vadd.f32 %v318_v51, %v71_v42  ;;  %v94_v2 = vadd.f32 %v318_v51, %v72_v43  ;;  %v95_v3 = vadd.f32 %v318_v51, %v73_v47 }
  0x2c   :  { %v96_v7 = vadd.f32 %v318_v51, %v74_v48  ;;  %v97_v8 = vadd.f32 %v318_v51, %v75_v49  ;;  %v98_v9 = vadd.f32 %v318_v51, %v76_v50  ;;  %v99_v10 = vadd.f32 %v318_v51, %v77_v54  ;;  %v122_v48 = vld [vmem:[%s416_s5 + $0x70] sm:$0xff]  ;;  %v123_v49 = vld [vmem:[%s416_s5 + $0x78] sm:$0xff]  ;;  %s193_s5 = scalar_lea.vmem %s178_s10, 2048 }
  0x2d   :  { %v124_v11 = vadd.f32 %v108_v52, %v92_v0  ;;  %v125_v12 = vadd.f32 %v109_v53, %v93_v1  ;;  %v126_v13 = vadd.f32 %v110_v57, %v94_v2  ;;  %v127_v14 = vadd.f32 %v111_v58, %v95_v3  ;;  %p194_p0 = scmp.ne.s32.totalorder %s178_s10, %s193_s5  ;;  %p199_p2 = scmp.lt.s32.totalorder %s193_s5, %s193_s5 }
  0x2e   :  { %v128_v15 = vadd.f32 %v112_v59, %v96_v7  ;;  %v129_v16 = vadd.f32 %v113_v4, %v97_v8  ;;  %v130_v17 = vadd.f32 %v114_v5, %v98_v9  ;;  %v131_v18 = vadd.f32 %v115_v6, %v99_v10 }
  0x2f   :  { %v140_v21 = vmax.f32 %v124_v11, 0.0  ;;  %v141_v22 = vmax.f32 %v125_v12, 0.0  ;;  %v142_v23 = vmax.f32 %v126_v13, 0.0  ;;  %v143_v24 = vmax.f32 %v127_v14, 0.0  ;;  %p200_p3 = por %p199_p2, %p198_p1 }
  0x30   :  { %v144_v27 = vmax.f32 %v128_v15, 0.0  ;;  %v145_v28 = vmax.f32 %v129_v16, 0.0  ;;  %v146_v29 = vmax.f32 %v130_v17, 0.0  ;;  %v147_v30 = vmax.f32 %v131_v18, 0.0 }
  0x31   :  { %156 = vst [vmem:[#allocation2] sm:$0xff] %v140_v21  ;;  %157 = vst [vmem:[#allocation2 + $0x8] sm:$0xff] %v141_v22  ;;  %v100_v34 = vadd.f32 %v318_v51, %v78_v55  ;;  %v101_v35 = vadd.f32 %v318_v51, %v79_v56  ;;  %v102_v36 = vadd.f32 %v318_v51, %v80_v60  ;;  %p201_p4 = pnand %p200_p3, %p194_p0 }
  0x32   :  { %158 = vst [vmem:[#allocation2 + $0x10] sm:$0xff] %v142_v23  ;;  %159 = vst [vmem:[#allocation2 + $0x18] sm:$0xff] %v143_v24  ;;  %v103_v37 = vadd.f32 %v318_v51, %v81_v61  ;;  %v104_v40 = vadd.f32 %v318_v51, %v82_v62  ;;  %v105_v41 = vadd.f32 %v318_v51, %v83_v63 }
  0x33   :  { %160 = vst [vmem:[#allocation2 + $0x20] sm:$0xff] %v144_v27  ;;  %161 = vst [vmem:[#allocation2 + $0x28] sm:$0xff] %v145_v28  ;;  %v84_v42 = vmul.f32 %v282_v33, %v64_v25  ;;  %v85_v43 = vmul.f32 %v282_v33, %v65_v26  ;;  %v132_v44 = vadd.f32 %v116_v19, %v100_v34 }
  0x34   :  { %162 = vst [vmem:[#allocation2 + $0x30] sm:$0xff] %v146_v29  ;;  %163 = vst [vmem:[#allocation2 + $0x38] sm:$0xff] %v147_v30  ;;  %v133_v45 = vadd.f32 %v117_v20, %v101_v35  ;;  %v134_v46 = vadd.f32 %v118_v31, %v102_v36  ;;  %v135_v47 = vadd.f32 %v119_v32, %v103_v37 }
  0x35   :  { %v136_v50 = vadd.f32 %v120_v38, %v104_v40  ;;  %v137_v52 = vadd.f32 %v121_v39, %v105_v41  ;;  %v106_v53 = vadd.f32 %v318_v51, %v84_v42  ;;  %v107_v54 = vadd.f32 %v318_v51, %v85_v43 }
  0x36   :  { %v148_v55 = vmax.f32 %v132_v44, 0.0  ;;  %v149_v33 = vmax.f32 %v133_v45, 0.0  ;;  %v150_v56 = vmax.f32 %v134_v46, 0.0  ;;  %v151_v57 = vmax.f32 %v135_v47, 0.0 }
  0x37   :  { %v152_v58 = vmax.f32 %v136_v50, 0.0  ;;  %v153_v59 = vmax.f32 %v137_v52, 0.0  ;;  %v138_v60 = vadd.f32 %v122_v48, %v106_v53  ;;  %v139_v61 = vadd.f32 %v123_v49, %v107_v54 }
  0x38   :  { %164 = vst [vmem:[#allocation2 + $0x40] sm:$0xff] %v148_v55  ;;  %165 = vst [vmem:[#allocation2 + $0x48] sm:$0xff] %v149_v33 }
  0x39   :  { %166 = vst [vmem:[#allocation2 + $0x50] sm:$0xff] %v150_v56  ;;  %167 = vst [vmem:[#allocation2 + $0x58] sm:$0xff] %v151_v57  ;;  %v154_v62 = vmax.f32 %v138_v60, 0.0  ;;  %v155_v63 = vmax.f32 %v139_v61, 0.0 }
  0x3a   :  { %168 = vst [vmem:[#allocation2 + $0x60] sm:$0xff] %v152_v58  ;;  %169 = vst [vmem:[#allocation2 + $0x68] sm:$0xff] %v153_v59 }
  0x3b   :  { %170 = vst [vmem:[#allocation2 + $0x70] sm:$0xff] %v154_v62  ;;  %171 = vst [vmem:[#allocation2 + $0x78] sm:$0xff] %v155_v63 }
  0x3c   :  { %204 = shalt.err (!%p201_p4)
}
  0x3d   :  { %s205_s12 = scalar_lea.hbm %s417_s6, 2048 }
  0x3e   :  { %p206_p5 = scmp.ne.s32.totalorder %s417_s6, %s205_s12  ;;  %p209_p6 = scmp.lt.u32.totalorder %s205_s12, %s417_s6 }
  0x40   :  { %p211_p7 = pnand %p209_p6, %p206_p5 }
  0x42   :  { %214 = shalt.err (!%p211_p7)
}
  0x43   :  { %s218_s17 = smov 128   ;;  %s219_s18 = smov 8  }
  0x44   :  { %183 = dma.vmem_to_hbm [thread:$0]  %s178_s10, 2048, %s417_s6, [#allocation3], %s218_s17, %s218_s17, %s219_s18  }
  0x45   :  { %215 = dma.done.wait [#allocation3], 2048  }
  0x46   :  { %216 = vsyncadd [#allocation3], 4294965248 }
  0x47   :  { %187 = vsyncpa [#allocation3], 1 }

// kernel: _lambda_.15
= control target key start
LH: loop header
LB: loop body
LE: loop exit
PB: predicated region body
PF: predicated region fallthrough
CT: control target
= control target key end

     0   :  { %v65_v20 = vlaneseq  ;;  %s404_s1 = inlined_call_operand.vmem [shape: f32[8,128], index: 1, kind: input, shape index: {}]   ;;  %s405_s2 = inlined_call_operand.vmem [shape: f32[8,128], index: 2, kind: input, shape index: {}]   ;;  %s406_s3 = inlined_call_operand.vmem [shape: f32[1,128], index: 3, kind: input, shape index: {}]   ;;  %s407_s0 = inlined_call_operand.vmem [shape: f32[128,128], index: 0, kind: input, shape index: {}]   ;;  %s408_s4 = inlined_call_operand.vmem [shape: f32[1,128], index: 4, kind: input, shape index: {}]   ;;  %s409_s5 = inlined_call_operand.vmem [shape: f32[128,128], index: 5, kind: input, shape index: {}]   ;;  %s410_s6 = inlined_call_operand.vmem [shape: f32[128,128], index: 6, kind: output, shape index: {}]  }
   0x1   :  { %v23_v0 = vld [vmem:[%s404_s1] sm:$0xff]  ;;  %v50_v28 = vld [vmem:[%s407_s0 + $0x8] sm:$0xff]  ;;  %v51_v29 = vld [vmem:[%s407_s0 + $0x10] sm:$0xff] }
   0x2   :  { %v30_v1 = vld [vmem:[%s405_s2] sm:$0xff]  ;;  %v24_v2 = vrot.slane %v23_v0, 4  ;;  %v66_v21 = vshrl.u32 %v65_v20, 7  ;;  %v52_v30 = vld [vmem:[%s407_s0 + $0x18] sm:$0xff]  ;;  %v54_v34 = vld [vmem:[%s407_s0 + $0x28] sm:$0xff] }
   0x3   :  { %v31_v3 = vrot.slane %v30_v1, 4  ;;  %v44_v22 = vld [vmem:[%s406_s3] sm:$0x1]  ;;  %v55_v35 = vld [vmem:[%s407_s0 + $0x30] sm:$0xff]  ;;  %v56_v36 = vld [vmem:[%s407_s0 + $0x38] sm:$0xff] }
   0x4   :  { %v25_v4 = vadd.f32 %v24_v2, %v23_v0  ;;  %v67_v23 = vsub.s32 0, %v66_v21  ;;  %v46_v26 = vld [vmem:[%s408_s4] sm:$0x1]  ;;  %v58_v38 = vld [vmem:[%s407_s0 + $0x48] sm:$0xff]  ;;  %v59_v39 = vld [vmem:[%s407_s0 + $0x50] sm:$0xff] }
   0x5   :  { %v32_v5 = vadd.f32 %v31_v3, %v30_v1  ;;  %v49_v27 = vld [vmem:[%s407_s0] sm:$0xff]  ;;  %v60_v44 = vld [vmem:[%s407_s0 + $0x58] sm:$0xff]  ;;  %v62_v46 = vld [vmem:[%s407_s0 + $0x68] sm:$0xff] }
   0x6   :  { %v26_v6 = vrot.slane %v25_v4, 2  ;;  %v53_v31 = vld [vmem:[%s407_s0 + $0x20] sm:$0xff]  ;;  %v108_v53 = vld [vmem:[%s409_s5 + $0x8] sm:$0xff]  ;;  %v109_v57 = vld [vmem:[%s409_s5 + $0x10] sm:$0xff] }
   0x7   :  { %v33_v7 = vrot.slane %v32_v5, 2  ;;  %v57_v37 = vld [vmem:[%s407_s0 + $0x40] sm:$0xff]  ;;  %v110_v58 = vld [vmem:[%s409_s5 + $0x18] sm:$0xff]  ;;  %v116_v20 = vld [vmem:[%s409_s5 + $0x48] sm:$0xff] }
   0x8   :  { %v27_v8 = vadd.f32 %v26_v6, %v25_v4  ;;  %v61_v45 = vld [vmem:[%s407_s0 + $0x60] sm:$0xff]  ;;  %v112_v4 = vld [vmem:[%s409_s5 + $0x28] sm:$0xff]  ;;  %v114_v6 = vld [vmem:[%s409_s5 + $0x38] sm:$0xff] }
   0x9   :  { %v34_v9 = vadd.f32 %v33_v7, %v32_v5  ;;  %v107_v52 = vld [vmem:[%s409_s5] sm:$0xff]  ;;  %v113_v5 = vld [vmem:[%s409_s5 + $0x30] sm:$0xff] }
   0xa   :  { %v28_v10 = vrot.slane %v27_v8, 1  ;;  %v111_v59 = vld [vmem:[%s409_s5 + $0x20] sm:$0xff] }
   0xb   :  { %v35_v11 = vrot.slane %v34_v9, 1 }
   0xc   :  { %v29_v12 = vadd.f32 %v28_v10, %v27_v8 }
   0xd   :  { %v36_v13 = vadd.f32 %v35_v11, %v34_v9 }
   0xe   :  { %v37_v14 = vmul.f32 0.0078125, %v29_v12 }
   0xf   :  { %v38_v15 = vmul.f32 0.0078125, %v36_v13 }
  0x10   :  { %v39_v16 = vmul.f32 %v37_v14, %v37_v14 }
  0x12   :  { %v40_v17 = vsub.f32 %v38_v15, %v39_v16 }
  0x14   :  { %v41_v18 = vmax.f32 %v40_v17, 0.0 }
  0x16   :  { %v42_v19 = vadd.f32 1e-05, %v41_v18 }
  0x18   :  { %175 = vrsqrt.f32 %v42_v19  ;;  %v115_v19 = vld [vmem:[%s409_s5 + $0x40] sm:$0xff] }
  0x22   :  { %v176_v24 = vpop.eup %175 }
  0x23   :  { %v45_v25 = vmul.f32 %v176_v24, %v44_v22 }
  0x25   :  { %v47_v32 = vmul.f32 %v45_v25, %v37_v14  ;;  %v239_v33 = vrot.slane %v45_v25, %v67_v23  ;;  %v63_v25 = vld [vmem:[%s407_s0 + $0x70] sm:$0xff] }
  0x27   :  { %v48_v40 = vsub.f32 %v46_v26, %v47_v32  ;;  %v69_v41 = vmul.f32 %v239_v33, %v49_v27  ;;  %v70_v42 = vmul.f32 %v239_v33, %v50_v28  ;;  %v71_v43 = vmul.f32 %v239_v33, %v51_v29  ;;  %v64_v26 = vld [vmem:[%s407_s0 + $0x78] sm:$0xff] }
  0x28   :  { %v72_v47 = vmul.f32 %v239_v33, %v52_v30  ;;  %v73_v48 = vmul.f32 %v239_v33, %v53_v31  ;;  %v74_v49 = vmul.f32 %v239_v33, %v54_v34  ;;  %v75_v50 = vmul.f32 %v239_v33, %v55_v35  ;;  %v117_v31 = vld [vmem:[%s409_s5 + $0x50] sm:$0xff]  ;;  %v118_v32 = vld [vmem:[%s409_s5 + $0x58] sm:$0xff] }
  0x29   :  { %v275_v51 = vrot.slane %v48_v40, %v67_v23  ;;  %v76_v54 = vmul.f32 %v239_v33, %v56_v36  ;;  %v77_v55 = vmul.f32 %v239_v33, %v57_v37  ;;  %v78_v56 = vmul.f32 %v239_v33, %v58_v38  ;;  %v119_v38 = vld [vmem:[%s409_s5 + $0x60] sm:$0xff] }
  0x2a   :  { %v79_v60 = vmul.f32 %v239_v33, %v59_v39  ;;  %v80_v61 = vmul.f32 %v239_v33, %v60_v44  ;;  %v81_v62 = vmul.f32 %v239_v33, %v61_v45  ;;  %v82_v63 = vmul.f32 %v239_v33, %v62_v46  ;;  %v120_v39 = vld [vmem:[%s409_s5 + $0x68] sm:$0xff] }
  0x2b   :  { %v91_v0 = vadd.f32 %v275_v51, %v69_v41  ;;  %v92_v1 = vadd.f32 %v275_v51, %v70_v42  ;;  %v93_v2 = vadd.f32 %v275_v51, %v71_v43  ;;  %v94_v3 = vadd.f32 %v275_v51, %v72_v47 }
  0x2c   :  { %v95_v7 = vadd.f32 %v275_v51, %v73_v48  ;;  %v96_v8 = vadd.f32 %v275_v51, %v74_v49  ;;  %v97_v9 = vadd.f32 %v275_v51, %v75_v50  ;;  %v98_v10 = vadd.f32 %v275_v51, %v76_v54  ;;  %v121_v48 = vld [vmem:[%s409_s5 + $0x70] sm:$0xff]  ;;  %v122_v49 = vld [vmem:[%s409_s5 + $0x78] sm:$0xff] }
  0x2d   :  { %v123_v11 = vadd.f32 %v107_v52, %v91_v0  ;;  %v124_v12 = vadd.f32 %v108_v53, %v92_v1  ;;  %v125_v13 = vadd.f32 %v109_v57, %v93_v2  ;;  %v126_v14 = vadd.f32 %v110_v58, %v94_v3 }
  0x2e   :  { %v127_v15 = vadd.f32 %v111_v59, %v95_v7  ;;  %v128_v16 = vadd.f32 %v112_v4, %v96_v8  ;;  %v129_v17 = vadd.f32 %v113_v5, %v97_v9  ;;  %v130_v18 = vadd.f32 %v114_v6, %v98_v10 }
  0x2f   :  { %v139_v21 = vmax.f32 %v123_v11, 0.0  ;;  %v140_v22 = vmax.f32 %v124_v12, 0.0  ;;  %v141_v23 = vmax.f32 %v125_v13, 0.0  ;;  %v142_v24 = vmax.f32 %v126_v14, 0.0 }
  0x30   :  { %v143_v27 = vmax.f32 %v127_v15, 0.0  ;;  %v144_v28 = vmax.f32 %v128_v16, 0.0  ;;  %v145_v29 = vmax.f32 %v129_v17, 0.0  ;;  %v146_v30 = vmax.f32 %v130_v18, 0.0 }
  0x31   :  { %155 = vst [vmem:[%s410_s6] sm:$0xff] %v139_v21  ;;  %156 = vst [vmem:[%s410_s6 + $0x8] sm:$0xff] %v140_v22  ;;  %v99_v34 = vadd.f32 %v275_v51, %v77_v55  ;;  %v100_v35 = vadd.f32 %v275_v51, %v78_v56  ;;  %v101_v36 = vadd.f32 %v275_v51, %v79_v60 }
  0x32   :  { %157 = vst [vmem:[%s410_s6 + $0x10] sm:$0xff] %v141_v23  ;;  %158 = vst [vmem:[%s410_s6 + $0x18] sm:$0xff] %v142_v24  ;;  %v102_v37 = vadd.f32 %v275_v51, %v80_v61  ;;  %v103_v40 = vadd.f32 %v275_v51, %v81_v62  ;;  %v104_v41 = vadd.f32 %v275_v51, %v82_v63 }
  0x33   :  { %159 = vst [vmem:[%s410_s6 + $0x20] sm:$0xff] %v143_v27  ;;  %160 = vst [vmem:[%s410_s6 + $0x28] sm:$0xff] %v144_v28  ;;  %v83_v42 = vmul.f32 %v239_v33, %v63_v25  ;;  %v84_v43 = vmul.f32 %v239_v33, %v64_v26  ;;  %v131_v44 = vadd.f32 %v115_v19, %v99_v34 }
  0x34   :  { %161 = vst [vmem:[%s410_s6 + $0x30] sm:$0xff] %v145_v29  ;;  %162 = vst [vmem:[%s410_s6 + $0x38] sm:$0xff] %v146_v30  ;;  %v132_v45 = vadd.f32 %v116_v20, %v100_v35  ;;  %v133_v46 = vadd.f32 %v117_v31, %v101_v36  ;;  %v134_v47 = vadd.f32 %v118_v32, %v102_v37 }
  0x35   :  { %v135_v50 = vadd.f32 %v119_v38, %v103_v40  ;;  %v136_v52 = vadd.f32 %v120_v39, %v104_v41  ;;  %v105_v53 = vadd.f32 %v275_v51, %v83_v42  ;;  %v106_v54 = vadd.f32 %v275_v51, %v84_v43 }
  0x36   :  { %v147_v55 = vmax.f32 %v131_v44, 0.0  ;;  %v148_v33 = vmax.f32 %v132_v45, 0.0  ;;  %v149_v56 = vmax.f32 %v133_v46, 0.0  ;;  %v150_v57 = vmax.f32 %v134_v47, 0.0 }
  0x37   :  { %v151_v58 = vmax.f32 %v135_v50, 0.0  ;;  %v152_v59 = vmax.f32 %v136_v52, 0.0  ;;  %v137_v60 = vadd.f32 %v121_v48, %v105_v53  ;;  %v138_v61 = vadd.f32 %v122_v49, %v106_v54 }
  0x38   :  { %163 = vst [vmem:[%s410_s6 + $0x40] sm:$0xff] %v147_v55  ;;  %164 = vst [vmem:[%s410_s6 + $0x48] sm:$0xff] %v148_v33 }
  0x39   :  { %165 = vst [vmem:[%s410_s6 + $0x50] sm:$0xff] %v149_v56  ;;  %166 = vst [vmem:[%s410_s6 + $0x58] sm:$0xff] %v150_v57  ;;  %v153_v51 = vmax.f32 %v137_v60, 0.0  ;;  %v154_v62 = vmax.f32 %v138_v61, 0.0 }
  0x3a   :  { %167 = vst [vmem:[%s410_s6 + $0x60] sm:$0xff] %v151_v58  ;;  %168 = vst [vmem:[%s410_s6 + $0x68] sm:$0xff] %v152_v59 }
  0x3b   :  { %169 = vst [vmem:[%s410_s6 + $0x70] sm:$0xff] %v153_v51  ;;  %170 = vst [vmem:[%s410_s6 + $0x78] sm:$0xff] %v154_v62 }

// kernel: _lambda_.14
= control target key start
LH: loop header
LB: loop body
LE: loop exit
PB: predicated region body
PF: predicated region fallthrough
CT: control target
= control target key end

     0   :  { %vm1366_vm0 = vcmask 1040384   ;;  %s2664_s1 = inlined_call_operand.vmem [shape: bf16[1152,128], index: 1, kind: input, shape index: {}]   ;;  %s2665_s0 = inlined_call_operand.vmem [shape: f32[128,1152], index: 0, kind: input, shape index: {}]   ;;  %s2666_s2 = inlined_call_operand.vmem [shape: f32[128,128], index: 2, kind: output, shape index: {0}]   ;;  %s2667_s3 = inlined_call_operand.vmem [shape: f32[8,128], index: 3, kind: output, shape index: {1}]   ;;  %s2668_s4 = inlined_call_operand.vmem [shape: f32[8,128], index: 4, kind: output, shape index: {2}]  }
   0x1   :  { %v1775_v0 = vld [vmem:[%s2664_s1 + $0x40] sm:$0xff]   ;;  %v1779_v4 = vld [vmem:[%s2664_s1 + $0x48] sm:$0xff]   ;;  %v1783_v8 = vld [vmem:[%s2664_s1 + $0x50] sm:$0xff]  }
   0x2   :  { %v1776_v1 = vld [vmem:[%s2664_s1 + $0xc0] sm:$0xff]   ;;  %1455 = vmatprep.subr.bf16.mxu0 %v1775_v0  ;;  %v1780_v5 = vld [vmem:[%s2664_s1 + $0xc8] sm:$0xff]   ;;  %v1784_v9 = vld [vmem:[%s2664_s1 + $0xd0] sm:$0xff]  }
   0x3   :  { %v1777_v2 = vld [vmem:[%s2664_s1] sm:$0xff]   ;;  %1519 = vmatprep.subr.bf16.mxu1 %v1776_v1  ;;  %v1781_v6 = vld [vmem:[%s2664_s1 + $0x8] sm:$0xff]   ;;  %v1785_v10 = vld [vmem:[%s2664_s1 + $0x10] sm:$0xff]  }
   0x4   :  { %v1778_v3 = vld [vmem:[%s2664_s1 + $0x80] sm:$0xff]   ;;  %1456 = vmatpush3.bf16.msra.mxu0 %v1777_v2  ;;  %v1782_v7 = vld [vmem:[%s2664_s1 + $0x88] sm:$0xff]   ;;  %v1786_v11 = vld [vmem:[%s2664_s1 + $0x90] sm:$0xff]  }
   0x5   :  { %1520 = vmatpush3.bf16.msra.mxu1 %v1778_v3  ;;  %1457 = vmatprep.subr.bf16.mxu0 %v1779_v4  ;;  %v1787_v12 = vld [vmem:[%s2664_s1 + $0x58] sm:$0xff]   ;;  %v1791_v16 = vld [vmem:[%s2664_s1 + $0x60] sm:$0xff]   ;;  %v1795_v20 = vld [vmem:[%s2664_s1 + $0x68] sm:$0xff]  }
   0x6   :  { %1521 = vmatprep.subr.bf16.mxu1 %v1780_v5  ;;  %v1788_v13 = vld [vmem:[%s2664_s1 + $0xd8] sm:$0xff]   ;;  %v1792_v17 = vld [vmem:[%s2664_s1 + $0xe0] sm:$0xff]   ;;  %v1796_v21 = vld [vmem:[%s2664_s1 + $0xe8] sm:$0xff]  }
   0x7   :  { %v1789_v14 = vld [vmem:[%s2664_s1 + $0x18] sm:$0xff]   ;;  %v1793_v18 = vld [vmem:[%s2664_s1 + $0x20] sm:$0xff]   ;;  %v1797_v22 = vld [vmem:[%s2664_s1 + $0x28] sm:$0xff]  }
   0x8   :  { %1458 = vmatpush3.bf16.msra.mxu0 %v1781_v6  ;;  %v1790_v15 = vld [vmem:[%s2664_s1 + $0x98] sm:$0xff]   ;;  %v1794_v19 = vld [vmem:[%s2664_s1 + $0xa0] sm:$0xff]   ;;  %v1798_v23 = vld [vmem:[%s2664_s1 + $0xa8] sm:$0xff]  }
   0x9   :  { %1522 = vmatpush3.bf16.msra.mxu1 %v1782_v7  ;;  %1459 = vmatprep.subr.bf16.mxu0 %v1783_v8  ;;  %v1799_v24 = vld [vmem:[%s2664_s1 + $0x70] sm:$0xff]   ;;  %v1803_v28 = vld [vmem:[%s2664_s1 + $0x78] sm:$0xff]   ;;  %v16_v32 = vld [vmem:[%s2665_s0 + $0x8] sm:$0xff] }
   0xa   :  { %1523 = vmatprep.subr.bf16.mxu1 %v1784_v9  ;;  %v1800_v25 = vld [vmem:[%s2664_s1 + $0xf0] sm:$0xff]   ;;  %v1804_v29 = vld [vmem:[%s2664_s1 + $0xf8] sm:$0xff]   ;;  %v27_v36 = vld [vmem:[%s2665_s0 + $0x60] sm:$0xff] }
   0xb   :  { %v1801_v26 = vld [vmem:[%s2664_s1 + $0x30] sm:$0xff]   ;;  %v1805_v30 = vld [vmem:[%s2664_s1 + $0x38] sm:$0xff]   ;;  %v15_v37 = vld [vmem:[%s2665_s0] sm:$0xff] }
   0xc   :  { %1460 = vmatpush3.bf16.msra.mxu0 %v1785_v10  ;;  %v1802_v27 = vld [vmem:[%s2664_s1 + $0xb0] sm:$0xff]   ;;  %v1806_v31 = vld [vmem:[%s2664_s1 + $0xb8] sm:$0xff]   ;;  %v24_v38 = vld [vmem:[%s2665_s0 + $0x48] sm:$0xff] }
   0xd   :  { %1524 = vmatpush3.bf16.msra.mxu1 %v1786_v11  ;;  %1461 = vmatprep.subr.bf16.mxu0 %v1787_v12  ;;  %v25_v33 = vld [vmem:[%s2665_s0 + $0x50] sm:$0xff]  ;;  %v18_v34 = vld [vmem:[%s2665_s0 + $0x18] sm:$0xff]  ;;  %v159_v40 = vpack.c.bf16 %v24_v38, %v15_v37  ;;  %v1807_v44 = vld [vmem:[%s2664_s1 + $0x140] sm:$0xff]  }
   0xe   :  { %1525 = vmatprep.subr.bf16.mxu1 %v1788_v13  ;;  %v160_v35 = vpack.c.bf16 %v25_v33, %v16_v32  ;;  %v162_v39 = vpack.c.bf16 %v27_v36, %v18_v34  ;;  %v17_v41 = vld [vmem:[%s2665_s0 + $0x10] sm:$0xff]  ;;  %v26_v42 = vld [vmem:[%s2665_s0 + $0x58] sm:$0xff]  ;;  %v1808_v45 = vld [vmem:[%s2664_s1 + $0x100] sm:$0xff]  }
   0xf   :  { %v161_v43 = vpack.c.bf16 %v26_v42, %v17_v41  ;;  %v34_v46 = vld [vmem:[%s2665_s0 + $0x98] sm:$0xff]  ;;  %v43_v47 = vld [vmem:[%s2665_s0 + $0xe0] sm:$0xff]  ;;  %v36_v48 = vld [vmem:[%s2665_s0 + $0xa8] sm:$0xff] }
  0x10   :  { %1462 = vmatpush3.bf16.msra.mxu0 %v1789_v14  ;;  %839 = vmatprep.mubr.bf16.mxu0 %v160_v35  ;;  %v45_v49 = vld [vmem:[%s2665_s0 + $0xf0] sm:$0xff]  ;;  %v169_v50 = vpack.c.bf16 %v43_v47, %v34_v46  ;;  %v42_v53 = vld [vmem:[%s2665_s0 + $0xd8] sm:$0xff]  ;;  %v35_v54 = vld [vmem:[%s2665_s0 + $0xa0] sm:$0xff] }
  0x11   :  { %1526 = vmatpush3.bf16.msra.mxu1 %v1790_v15  ;;  %1463 = vmatprep.subr.bf16.mxu0 %v1791_v16  ;;  %v171_v51 = vpack.c.bf16 %v45_v49, %v36_v48  ;;  %v33_v52 = vld [vmem:[%s2665_s0 + $0x90] sm:$0xff]  ;;  %v44_v55 = vld [vmem:[%s2665_s0 + $0xe8] sm:$0xff]  ;;  %v54_v63 = vld [vmem:[%s2665_s0 + $0x138] sm:$0xff] }
  0x12   :  { %1527 = vmatprep.subr.bf16.mxu1 %v1792_v17  ;;  %936 = vmatprep.mubr.bf16.mxu1 %v162_v39  ;;  %v168_v56 = vpack.c.bf16 %v42_v53, %v33_v52  ;;  %v1809_v57 = vld [vmem:[%s2664_s1 + $0x148] sm:$0xff]   ;;  %v170_v58 = vpack.c.bf16 %v44_v55, %v35_v54  ;;  %v61_v61 = vld [vmem:[%s2665_s0 + $0x170] sm:$0xff]  ;;  %v63_v0 = vld [vmem:[%s2665_s0 + $0x180] sm:$0xff] }
  0x13   :  { %v1810_v59 = vld [vmem:[%s2664_s1 + $0x108] sm:$0xff]   ;;  %v180_v1 = vpack.c.bf16 %v63_v0, %v54_v63  ;;  %v51_v2 = vld [vmem:[%s2665_s0 + $0x120] sm:$0xff]  ;;  %v53_v4 = vld [vmem:[%s2665_s0 + $0x130] sm:$0xff] }
  0x14   :  { %1464 = vmatpush3.bf16.msra.mxu0 %v1793_v18  ;;  %v52_v60 = vld [vmem:[%s2665_s0 + $0x128] sm:$0xff]  ;;  %v62_v5 = vld [vmem:[%s2665_s0 + $0x178] sm:$0xff]  ;;  %v1811_v6 = vld [vmem:[%s2664_s1 + $0x150] sm:$0xff]  }
  0x15   :  { %1528 = vmatpush3.bf16.msra.mxu1 %v1794_v19  ;;  %1465 = vmatprep.subr.bf16.mxu0 %v1795_v20  ;;  %v178_v62 = vpack.c.bf16 %v61_v61, %v52_v60  ;;  %v60_v3 = vld [vmem:[%s2665_s0 + $0x168] sm:$0xff]  ;;  %v1812_v7 = vld [vmem:[%s2664_s1 + $0x1c0] sm:$0xff]   ;;  %v1813_v8 = vld [vmem:[%s2664_s1 + $0x110] sm:$0xff]   ;;  %v179_v14 = vpack.c.bf16 %v62_v5, %v53_v4 }
  0x16   :  { %1529 = vmatprep.subr.bf16.mxu1 %v1796_v21  ;;  %v1814_v9 = vld [vmem:[%s2664_s1 + $0x180] sm:$0xff]   ;;  %v177_v10 = vpack.c.bf16 %v60_v3, %v51_v2  ;;  %v70_v11 = vld [vmem:[%s2665_s0 + $0x1b8] sm:$0xff]  ;;  %v72_v13 = vld [vmem:[%s2665_s0 + $0x1c8] sm:$0xff] }
  0x17   :  { %v79_v12 = vld [vmem:[%s2665_s0 + $0x200] sm:$0xff]  ;;  %v81_v16 = vld [vmem:[%s2665_s0 + $0x210] sm:$0xff]  ;;  %v78_v19 = vld [vmem:[%s2665_s0 + $0x1f8] sm:$0xff] }
  0x18   :  { %1466 = vmatpush3.bf16.msra.mxu0 %v1797_v22  ;;  %v187_v15 = vpack.c.bf16 %v79_v12, %v70_v11  ;;  %v189_v17 = vpack.c.bf16 %v81_v16, %v72_v13  ;;  %v69_v18 = vld [vmem:[%s2665_s0 + $0x1b0] sm:$0xff]  ;;  %v1815_v20 = vld [vmem:[%s2664_s1 + $0x158] sm:$0xff]   ;;  %v71_v21 = vld [vmem:[%s2665_s0 + $0x1c0] sm:$0xff] }
  0x19   :  { %1530 = vmatpush3.bf16.msra.mxu1 %v1798_v23  ;;  %1467 = vmatprep.subr.bf16.mxu0 %v1799_v24  ;;  %v80_v22 = vld [vmem:[%s2665_s0 + $0x208] sm:$0xff]  ;;  %v1817_v24 = vld [vmem:[%s2664_s1 + $0x118] sm:$0xff]   ;;  %v1819_v34 = vld [vmem:[%s2664_s1 + $0x160] sm:$0xff]  }
  0x1a   :  { %1531 = vmatprep.subr.bf16.mxu1 %v1800_v25  ;;  %v1816_v23 = vld [vmem:[%s2664_s1 + $0x1c8] sm:$0xff]   ;;  %v87_v35 = vld [vmem:[%s2665_s0 + $0x240] sm:$0xff]  ;;  %v1820_v36 = vld [vmem:[%s2664_s1 + $0x1d0] sm:$0xff]  }
  0x1b   :  { %v1818_v25 = vld [vmem:[%s2664_s1 + $0x188] sm:$0xff]   ;;  %v1821_v37 = vld [vmem:[%s2664_s1 + $0x120] sm:$0xff]   ;;  %v89_v39 = vld [vmem:[%s2665_s0 + $0x250] sm:$0xff] }
  0x1c   :  { %1468 = vmatpush3.bf16.msra.mxu0 %v1801_v26  ;;  %v88_v26 = vld [vmem:[%s2665_s0 + $0x248] sm:$0xff]  ;;  %v98_v41 = vld [vmem:[%s2665_s0 + $0x298] sm:$0xff]  ;;  %v105_v54 = vld [vmem:[%s2665_s0 + $0x2d0] sm:$0xff] }
  0x1d   :  { %1532 = vmatpush3.bf16.msra.mxu1 %v1802_v27  ;;  %1469 = vmatprep.subr.bf16.mxu0 %v1803_v28  ;;  %v97_v27 = vld [vmem:[%s2665_s0 + $0x290] sm:$0xff]  ;;  %v90_v28 = vld [vmem:[%s2665_s0 + $0x258] sm:$0xff]  ;;  %v96_v38 = vld [vmem:[%s2665_s0 + $0x288] sm:$0xff]  ;;  %v197_v48 = vpack.c.bf16 %v98_v41, %v89_v39 }
  0x1e   :  { %1533 = vmatprep.subr.bf16.mxu1 %v1804_v29  ;;  %v99_v29 = vld [vmem:[%s2665_s0 + $0x2a0] sm:$0xff]  ;;  %v196_v32 = vpack.c.bf16 %v97_v27, %v88_v26  ;;  %v106_v42 = vld [vmem:[%s2665_s0 + $0x2d8] sm:$0xff]  ;;  %v195_v46 = vpack.c.bf16 %v96_v38, %v87_v35  ;;  %v1823_v47 = vld [vmem:[%s2664_s1 + $0x168] sm:$0xff]  }
  0x1f   :  { %v198_v33 = vpack.c.bf16 %v99_v29, %v90_v28  ;;  %v1825_v52 = vld [vmem:[%s2664_s1 + $0x128] sm:$0xff]   ;;  %v1826_v53 = vld [vmem:[%s2664_s1 + $0x198] sm:$0xff]   ;;  %v135_v61 = vld [vmem:[%s2665_s0 + $0x3c0] sm:$0xff] }
  0x20   :  { %1470 = vmatpush3.bf16.msra.mxu0 %v1805_v30  ;;  %v186_v30 = vpack.c.bf16 %v78_v19, %v69_v18  ;;  %v114_v55 = vld [vmem:[%s2665_s0 + $0x318] sm:$0xff]  ;;  %v1828_v0 = vld [vmem:[%s2664_s1 + $0x1e0] sm:$0xff]   ;;  %v1829_v3 = vld [vmem:[%s2664_s1 + $0x130] sm:$0xff]  }
  0x21   :  { %1534 = vmatpush3.bf16.msra.mxu1 %v1806_v31  ;;  %1583 = vmatprep.subr.bf16.mxu0 %v1807_v44  ;;  %v188_v31 = vpack.c.bf16 %v80_v22, %v71_v21  ;;  %v108_v44 = vld [vmem:[%s2665_s0 + $0x2e8] sm:$0xff]  ;;  %v126_v60 = vld [vmem:[%s2665_s0 + $0x378] sm:$0xff]  ;;  %v204_v63 = vpack.c.bf16 %v114_v55, %v105_v54  ;;  %v1830_v5 = vld [vmem:[%s2664_s1 + $0x1a0] sm:$0xff]  }
  0x22   :  { %1647 = vmatprep.subr.bf16.mxu1 %v1812_v7  ;;  %v216_v4 = vpack.c.bf16 %v135_v61, %v126_v60  ;;  %v123_v7 = vld [vmem:[%s2665_s0 + $0x360] sm:$0xff]  ;;  %v134_v11 = vld [vmem:[%s2665_s0 + $0x3b8] sm:$0xff]  ;;  %v152_v28 = vld [vmem:[%s2665_s0 + $0x448] sm:$0xff] }
  0x23   :  { %840 = vmatmul.mubr.bf16.vlgmr.msra.gmra.mrb[0].mxu0 %v159_v40  ;;  %v1822_v40 = vld [vmem:[%s2664_s1 + $0x190] sm:$0xff]   ;;  %v142_v12 = vld [vmem:[%s2665_s0 + $0x3f8] sm:$0xff]  ;;  %v151_v13 = vld [vmem:[%s2665_s0 + $0x440] sm:$0xff] }
  0x24   :  { %937 = vmatmul.mubr.bf16.vlgmr.msra.gmra.mrb[0].mxu1 %v161_v43  ;;  %1584 = vmatpush3.bf16.msra.mxu0 %v1808_v45  ;;  %v115_v43 = vld [vmem:[%s2665_s0 + $0x320] sm:$0xff]  ;;  %v117_v45 = vld [vmem:[%s2665_s0 + $0x330] sm:$0xff]  ;;  %v223_v19 = vpack.c.bf16 %v151_v13, %v142_v12  ;;  %v1835_v22 = vld [vmem:[%s2664_s1 + $0x138] sm:$0xff]  }
  0x25   :  { %847 = vmatprep.mubr.bf16.mxu0 %v169_v50  ;;  %944 = vmatprep.mubr.bf16.mxu1 %v171_v51  ;;  %v205_v49 = vpack.c.bf16 %v115_v43, %v106_v42  ;;  %v1824_v50 = vld [vmem:[%s2664_s1 + $0x1d8] sm:$0xff]   ;;  %v207_v51 = vpack.c.bf16 %v117_v45, %v108_v44  ;;  %v143_v27 = vld [vmem:[%s2665_s0 + $0x400] sm:$0xff]  ;;  %v20_v29 = vld [vmem:[%s2665_s0 + $0x28] sm:$0xff] }
  0x26   :  { %1585 = vmatprep.subr.bf16.mxu0 %v1809_v57  ;;  %1648 = vmatpush3.bf16.msra.mxu1 %v1814_v9  ;;  %v116_v57 = vld [vmem:[%s2665_s0 + $0x328] sm:$0xff]  ;;  %v150_v26 = vld [vmem:[%s2665_s0 + $0x438] sm:$0xff]  ;;  %v1839_v35 = vld [vmem:[%s2664_s1 + $0x200] sm:$0xff]  }
  0x27   :  { %1649 = vmatprep.subr.bf16.mxu1 %v1816_v23  ;;  %v132_v9 = vld [vmem:[%s2665_s0 + $0x3a8] sm:$0xff]  ;;  %v1836_v23 = vld [vmem:[%s2664_s1 + $0x1b0] sm:$0xff]   ;;  %v19_v39 = vld [vmem:[%s2665_s0 + $0x20] sm:$0xff] }
  0x28   :  { %1586 = vmatpush3.bf16.msra.mxu0 %v1810_v59  ;;  %v133_v59 = vld [vmem:[%s2665_s0 + $0x3b0] sm:$0xff]  ;;  %v213_v16 = vpack.c.bf16 %v132_v9, %v123_v7  ;;  %v30_v42 = vld [vmem:[%s2665_s0 + $0x78] sm:$0xff]  ;;  %v47_v44 = vld [vmem:[%s2665_s0 + $0x100] sm:$0xff] }
  0x29   :  { %1587 = vmatprep.subr.bf16.mxu0 %v1811_v6  ;;  %v1831_v6 = vld [vmem:[%s2664_s1 + $0x1e8] sm:$0xff]   ;;  %v21_v41 = vld [vmem:[%s2665_s0 + $0x30] sm:$0xff]  ;;  %v38_v43 = vld [vmem:[%s2665_s0 + $0xb8] sm:$0xff] }
  0x2a   :  { %1650 = vmatpush3.bf16.msra.mxu1 %v1818_v25  ;;  %v141_v25 = vld [vmem:[%s2665_s0 + $0x3f0] sm:$0xff]  ;;  %v40_v45 = vld [vmem:[%s2665_s0 + $0xc8] sm:$0xff]  ;;  %v39_v54 = vld [vmem:[%s2665_s0 + $0xc0] sm:$0xff] }
  0x2b   :  { %848 = vmatmul.mubr.bf16.gmra.mrb[4].mxu0 %v168_v56  ;;  %1651 = vmatprep.subr.bf16.mxu1 %v1820_v36  ;;  %v107_v56 = vld [vmem:[%s2665_s0 + $0x2e0] sm:$0xff]  ;;  %v224_v36 = vpack.c.bf16 %v152_v28, %v143_v27  ;;  %v48_v55 = vld [vmem:[%s2665_s0 + $0x108] sm:$0xff]  ;;  %v85_v9 = vld [vmem:[%s2665_s0 + $0x230] sm:$0xff] }
  0x2c   :  { %945 = vmatmul.mubr.bf16.gmra.mrb[4].mxu1 %v170_v58  ;;  %855 = vmatprep.mubr.bf16.mxu0 %v178_v62  ;;  %v124_v58 = vld [vmem:[%s2665_s0 + $0x368] sm:$0xff]  ;;  %v1827_v62 = vld [vmem:[%s2664_s1 + $0x170] sm:$0xff]   ;;  %v67_v60 = vld [vmem:[%s2665_s0 + $0x1a0] sm:$0xff] }
  0x2d   :  { %952 = vmatprep.mubr.bf16.mxu1 %v180_v1  ;;  %1588 = vmatpush3.bf16.msra.mxu0 %v1813_v8  ;;  %v206_v1 = vpack.c.bf16 %v116_v57, %v107_v56  ;;  %v214_v2 = vpack.c.bf16 %v133_v59, %v124_v58  ;;  %v1832_v8 = vld [vmem:[%s2664_s1 + $0x1a8] sm:$0xff]   ;;  %v65_v57 = vld [vmem:[%s2665_s0 + $0x190] sm:$0xff]  ;;  %v58_v59 = vld [vmem:[%s2665_s0 + $0x158] sm:$0xff] }
  0x2e   :  { %1589 = vmatprep.subr.bf16.mxu0 %v1815_v20  ;;  %1652 = vmatpush3.bf16.msra.mxu1 %v1822_v40  ;;  %v1834_v20 = vld [vmem:[%s2664_s1 + $0x1f0] sm:$0xff]   ;;  %v28_v40 = vld [vmem:[%s2665_s0 + $0x68] sm:$0xff]  ;;  %v83_v7 = vld [vmem:[%s2665_s0 + $0x220] sm:$0xff] }
  0x2f   :  { %1653 = vmatprep.subr.bf16.mxu1 %v1824_v50  ;;  %v56_v56 = vld [vmem:[%s2665_s0 + $0x148] sm:$0xff]  ;;  %v1841_v58 = vld [vmem:[%s2664_s1 + $0x210] sm:$0xff]  }
  0x31   :  { %1590 = vmatpush3.bf16.msra.mxu0 %v1817_v24  ;;  %v1837_v24 = vld [vmem:[%s2664_s1 + $0x1f8] sm:$0xff]  }
  0x32   :  { %1591 = vmatprep.subr.bf16.mxu0 %v1819_v34  ;;  %1654 = vmatpush3.bf16.msra.mxu1 %v1826_v53  ;;  %v222_v34 = vpack.c.bf16 %v150_v26, %v141_v25  ;;  %v46_v53 = vld [vmem:[%s2665_s0 + $0xf8] sm:$0xff] }
  0x33   :  { %856 = vmatmul.mubr.bf16.gmra.mrb[8].mxu0 %v177_v10  ;;  %1655 = vmatprep.subr.bf16.mxu1 %v1828_v0  ;;  %v125_v10 = vld [vmem:[%s2665_s0 + $0x370] sm:$0xff]  ;;  %v184_v0 = vpack.c.bf16 %v67_v60, %v58_v59  ;;  %v155_v59 = vld [vmem:[%s2665_s0 + $0x460] sm:$0xff]  ;;  %v148_v60 = vld [vmem:[%s2665_s0 + $0x428] sm:$0xff] }
  0x34   :  { %953 = vmatmul.mubr.bf16.gmra.mrb[8].mxu1 %v179_v14  ;;  %863 = vmatprep.mubr.bf16.mxu0 %v187_v15  ;;  %v144_v14 = vld [vmem:[%s2665_s0 + $0x408] sm:$0xff]  ;;  %v153_v15 = vld [vmem:[%s2665_s0 + $0x450] sm:$0xff]  ;;  %v215_v18 = vpack.c.bf16 %v134_v11, %v125_v10  ;;  %v1843_v10 = vld [vmem:[%s2664_s1 + $0x220] sm:$0xff]  }
  0x35   :  { %960 = vmatprep.mubr.bf16.mxu1 %v189_v17  ;;  %1592 = vmatpush3.bf16.msra.mxu0 %v1821_v37  ;;  %v1833_v17 = vld [vmem:[%s2664_s1 + $0x178] sm:$0xff]   ;;  %v225_v21 = vpack.c.bf16 %v153_v15, %v144_v14  ;;  %v1844_v15 = vld [vmem:[%s2664_s1 + $0x228] sm:$0xff]  }
  0x36   :  { %1593 = vmatprep.subr.bf16.mxu0 %v1823_v47  ;;  %1656 = vmatpush3.bf16.msra.mxu1 %v1830_v5  ;;  %v163_v47 = vpack.c.bf16 %v28_v40, %v19_v39  ;;  %v66_v5 = vld [vmem:[%s2665_s0 + $0x198] sm:$0xff] }
  0x37   :  { %1657 = vmatprep.subr.bf16.mxu1 %v1831_v6  ;;  %v74_v6 = vld [vmem:[%s2665_s0 + $0x1d8] sm:$0xff] }
  0x38   :  { %v191_v13 = vpack.c.bf16 %v83_v7, %v74_v6  ;;  %v23_v6 = vld [vmem:[%s2665_s0 + $0x40] sm:$0xff]  ;;  %v32_v7 = vld [vmem:[%s2665_s0 + $0x88] sm:$0xff] }
  0x39   :  { %1594 = vmatpush3.bf16.msra.mxu0 %v1825_v52  ;;  %v37_v52 = vld [vmem:[%s2665_s0 + $0xb0] sm:$0xff] }
  0x3a   :  { %1595 = vmatprep.subr.bf16.mxu0 %v1827_v62  ;;  %1658 = vmatpush3.bf16.msra.mxu1 %v1832_v8  ;;  %v172_v61 = vpack.c.bf16 %v46_v53, %v37_v52  ;;  %v174_v62 = vpack.c.bf16 %v48_v55, %v39_v54  ;;  %v76_v8 = vld [vmem:[%s2665_s0 + $0x1e8] sm:$0xff]  ;;  %v127_v54 = vld [vmem:[%s2665_s0 + $0x380] sm:$0xff] }
  0x3b   :  { %864 = vmatmul.mubr.bf16.gmra.mrb[12].mxu0 %v186_v30  ;;  %1659 = vmatprep.subr.bf16.mxu1 %v1834_v20  ;;  %v29_v30 = vld [vmem:[%s2665_s0 + $0x70] sm:$0xff]  ;;  %v193_v14 = vpack.c.bf16 %v85_v9, %v76_v8  ;;  %v92_v20 = vld [vmem:[%s2665_s0 + $0x268] sm:$0xff]  ;;  %v95_v8 = vld [vmem:[%s2665_s0 + $0x280] sm:$0xff] }
  0x3c   :  { %961 = vmatmul.mubr.bf16.gmra.mrb[12].mxu1 %v188_v31  ;;  %871 = vmatprep.mubr.bf16.mxu0 %v196_v32  ;;  %v1838_v31 = vld [vmem:[%s2664_s1 + $0x1b8] sm:$0xff]   ;;  %v164_v37 = vpack.c.bf16 %v29_v30, %v20_v29  ;;  %v91_v30 = vld [vmem:[%s2665_s0 + $0x260] sm:$0xff]  ;;  %v136_v55 = vld [vmem:[%s2665_s0 + $0x3c8] sm:$0xff] }
  0x3d   :  { %968 = vmatprep.mubr.bf16.mxu1 %v198_v33  ;;  %1596 = vmatpush3.bf16.msra.mxu0 %v1829_v3  ;;  %v22_v32 = vld [vmem:[%s2665_s0 + $0x38] sm:$0xff]  ;;  %v31_v33 = vld [vmem:[%s2665_s0 + $0x80] sm:$0xff]  ;;  %v64_v3 = vld [vmem:[%s2665_s0 + $0x188] sm:$0xff] }
  0x3e   :  { %1597 = vmatprep.subr.bf16.mxu0 %v1833_v17  ;;  %1660 = vmatpush3.bf16.msra.mxu1 %v1836_v23  ;;  %v166_v38 = vpack.c.bf16 %v31_v33, %v22_v32  ;;  %v82_v17 = vld [vmem:[%s2665_s0 + $0x218] sm:$0xff]  ;;  %v103_v23 = vld [vmem:[%s2665_s0 + $0x2c0] sm:$0xff]  ;;  %v93_v32 = vld [vmem:[%s2665_s0 + $0x270] sm:$0xff] }
  0x3f   :  { %1661 = vmatprep.subr.bf16.mxu1 %v1837_v24  ;;  %v1845_v24 = vld [vmem:[%s2664_s1 + $0x230] sm:$0xff]   ;;  %v1846_v29 = vld [vmem:[%s2664_s1 + $0x238] sm:$0xff]   ;;  %v104_v9 = vld [vmem:[%s2665_s0 + $0x2c8] sm:$0xff] }
  0x40   :  { %v102_v33 = vld [vmem:[%s2665_s0 + $0x2b8] sm:$0xff] }
  0x41   :  { %1598 = vmatpush3.bf16.msra.mxu0 %v1835_v22  ;;  %v94_v22 = vld [vmem:[%s2665_s0 + $0x278] sm:$0xff]  ;;  %v201_v39 = vpack.c.bf16 %v102_v33, %v93_v32 }
  0x42   :  { %1727 = vmatprep.subr.bf16.mxu0 %v1839_v35  ;;  %1662 = vmatpush3.bf16.msra.mxu1 %v1838_v31  ;;  %v202_v28 = vpack.c.bf16 %v103_v23, %v94_v22  ;;  %v100_v31 = vld [vmem:[%s2665_s0 + $0x2a8] sm:$0xff] }
  0x43   :  { %872 = vmatmul.mubr.bf16.gmra.mrb[16].mxu0 %v195_v46  ;;  %1759 = vmatprep.subr.bf16.mxu1 %v1839_v35  ;;  %v49_v46 = vld [vmem:[%s2665_s0 + $0x110] sm:$0xff] }
  0x44   :  { %969 = vmatmul.mubr.bf16.gmra.mrb[16].mxu1 %v197_v48  ;;  %879 = vmatprep.mubr.bf16.mxu0 %v205_v49  ;;  %v165_v48 = vpack.c.bf16 %v30_v42, %v21_v41  ;;  %v173_v49 = vpack.c.bf16 %v47_v44, %v38_v43  ;;  %v175_v50 = vpack.c.bf16 %v49_v46, %v40_v45  ;;  %v109_v42 = vld [vmem:[%s2665_s0 + $0x2f0] sm:$0xff]  ;;  %v118_v43 = vld [vmem:[%s2665_s0 + $0x338] sm:$0xff]  ;;  %v111_v44 = vld [vmem:[%s2665_s0 + $0x300] sm:$0xff] }
  0x45   :  { %976 = vmatprep.mubr.bf16.mxu1 %v207_v51  ;;  %v1840_v51 = vld [vmem:[%s2664_s1 + $0x208] sm:$0xff]  }
  0x46   :  { %v120_v45 = vld [vmem:[%s2665_s0 + $0x348] sm:$0xff] }
  0x47   :  { %v128_v46 = vld [vmem:[%s2665_s0 + $0x388] sm:$0xff] }
  0x4b   :  { %880 = vmatmul.mubr.bf16.gmra.mrb[20].mxu0 %v204_v63  ;;  %v182_v63 = vpack.c.bf16 %v65_v57, %v56_v56  ;;  %v129_v56 = vld [vmem:[%s2665_s0 + $0x390] sm:$0xff]  ;;  %v138_v57 = vld [vmem:[%s2665_s0 + $0x3d8] sm:$0xff] }
  0x4c   :  { %977 = vmatmul.mubr.bf16.gmra.mrb[20].mxu1 %v206_v1  ;;  %887 = vmatprep.mubr.bf16.mxu0 %v214_v2  ;;  %v1842_v1 = vld [vmem:[%s2664_s1 + $0x218] sm:$0xff]   ;;  %v55_v2 = vld [vmem:[%s2665_s0 + $0x140] sm:$0xff] }
  0x4d   :  { %984 = vmatprep.mubr.bf16.mxu1 %v216_v4  ;;  %v57_v4 = vld [vmem:[%s2665_s0 + $0x150] sm:$0xff]  ;;  %v181_v11 = vpack.c.bf16 %v64_v3, %v55_v2  ;;  %v154_v3 = vld [vmem:[%s2665_s0 + $0x458] sm:$0xff] }
  0x4e   :  { %v183_v12 = vpack.c.bf16 %v66_v5, %v57_v4  ;;  %v145_v2 = vld [vmem:[%s2665_s0 + $0x410] sm:$0xff]  ;;  %v147_v4 = vld [vmem:[%s2665_s0 + $0x420] sm:$0xff]  ;;  %v156_v5 = vld [vmem:[%s2665_s0 + $0x468] sm:$0xff] }
  0x53   :  { %888 = vmatmul.mubr.bf16.gmra.mrb[24].mxu0 %v213_v16  ;;  %v73_v16 = vld [vmem:[%s2665_s0 + $0x1d0] sm:$0xff] }
  0x54   :  { %985 = vmatmul.mubr.bf16.gmra.mrb[24].mxu1 %v215_v18  ;;  %895 = vmatprep.mubr.bf16.mxu0 %v223_v19  ;;  %v75_v18 = vld [vmem:[%s2665_s0 + $0x1e0] sm:$0xff]  ;;  %v84_v19 = vld [vmem:[%s2665_s0 + $0x228] sm:$0xff]  ;;  %v190_v25 = vpack.c.bf16 %v82_v17, %v73_v16  ;;  %v113_v16 = vld [vmem:[%s2665_s0 + $0x310] sm:$0xff] }
  0x55   :  { %992 = vmatprep.mubr.bf16.mxu1 %v225_v21  ;;  %v101_v21 = vld [vmem:[%s2665_s0 + $0x2b0] sm:$0xff]  ;;  %v192_v26 = vpack.c.bf16 %v84_v19, %v75_v18  ;;  %v122_v17 = vld [vmem:[%s2665_s0 + $0x358] sm:$0xff]  ;;  %v59_v18 = vld [vmem:[%s2665_s0 + $0x160] sm:$0xff] }
  0x56   :  { %v200_v27 = vpack.c.bf16 %v101_v21, %v92_v20  ;;  %v68_v19 = vld [vmem:[%s2665_s0 + $0x1a8] sm:$0xff]  ;;  %v131_v20 = vld [vmem:[%s2665_s0 + $0x3a0] sm:$0xff]  ;;  %v212_v23 = vpack.c.bf16 %v122_v17, %v113_v16 }
  0x57   :  { %v140_v21 = vld [vmem:[%s2665_s0 + $0x3e8] sm:$0xff] }
  0x5b   :  { %896 = vmatmul.mubr.bf16.gmra.mrb[28].mxu0 %v222_v34  ;;  %v110_v34 = vld [vmem:[%s2665_s0 + $0x2f8] sm:$0xff] }
  0x5c   :  { %993 = vmatmul.mubr.bf16.gmra.mrb[28].mxu1 %v224_v36  ;;  %1033 = vmatprep.mubr.bf16.mxu0 %v164_v37  ;;  %v112_v36 = vld [vmem:[%s2665_s0 + $0x308] sm:$0xff]  ;;  %v121_v37 = vld [vmem:[%s2665_s0 + $0x350] sm:$0xff] }
  0x5d   :  { %1130 = vmatprep.mubr.bf16.mxu1 %v166_v38  ;;  %v199_v38 = vpack.c.bf16 %v100_v31, %v91_v30  ;;  %v211_v41 = vpack.c.bf16 %v121_v37, %v112_v36 }
  0x63   :  { %1034 = vmatmul.mubr.bf16.vlgmr.msra.gmra.mrb[32].mxu0 %v163_v47  ;;  %v137_v47 = vld [vmem:[%s2665_s0 + $0x3d0] sm:$0xff] }
  0x64   :  { %1131 = vmatmul.mubr.bf16.vlgmr.msra.gmra.mrb[32].mxu1 %v165_v48  ;;  %1728 = vmatpush3.bf16.msra.mxu0 %v1839_v35  ;;  %v130_v48 = vld [vmem:[%s2665_s0 + $0x398] sm:$0xff]  ;;  %v218_v52 = vpack.c.bf16 %v137_v47, %v128_v46 }
  0x65   :  { %1041 = vmatprep.mubr.bf16.mxu0 %v173_v49  ;;  %1138 = vmatprep.mubr.bf16.mxu1 %v175_v50  ;;  %v139_v49 = vld [vmem:[%s2665_s0 + $0x3e0] sm:$0xff]  ;;  %v208_v50 = vpack.c.bf16 %v118_v43, %v109_v42 }
  0x66   :  { %1729 = vmatprep.subr.bf16.mxu0 %v1840_v51  ;;  %1767 = vmatpush3.bf16.msra.mxu1 %v1839_v35  ;;  %v119_v35 = vld [vmem:[%s2665_s0 + $0x340] sm:$0xff]  ;;  %v220_v53 = vpack.c.bf16 %v139_v49, %v130_v48 }
  0x67   :  { %1760 = vmatprep.subr.bf16.mxu1 %v1840_v51  ;;  %v209_v40 = vpack.c.bf16 %v119_v35, %v110_v34 }
  0x68   :  { %1730 = vmatpush3.bf16.msra.mxu0 %v1840_v51 }
  0x69   :  { %1731 = vmatprep.subr.bf16.mxu0 %v1841_v58 }
  0x6a   :  { %1768 = vmatpush3.bf16.msra.mxu1 %v1840_v51  ;;  %v210_v51 = vpack.c.bf16 %v120_v45, %v111_v44 }
  0x6b   :  { %1042 = vmatmul.mubr.bf16.gmra.mrb[36].mxu0 %v172_v61  ;;  %1761 = vmatprep.subr.bf16.mxu1 %v1841_v58  ;;  %v157_v61 = vld [vmem:[%s2665_s0 + $0x470] sm:$0xff] }
  0x6c   :  { %1139 = vmatmul.mubr.bf16.gmra.mrb[36].mxu1 %v174_v62  ;;  %1049 = vmatprep.mubr.bf16.mxu0 %v182_v63  ;;  %v217_v62 = vpack.c.bf16 %v136_v55, %v127_v54  ;;  %v219_v63 = vpack.c.bf16 %v138_v57, %v129_v56 }
  0x6d   :  { %1146 = vmatprep.mubr.bf16.mxu1 %v184_v0  ;;  %1732 = vmatpush3.bf16.msra.mxu0 %v1841_v58 }
  0x6e   :  { %1733 = vmatprep.subr.bf16.mxu0 %v1842_v1  ;;  %1769 = vmatpush3.bf16.msra.mxu1 %v1841_v58  ;;  %v146_v58 = vld [vmem:[%s2665_s0 + $0x418] sm:$0xff] }
  0x6f   :  { %1762 = vmatprep.subr.bf16.mxu1 %v1842_v1  ;;  %v227_v0 = vpack.c.bf16 %v155_v59, %v146_v58 }
  0x71   :  { %1734 = vmatpush3.bf16.msra.mxu0 %v1842_v1 }
  0x72   :  { %1735 = vmatprep.subr.bf16.mxu0 %v1843_v10  ;;  %1770 = vmatpush3.bf16.msra.mxu1 %v1842_v1  ;;  %v229_v1 = vpack.c.bf16 %v157_v61, %v148_v60 }
  0x73   :  { %1050 = vmatmul.mubr.bf16.gmra.mrb[40].mxu0 %v181_v11  ;;  %1763 = vmatprep.subr.bf16.mxu1 %v1843_v10  ;;  %v228_v11 = vpack.c.bf16 %v156_v5, %v147_v4 }
  0x74   :  { %1147 = vmatmul.mubr.bf16.gmra.mrb[40].mxu1 %v183_v12  ;;  %1057 = vmatprep.mubr.bf16.mxu0 %v191_v13  ;;  %v167_v12 = vpack.c.bf16 %v32_v7, %v23_v6  ;;  %v203_v13 = vpack.c.bf16 %v104_v9, %v95_v8 }
  0x75   :  { %1154 = vmatprep.mubr.bf16.mxu1 %v193_v14  ;;  %1736 = vmatpush3.bf16.msra.mxu0 %v1843_v10  ;;  %v41_v14 = vld [vmem:[%s2665_s0 + $0xd0] sm:$0xff] }
  0x76   :  { %1737 = vmatprep.subr.bf16.mxu0 %v1844_v15  ;;  %1771 = vmatpush3.bf16.msra.mxu1 %v1843_v10  ;;  %v226_v10 = vpack.c.bf16 %v154_v3, %v145_v2 }
  0x77   :  { %1764 = vmatprep.subr.bf16.mxu1 %v1844_v15 }
  0x79   :  { %1738 = vmatpush3.bf16.msra.mxu0 %v1844_v15 }
  0x7a   :  { %1739 = vmatprep.subr.bf16.mxu0 %v1845_v24  ;;  %1772 = vmatpush3.bf16.msra.mxu1 %v1844_v15  ;;  %v50_v15 = vld [vmem:[%s2665_s0 + $0x118] sm:$0xff] }
  0x7b   :  { %1058 = vmatmul.mubr.bf16.gmra.mrb[44].mxu0 %v190_v25  ;;  %1765 = vmatprep.subr.bf16.mxu1 %v1845_v24  ;;  %v176_v22 = vpack.c.bf16 %v50_v15, %v41_v14  ;;  %v221_v25 = vpack.c.bf16 %v140_v21, %v131_v20 }
  0x7c   :  { %1155 = vmatmul.mubr.bf16.gmra.mrb[44].mxu1 %v192_v26  ;;  %1065 = vmatprep.mubr.bf16.mxu0 %v200_v27  ;;  %v77_v26 = vld [vmem:[%s2665_s0 + $0x1f0] sm:$0xff]  ;;  %v86_v27 = vld [vmem:[%s2665_s0 + $0x238] sm:$0xff] }
  0x7d   :  { %1162 = vmatprep.mubr.bf16.mxu1 %v202_v28  ;;  %1740 = vmatpush3.bf16.msra.mxu0 %v1845_v24  ;;  %v149_v28 = vld [vmem:[%s2665_s0 + $0x430] sm:$0xff]  ;;  %v194_v30 = vpack.c.bf16 %v86_v27, %v77_v26 }
  0x7e   :  { %1741 = vmatprep.subr.bf16.mxu0 %v1846_v29  ;;  %1773 = vmatpush3.bf16.msra.mxu1 %v1845_v24  ;;  %v185_v24 = vpack.c.bf16 %v68_v19, %v59_v18 }
  0x7f   :  { %1766 = vmatprep.subr.bf16.mxu1 %v1846_v29 }
  0x81   :  { %1742 = vmatpush3.bf16.msra.mxu0 %v1846_v29 }
  0x82   :  { %1774 = vmatpush3.bf16.msra.mxu1 %v1846_v29  ;;  %v158_v29 = vld [vmem:[%s2665_s0 + $0x478] sm:$0xff] }
  0x83   :  { %1066 = vmatmul.mubr.bf16.gmra.mrb[48].mxu0 %v199_v38  ;;  %v230_v31 = vpack.c.bf16 %v158_v29, %v149_v28 }
  0x84   :  { %1163 = vmatmul.mubr.bf16.gmra.mrb[48].mxu1 %v201_v39  ;;  %1073 = vmatprep.mubr.bf16.mxu0 %v209_v40 }
  0x85   :  { %1170 = vmatprep.mubr.bf16.mxu1 %v211_v41 }
  0x8b   :  { %1074 = vmatmul.mubr.bf16.gmra.mrb[52].mxu0 %v208_v50 }
  0x8c   :  { %1171 = vmatmul.mubr.bf16.gmra.mrb[52].mxu1 %v210_v51  ;;  %1081 = vmatprep.mubr.bf16.mxu0 %v218_v52 }
  0x8d   :  { %1178 = vmatprep.mubr.bf16.mxu1 %v220_v53 }
  0x93   :  { %1082 = vmatmul.mubr.bf16.gmra.mrb[56].mxu0 %v217_v62 }
  0x94   :  { %1179 = vmatmul.mubr.bf16.gmra.mrb[56].mxu1 %v219_v63  ;;  %1089 = vmatprep.mubr.bf16.mxu0 %v227_v0 }
  0x95   :  { %1186 = vmatprep.mubr.bf16.mxu1 %v229_v1 }
  0x9b   :  { %1090 = vmatmul.mubr.bf16.gmra.mrb[60].mxu0 %v226_v10 }
  0x9c   :  { %1187 = vmatmul.mubr.bf16.gmra.mrb[60].mxu1 %v228_v11  ;;  %1743 = vmatprep.mubr.bf16.mxu0 %v167_v12 }
  0x9d   :  { %1751 = vmatprep.mubr.bf16.mxu1 %v203_v13 }
  0xa3   :  { %1744 = vmatmul.mubr.bf16.vlgmr.msra.gmra.mrb[64].mxu0 %v176_v22 }
  0xa4   :  { %1752 = vmatmul.mubr.bf16.vlgmr.msra.gmra.mrb[64].mxu1 %v212_v23  ;;  %1747 = vmatprep.mubr.bf16.mxu0 %v185_v24 }
  0xa5   :  { %1755 = vmatprep.mubr.bf16.mxu1 %v221_v25 }
  0xab   :  { %1748 = vmatmul.mubr.bf16.gmra.mrb[68].mxu0 %v194_v30 }
  0xac   :  { %1756 = vmatmul.mubr.bf16.gmra.mrb[68].mxu1 %v230_v31 }
  0xf6   :  { %v1471_v32 = vpop.f32.mrb[0].mxu0 }
  0xf7   :  { %v1535_v33 = vpop.f32.mrb[0].mxu1  ;;  %v1472_v34 = vpop.f32.mrb[1].mxu0 }
  0xf8   :  { %v1473_v35 = vadd.f32 %v1472_v34, %v1471_v32  ;;  %v1536_v36 = vpop.f32.mrb[1].mxu1  ;;  %v1474_v37 = vpop.f32.mrb[2].mxu0 }
  0xf9   :  { %v1537_v38 = vadd.f32 %v1536_v36, %v1535_v33  ;;  %v1538_v39 = vpop.f32.mrb[2].mxu1  ;;  %v1475_v40 = vpop.f32.mrb[3].mxu0 }
  0xfa   :  { %v1476_v41 = vadd.f32 %v1475_v40, %v1474_v37  ;;  %v1539_v42 = vpop.f32.mrb[3].mxu1 }
  0xfb   :  { %v2520_v43 = vadd.f32 %v1537_v38, %v1473_v35  ;;  %v1540_v44 = vadd.f32 %v1539_v42, %v1538_v39 }
  0xfd   :  { %v2522_v45 = vadd.f32 %v1540_v44, %v1476_v41 }
  0xfe   :  { %v1477_v46 = vpop.f32.mrb[4].mxu0 }
  0xff   :  { %v1541_v47 = vpop.f32.mrb[4].mxu1  ;;  %v1478_v48 = vpop.f32.mrb[5].mxu0 }
 0x100   :  { %v1479_v49 = vadd.f32 %v1478_v48, %v1477_v46  ;;  %v1542_v50 = vpop.f32.mrb[5].mxu1  ;;  %v1480_v51 = vpop.f32.mrb[6].mxu0 }
 0x101   :  { %v1543_v52 = vadd.f32 %v1542_v50, %v1541_v47  ;;  %v1544_v53 = vpop.f32.mrb[6].mxu1  ;;  %v1481_v54 = vpop.f32.mrb[7].mxu0 }
 0x102   :  { %v1482_v55 = vadd.f32 %v1481_v54, %v1480_v51  ;;  %v1545_v56 = vpop.f32.mrb[7].mxu1 }
 0x103   :  { %v2524_v57 = vadd.f32 %v1543_v52, %v1479_v49  ;;  %v1546_v58 = vadd.f32 %v1545_v56, %v1544_v53 }
 0x105   :  { %v2526_v59 = vadd.f32 %v1546_v58, %v1482_v55 }
 0x106   :  { %v1483_v60 = vpop.f32.mrb[8].mxu0 }
 0x107   :  { %v1547_v61 = vpop.f32.mrb[8].mxu1  ;;  %v1484_v62 = vpop.f32.mrb[9].mxu0 }
 0x108   :  { %v1485_v63 = vadd.f32 %v1484_v62, %v1483_v60  ;;  %v1548_v0 = vpop.f32.mrb[9].mxu1  ;;  %v1486_v1 = vpop.f32.mrb[10].mxu0 }
 0x109   :  { %v1549_v2 = vadd.f32 %v1548_v0, %v1547_v61  ;;  %v1550_v3 = vpop.f32.mrb[10].mxu1  ;;  %v1487_v4 = vpop.f32.mrb[11].mxu0 }
 0x10a   :  { %v1488_v5 = vadd.f32 %v1487_v4, %v1486_v1  ;;  %v1551_v6 = vpop.f32.mrb[11].mxu1 }
 0x10b   :  { %v2528_v7 = vadd.f32 %v1549_v2, %v1485_v63  ;;  %v1552_v8 = vadd.f32 %v1551_v6, %v1550_v3 }
 0x10d   :  { %v2530_v9 = vadd.f32 %v1552_v8, %v1488_v5 }
 0x10e   :  { %v1489_v10 = vpop.f32.mrb[12].mxu0 }
 0x10f   :  { %v1553_v11 = vpop.f32.mrb[12].mxu1  ;;  %v1490_v12 = vpop.f32.mrb[13].mxu0 }
 0x110   :  { %v1491_v13 = vadd.f32 %v1490_v12, %v1489_v10  ;;  %v1554_v14 = vpop.f32.mrb[13].mxu1  ;;  %v1492_v15 = vpop.f32.mrb[14].mxu0 }
 0x111   :  { %v1555_v16 = vadd.f32 %v1554_v14, %v1553_v11  ;;  %v1556_v17 = vpop.f32.mrb[14].mxu1  ;;  %v1493_v18 = vpop.f32.mrb[15].mxu0 }
 0x112   :  { %v1494_v19 = vadd.f32 %v1493_v18, %v1492_v15  ;;  %v1557_v20 = vpop.f32.mrb[15].mxu1 }
 0x113   :  { %v2532_v21 = vadd.f32 %v1555_v16, %v1491_v13  ;;  %v1558_v22 = vadd.f32 %v1557_v20, %v1556_v17 }
 0x115   :  { %v2534_v23 = vadd.f32 %v1558_v22, %v1494_v19 }
 0x116   :  { %v1495_v24 = vpop.f32.mrb[16].mxu0 }
 0x117   :  { %v1559_v25 = vpop.f32.mrb[16].mxu1  ;;  %v1496_v26 = vpop.f32.mrb[17].mxu0 }
 0x118   :  { %v1497_v27 = vadd.f32 %v1496_v26, %v1495_v24  ;;  %v1560_v28 = vpop.f32.mrb[17].mxu1  ;;  %v1498_v29 = vpop.f32.mrb[18].mxu0 }
 0x119   :  { %v1561_v30 = vadd.f32 %v1560_v28, %v1559_v25  ;;  %v1562_v31 = vpop.f32.mrb[18].mxu1  ;;  %v1499_v32 = vpop.f32.mrb[19].mxu0 }
 0x11a   :  { %v1500_v33 = vadd.f32 %v1499_v32, %v1498_v29  ;;  %v1563_v34 = vpop.f32.mrb[19].mxu1 }
 0x11b   :  { %v2536_v35 = vadd.f32 %v1561_v30, %v1497_v27  ;;  %v1564_v36 = vadd.f32 %v1563_v34, %v1562_v31 }
 0x11d   :  { %v2538_v37 = vadd.f32 %v1564_v36, %v1500_v33 }
 0x11e   :  { %v1501_v38 = vpop.f32.mrb[20].mxu0 }
 0x11f   :  { %v1565_v39 = vpop.f32.mrb[20].mxu1  ;;  %v1502_v40 = vpop.f32.mrb[21].mxu0 }
 0x120   :  { %v1503_v41 = vadd.f32 %v1502_v40, %v1501_v38  ;;  %v1566_v42 = vpop.f32.mrb[21].mxu1  ;;  %v1504_v44 = vpop.f32.mrb[22].mxu0 }
 0x121   :  { %v1567_v46 = vadd.f32 %v1566_v42, %v1565_v39  ;;  %v1568_v47 = vpop.f32.mrb[22].mxu1  ;;  %v1505_v48 = vpop.f32.mrb[23].mxu0 }
 0x122   :  { %v1506_v49 = vadd.f32 %v1505_v48, %v1504_v44  ;;  %v1569_v50 = vpop.f32.mrb[23].mxu1 }
 0x123   :  { %v2540_v51 = vadd.f32 %v1567_v46, %v1503_v41  ;;  %v1570_v52 = vadd.f32 %v1569_v50, %v1568_v47 }
 0x125   :  { %v2542_v53 = vadd.f32 %v1570_v52, %v1506_v49 }
 0x126   :  { %v1507_v54 = vpop.f32.mrb[24].mxu0 }
 0x127   :  { %v1571_v55 = vpop.f32.mrb[24].mxu1  ;;  %v1508_v56 = vpop.f32.mrb[25].mxu0 }
 0x128   :  { %v1509_v58 = vadd.f32 %v1508_v56, %v1507_v54  ;;  %v1572_v60 = vpop.f32.mrb[25].mxu1  ;;  %v1510_v61 = vpop.f32.mrb[26].mxu0 }
 0x129   :  { %v1573_v62 = vadd.f32 %v1572_v60, %v1571_v55  ;;  %v1574_v63 = vpop.f32.mrb[26].mxu1  ;;  %v1511_v0 = vpop.f32.mrb[27].mxu0 }
 0x12a   :  { %v1512_v1 = vadd.f32 %v1511_v0, %v1510_v61  ;;  %v1575_v2 = vpop.f32.mrb[27].mxu1 }
 0x12b   :  { %v2544_v3 = vadd.f32 %v1573_v62, %v1509_v58  ;;  %v1576_v4 = vadd.f32 %v1575_v2, %v1574_v63 }
 0x12d   :  { %v2546_v5 = vadd.f32 %v1576_v4, %v1512_v1 }
 0x12e   :  { %v1513_v6 = vpop.f32.mrb[28].mxu0 }
 0x12f   :  { %v1577_v8 = vpop.f32.mrb[28].mxu1  ;;  %v1514_v10 = vpop.f32.mrb[29].mxu0 }
 0x130   :  { %v1515_v11 = vadd.f32 %v1514_v10, %v1513_v6  ;;  %v1578_v12 = vpop.f32.mrb[29].mxu1  ;;  %v1516_v13 = vpop.f32.mrb[30].mxu0 }
 0x131   :  { %v1579_v14 = vadd.f32 %v1578_v12, %v1577_v8  ;;  %v1580_v15 = vpop.f32.mrb[30].mxu1  ;;  %v1517_v16 = vpop.f32.mrb[31].mxu0 }
 0x132   :  { %v1518_v17 = vadd.f32 %v1517_v16, %v1516_v13  ;;  %v1581_v18 = vpop.f32.mrb[31].mxu1 }
 0x133   :  { %v2548_v19 = vadd.f32 %v1579_v14, %v1515_v11  ;;  %v1582_v20 = vadd.f32 %v1581_v18, %v1580_v15 }
 0x135   :  { %v2550_v22 = vadd.f32 %v1582_v20, %v1518_v17 }
 0x136   :  { %v1599_v24 = vpop.f32.mrb[32].mxu0 }
 0x137   :  { %v1600_v25 = vpop.f32.mrb[33].mxu0  ;;  %v1663_v26 = vpop.f32.mrb[32].mxu1 }
 0x138   :  { %v1601_v27 = vadd.f32 %v1600_v25, %v1599_v24  ;;  %v1602_v28 = vpop.f32.mrb[34].mxu0  ;;  %v1664_v29 = vpop.f32.mrb[33].mxu1 }
 0x139   :  { %v1603_v30 = vpop.f32.mrb[35].mxu0  ;;  %v1665_v31 = vadd.f32 %v1664_v29, %v1663_v26  ;;  %v1666_v32 = vpop.f32.mrb[34].mxu1 }
 0x13a   :  { %v1036_v33 = vadd.f32 %v1601_v27, %v2520_v43  ;;  %v1604_v34 = vadd.f32 %v1603_v30, %v1602_v28  ;;  %v1667_v36 = vpop.f32.mrb[35].mxu1 }
 0x13b   :  { %v1668_v38 = vadd.f32 %v1667_v36, %v1666_v32 }
 0x13c   :  { %v1039_v39 = vadd.f32 %v1604_v34, %v2522_v45  ;;  %v2554_v40 = vadd.f32 %v1665_v31, %v1036_v33 }
 0x13e   :  { %v1605_v41 = vpop.f32.mrb[36].mxu0  ;;  %v2556_v42 = vadd.f32 %v1668_v38, %v1039_v39 }
 0x13f   :  { %v1606_v44 = vpop.f32.mrb[37].mxu0  ;;  %v1669_v46 = vpop.f32.mrb[36].mxu1 }
 0x140   :  { %v1607_v47 = vadd.f32 %v1606_v44, %v1605_v41  ;;  %v1608_v48 = vpop.f32.mrb[38].mxu0  ;;  %v1670_v49 = vpop.f32.mrb[37].mxu1 }
 0x141   :  { %v1609_v50 = vpop.f32.mrb[39].mxu0  ;;  %v1671_v52 = vadd.f32 %v1670_v49, %v1669_v46  ;;  %v1672_v54 = vpop.f32.mrb[38].mxu1 }
 0x142   :  { %v1044_v43 = vadd.f32 %v1607_v47, %v2524_v57  ;;  %v1610_v55 = vadd.f32 %v1609_v50, %v1608_v48  ;;  %v1673_v56 = vpop.f32.mrb[39].mxu1 }
 0x143   :  { %v1674_v58 = vadd.f32 %v1673_v56, %v1672_v54 }
 0x144   :  { %v1047_v45 = vadd.f32 %v1610_v55, %v2526_v59  ;;  %v2560_v60 = vadd.f32 %v1671_v52, %v1044_v43 }
 0x146   :  { %v1611_v61 = vpop.f32.mrb[40].mxu0  ;;  %v2562_v62 = vadd.f32 %v1674_v58, %v1047_v45 }
 0x147   :  { %v1612_v63 = vpop.f32.mrb[41].mxu0  ;;  %v1675_v0 = vpop.f32.mrb[40].mxu1 }
 0x148   :  { %v1613_v1 = vadd.f32 %v1612_v63, %v1611_v61  ;;  %v1614_v2 = vpop.f32.mrb[42].mxu0  ;;  %v1676_v4 = vpop.f32.mrb[41].mxu1 }
 0x149   :  { %v1615_v6 = vpop.f32.mrb[43].mxu0  ;;  %v1677_v8 = vadd.f32 %v1676_v4, %v1675_v0  ;;  %v1678_v10 = vpop.f32.mrb[42].mxu1 }
 0x14a   :  { %v1052_v57 = vadd.f32 %v1613_v1, %v2528_v7  ;;  %v1616_v11 = vadd.f32 %v1615_v6, %v1614_v2  ;;  %v1679_v12 = vpop.f32.mrb[43].mxu1 }
 0x14b   :  { %v1680_v13 = vadd.f32 %v1679_v12, %v1678_v10 }
 0x14c   :  { %v1055_v59 = vadd.f32 %v1616_v11, %v2530_v9  ;;  %v2566_v14 = vadd.f32 %v1677_v8, %v1052_v57 }
 0x14e   :  { %v1617_v15 = vpop.f32.mrb[44].mxu0  ;;  %v2568_v16 = vadd.f32 %v1680_v13, %v1055_v59 }
 0x14f   :  { %v1618_v17 = vpop.f32.mrb[45].mxu0  ;;  %v1681_v18 = vpop.f32.mrb[44].mxu1 }
 0x150   :  { %v1619_v20 = vadd.f32 %v1618_v17, %v1617_v15  ;;  %v1620_v24 = vpop.f32.mrb[46].mxu0  ;;  %v1682_v25 = vpop.f32.mrb[45].mxu1 }
 0x151   :  { %v1621_v26 = vpop.f32.mrb[47].mxu0  ;;  %v1683_v27 = vadd.f32 %v1682_v25, %v1681_v18  ;;  %v1684_v28 = vpop.f32.mrb[46].mxu1 }
 0x152   :  { %v1060_v7 = vadd.f32 %v1619_v20, %v2532_v21  ;;  %v1622_v29 = vadd.f32 %v1621_v26, %v1620_v24  ;;  %v1685_v30 = vpop.f32.mrb[47].mxu1 }
 0x153   :  { %v1686_v31 = vadd.f32 %v1685_v30, %v1684_v28 }
 0x154   :  { %v1063_v9 = vadd.f32 %v1622_v29, %v2534_v23  ;;  %v2572_v32 = vadd.f32 %v1683_v27, %v1060_v7 }
 0x156   :  { %v1623_v33 = vpop.f32.mrb[48].mxu0  ;;  %v2574_v34 = vadd.f32 %v1686_v31, %v1063_v9 }
 0x157   :  { %v1624_v36 = vpop.f32.mrb[49].mxu0  ;;  %v1687_v38 = vpop.f32.mrb[48].mxu1 }
 0x158   :  { %v1625_v39 = vadd.f32 %v1624_v36, %v1623_v33  ;;  %v1626_v41 = vpop.f32.mrb[50].mxu0  ;;  %v1688_v44 = vpop.f32.mrb[49].mxu1 }
 0x159   :  { %v1627_v46 = vpop.f32.mrb[51].mxu0  ;;  %v1689_v47 = vadd.f32 %v1688_v44, %v1687_v38  ;;  %v1690_v48 = vpop.f32.mrb[50].mxu1 }
 0x15a   :  { %v1068_v21 = vadd.f32 %v1625_v39, %v2536_v35  ;;  %v1628_v49 = vadd.f32 %v1627_v46, %v1626_v41  ;;  %v1691_v50 = vpop.f32.mrb[51].mxu1 }
 0x15b   :  { %v1692_v52 = vadd.f32 %v1691_v50, %v1690_v48 }
 0x15c   :  { %v1071_v23 = vadd.f32 %v1628_v49, %v2538_v37  ;;  %v1165_v54 = vadd.f32 %v1689_v47, %v1068_v21 }
 0x15e   :  { %v1629_v43 = vpop.f32.mrb[52].mxu0  ;;  %v2578_v55 = vadd.f32 %v1692_v52, %v1071_v23 }
 0x15f   :  { %v1630_v56 = vpop.f32.mrb[53].mxu0  ;;  %v1693_v58 = vpop.f32.mrb[52].mxu1 }
 0x160   :  { %v1631_v45 = vadd.f32 %v1630_v56, %v1629_v43  ;;  %v1632_v61 = vpop.f32.mrb[54].mxu0  ;;  %v1694_v63 = vpop.f32.mrb[53].mxu1 }
 0x161   :  { %v1633_v0 = vpop.f32.mrb[55].mxu0  ;;  %v1695_v1 = vadd.f32 %v1694_v63, %v1693_v58  ;;  %v1696_v2 = vpop.f32.mrb[54].mxu1 }
 0x162   :  { %v1076_v4 = vadd.f32 %v1631_v45, %v2540_v51  ;;  %v1634_v35 = vadd.f32 %v1633_v0, %v1632_v61  ;;  %v1697_v6 = vpop.f32.mrb[55].mxu1 }
 0x163   :  { %v1698_v8 = vadd.f32 %v1697_v6, %v1696_v2 }
 0x164   :  { %v1079_v10 = vadd.f32 %v1634_v35, %v2542_v53  ;;  %v1173_v37 = vadd.f32 %v1695_v1, %v1076_v4 }
 0x166   :  { %v1635_v57 = vpop.f32.mrb[56].mxu0  ;;  %v1176_v11 = vadd.f32 %v1698_v8, %v1079_v10 }
 0x167   :  { %v1636_v12 = vpop.f32.mrb[57].mxu0  ;;  %v1699_v13 = vpop.f32.mrb[56].mxu1 }
 0x168   :  { %v1637_v59 = vadd.f32 %v1636_v12, %v1635_v57  ;;  %v1638_v15 = vpop.f32.mrb[58].mxu0  ;;  %v1700_v17 = vpop.f32.mrb[57].mxu1 }
 0x169   :  { %v1639_v18 = vpop.f32.mrb[59].mxu0  ;;  %v1701_v20 = vadd.f32 %v1700_v17, %v1699_v13  ;;  %v1702_v24 = vpop.f32.mrb[58].mxu1 }
 0x16a   :  { %v1084_v25 = vadd.f32 %v1637_v59, %v2544_v3  ;;  %v1640_v26 = vadd.f32 %v1639_v18, %v1638_v15  ;;  %v1703_v51 = vpop.f32.mrb[59].mxu1 }
 0x16b   :  { %v1704_v27 = vadd.f32 %v1703_v51, %v1702_v24 }
 0x16c   :  { %v1087_v28 = vadd.f32 %v1640_v26, %v2546_v5  ;;  %v1181_v7 = vadd.f32 %v1701_v20, %v1084_v25 }
 0x16e   :  { %v1641_v53 = vpop.f32.mrb[60].mxu0  ;;  %v2584_v29 = vadd.f32 %v1704_v27, %v1087_v28 }
 0x16f   :  { %v1642_v30 = vpop.f32.mrb[61].mxu0  ;;  %v1705_v31 = vpop.f32.mrb[60].mxu1 }
 0x170   :  { %v1643_v9 = vadd.f32 %v1642_v30, %v1641_v53  ;;  %v1644_v33 = vpop.f32.mrb[62].mxu0  ;;  %v1706_v36 = vpop.f32.mrb[61].mxu1 }
 0x171   :  { %v1645_v38 = vpop.f32.mrb[63].mxu0  ;;  %v1707_v39 = vadd.f32 %v1706_v36, %v1705_v31  ;;  %v1708_v41 = vpop.f32.mrb[62].mxu1 }
 0x172   :  { %v1092_v44 = vadd.f32 %v1643_v9, %v2548_v19  ;;  %v1646_v3 = vadd.f32 %v1645_v38, %v1644_v33  ;;  %v1709_v46 = vpop.f32.mrb[63].mxu1 }
 0x173   :  { %v1710_v47 = vadd.f32 %v1709_v46, %v1708_v41 }
 0x174   :  { %v1095_v48 = vadd.f32 %v1646_v3, %v2550_v22  ;;  %v1189_v5 = vadd.f32 %v1707_v39, %v1092_v44 }
 0x176   :  { %v1745_v21 = vpop.f32.mrb[64].mxu0  ;;  %v1192_v49 = vadd.f32 %v1710_v47, %v1095_v48 }
 0x177   :  { %v1238_v50 = vadd.f32 %v1745_v21, %v2560_v60  ;;  %v1753_v52 = vpop.f32.mrb[64].mxu1  ;;  %v1229_v23 = vpop.f32.mrb[65].mxu0 }
 0x178   :  { %v2589_v43 = vadd.f32 %v1753_v52, %v1173_v37  ;;  %v1230_v56 = vadd.f32 %v1229_v23, %v2554_v40  ;;  %v1261_v58 = vpop.f32.mrb[65].mxu1  ;;  %v1746_v45 = vpop.f32.mrb[66].mxu0 }
 0x179   :  { %1294 = vst [vmem:[%s2666_s2 + $0x10] sm:$0xff] %v1238_v50  ;;  %v1262_v19 = vadd.f32 %v1261_v58, %v1165_v54  ;;  %v1241_v22 = vadd.f32 %v1746_v45, %v2562_v62  ;;  %v1754_v61 = vpop.f32.mrb[66].mxu1  ;;  %v1232_v63 = vpop.f32.mrb[67].mxu0  ;;  %v1331_v2 = vmul.f32 %v1238_v50, %v1238_v50 }
 0x17a   :  { %1302 = vst [vmem:[%s2666_s2 + $0x50] sm:$0xff] %v2589_v43  ;;  %1292 = vst [vmem:[%s2666_s2] sm:$0xff] %v1230_v56  ;;  %v2603_v40 = vadd.f32 %v1754_v61, %v1176_v11  ;;  %v1233_v60 = vadd.f32 %v1232_v63, %v2556_v42  ;;  %v1264_v0 = vpop.f32.mrb[67].mxu1  ;;  %v1329_v54 = vmul.f32 %v1230_v56, %v1230_v56 }
 0x17b   :  { %1300 = vst [vmem:[%s2666_s2 + $0x40] sm:$0xff] %v1262_v19  ;;  %1295 = vst [vmem:[%s2666_s2 + $0x18] sm:$0xff] %v1241_v22  ;;  %v1265_v62 = vadd.f32 %v1264_v0, %v2578_v55  ;;  %v1332_v6 = vmul.f32 %v1241_v22, %v1241_v22  ;;  %v1337_v36 = vmul.f32 %v1262_v19, %v1262_v19 }
 0x17c   :  { %1303 = vst [vmem:[%s2666_s2 + $0x58] sm:$0xff] %v2603_v40  ;;  %1293 = vst [vmem:[%s2666_s2 + $0x8] sm:$0xff] %v1233_v60  ;;  %v1308_v42 = vadd.f32 %v1233_v60, %v1230_v56  ;;  %v1330_v1 = vmul.f32 %v1233_v60, %v1233_v60  ;;  %v1339_v46 = vmul.f32 %v2589_v43, %v2589_v43 }
 0x17d   :  { %1301 = vst [vmem:[%s2666_s2 + $0x48] sm:$0xff] %v1265_v62  ;;  %v1338_v41 = vmul.f32 %v1265_v62, %v1265_v62 }
 0x17e   :  { %v1309_v4 = vadd.f32 %v1308_v42, %v1238_v50  ;;  %v1345_v35 = vadd.f32 %v1330_v1, %v1329_v54  ;;  %v1749_v55 = vpop.f32.mrb[68].mxu0 }
 0x17f   :  { %v1254_v8 = vadd.f32 %v1749_v55, %v2572_v32  ;;  %v1757_v10 = vpop.f32.mrb[68].mxu1  ;;  %v1245_v37 = vpop.f32.mrb[69].mxu0 }
 0x180   :  { %v1346_v57 = vadd.f32 %v1345_v35, %v1331_v2  ;;  %v1286_v11 = vadd.f32 %v1757_v10, %v1189_v5  ;;  %v1246_v12 = vadd.f32 %v1245_v37, %v2566_v14  ;;  %v1310_v13 = vadd.f32 %v1309_v4, %v1241_v22  ;;  %v1277_v59 = vpop.f32.mrb[69].mxu1  ;;  %v1750_v15 = vpop.f32.mrb[70].mxu0 }
 0x181   :  { %1298 = vst [vmem:[%s2666_s2 + $0x30] sm:$0xff] %v1254_v8  ;;  %v1278_v17 = vadd.f32 %v1277_v59, %v1181_v7  ;;  %v1257_v18 = vadd.f32 %v1750_v15, %v2574_v34  ;;  %v1758_v20 = vpop.f32.mrb[70].mxu1  ;;  %v1248_v24 = vpop.f32.mrb[71].mxu0  ;;  %v1335_v30 = vmul.f32 %v1254_v8, %v1254_v8  ;;  %v1340_v5 = vmul.f32 %v2603_v40, %v2603_v40 }
 0x182   :  { %1306 = vst [vmem:[%s2666_s2 + $0x70] sm:$0xff] %v1286_v11  ;;  %1296 = vst [vmem:[%s2666_s2 + $0x20] sm:$0xff] %v1246_v12  ;;  %v1311_v14 = vadd.f32 %v1310_v13, %v1246_v12  ;;  %v1333_v32 = vmul.f32 %v1246_v12, %v1246_v12  ;;  %v1347_v25 = vadd.f32 %v1346_v57, %v1332_v6  ;;  %v1280_v26 = vpop.f32.mrb[71].mxu1 }
 0x183   :  { %1304 = vst [vmem:[%s2666_s2 + $0x60] sm:$0xff] %v1278_v17  ;;  %1299 = vst [vmem:[%s2666_s2 + $0x38] sm:$0xff] %v1257_v18  ;;  %v1289_v34 = vadd.f32 %v1758_v20, %v1192_v49  ;;  %v1249_v51 = vadd.f32 %v1248_v24, %v2568_v16  ;;  %v1281_v28 = vadd.f32 %v1280_v26, %v2584_v29 }
 0x184   :  { %v1348_v27 = vadd.f32 %v1347_v25, %v1333_v32  ;;  %v1336_v9 = vmul.f32 %v1257_v18, %v1257_v18  ;;  %v1341_v50 = vmul.f32 %v1278_v17, %v1278_v17 }
 0x185   :  { %1307 = vst [vmem:[%s2666_s2 + $0x78] sm:$0xff] %v1289_v34  ;;  %1297 = vst [vmem:[%s2666_s2 + $0x28] sm:$0xff] %v1249_v51  ;;  %v1312_v7 = vadd.f32 %v1311_v14, %v1249_v51  ;;  %v1334_v53 = vmul.f32 %v1249_v51, %v1249_v51  ;;  %v1342_v58 = vmul.f32 %v1281_v28, %v1281_v28 }
 0x186   :  { %1305 = vst [vmem:[%s2666_s2 + $0x68] sm:$0xff] %v1281_v28  ;;  %v1344_v63 = vmul.f32 %v1289_v34, %v1289_v34 }
 0x187   :  { %v1313_v31 = vadd.f32 %v1312_v7, %v1254_v8  ;;  %v1349_v16 = vadd.f32 %v1348_v27, %v1334_v53 }
 0x189   :  { %v1314_v33 = vadd.f32 %v1313_v31, %v1257_v18  ;;  %v1350_v29 = vadd.f32 %v1349_v16, %v1335_v30 }
 0x18b   :  { %v1315_v38 = vadd.f32 %v1314_v33, %v1262_v19  ;;  %v1351_v39 = vadd.f32 %v1350_v29, %v1336_v9  ;;  %v1343_v19 = vmul.f32 %v1286_v11, %v1286_v11 }
 0x18d   :  { %v1352_v44 = vadd.f32 %v1351_v39, %v1337_v36  ;;  %v1316_v3 = vadd.f32 %v1315_v38, %v1265_v62 }
 0x18f   :  { %v1317_v47 = vadd.f32 %v1316_v3, %v2589_v43  ;;  %v1353_v48 = vadd.f32 %v1352_v44, %v1338_v41 }
 0x191   :  { %v1318_v21 = vadd.f32 %v1317_v47, %v2603_v40  ;;  %v1354_v49 = vadd.f32 %v1353_v48, %v1339_v46 }
 0x193   :  { %v1319_v52 = vadd.f32 %v1318_v21, %v1278_v17  ;;  %v1355_v23 = vadd.f32 %v1354_v49, %v1340_v5 }
 0x195   :  { %v1320_v56 = vadd.f32 %v1319_v52, %v1281_v28  ;;  %v1356_v45 = vadd.f32 %v1355_v23, %v1341_v50 }
 0x197   :  { %v1321_v22 = vadd.f32 %v1320_v56, %v1286_v11  ;;  %v1357_v61 = vadd.f32 %v1356_v45, %v1342_v58 }
 0x199   :  { %v1322_v60 = vadd.f32 %v1321_v22, %v1289_v34  ;;  %v1358_v0 = vadd.f32 %v1357_v61, %v1343_v19 }
 0x19b   :  { %v1323_v43 = vrot.slane %v1322_v60, 4  ;;  %v1359_v62 = vadd.f32 %v1358_v0, %v1344_v63 }
 0x19d   :  { %v1324_v54 = vadd.f32 %v1323_v43, %v1322_v60  ;;  %v1360_v42 = vrot.slane %v1359_v62, 4 }
 0x19f   :  { %v1325_v1 = vrot.slane %v1324_v54, 2  ;;  %v1361_v2 = vadd.f32 %v1360_v42, %v1359_v62 }
 0x1a1   :  { %v1326_v40 = vadd.f32 %v1325_v1, %v1324_v54  ;;  %v1362_v4 = vrot.slane %v1361_v2, 2 }
 0x1a3   :  { %v1327_v35 = vrot.slane %v1326_v40, 1  ;;  %v1363_v55 = vadd.f32 %v1362_v4, %v1361_v2 }
 0x1a5   :  { %v1328_v6 = vadd.f32 %v1327_v35, %v1326_v40  ;;  %v1364_v8 = vrot.slane %v1363_v55, 1 }
 0x1a7   :  { %v1365_v10 = vadd.f32 %v1364_v8, %v1363_v55  ;;  %v1367_v37 = vsel %vm1366_vm0, %v1328_v6, 0.0 }
 0x1a8   :  { %1368 = vst [vmem:[%s2667_s3] sm:$0xff] %v1367_v37 }
 0x1a9   :  { %v1369_v57 = vsel %vm1366_vm0, %v1365_v10, 0.0 }
 0x1aa   :  { %1370 = vst [vmem:[%s2668_s4] sm:$0xff] %v1369_v57 }

</bundles_post_ra>
